<compile_context>
chip_gen: v5e
topology: v5e:2x2
jax: 0.10.0
libtpu: 0.0.40
codegen_flags: <defaults>
</compile_context>

<pallas_src>
import functools

import jax
import jax.numpy as jnp
from jax.experimental import pallas as pl
from jax.experimental.pallas import tpu as pltpu


_VMEM = pl.BlockSpec(memory_space=pltpu.MemorySpace.VMEM)


# ----------------------------------------------------------------------------
# Fused kernel: all LSTM layers (directions fused) + both heads + log_softmax
# ----------------------------------------------------------------------------
def fused_bilstm_kernel(x_ref, m_ref, h0_ref, c0_ref, wh_ref, bh_ref,
                        wih0_ref, wihr_ref, whh_ref, b_ref,
                        out_ref, pre_ref, ys_ref,
                        *, num_layers, T, H, EV, CR):
    """Ref shapes:
      x:    (T, B, E)            time-major input
      m:    (T, B, H)   f32      1.0 where t < length_b else 0.0 (lane-broadcast)
      h0,c0:(L, B, 2H)           initial states, lane-concat [fwd | bwd]
      wh:   (2H, EV+CR)  bh: (1, EV+CR)   fused Linear heads
      wih0: (E, 8H)              layer-0 input weights, cols [fwd(i,f,o,g)|bwd(i,f,o,g)]
      wihr: (max(L-1,1), 2H, 8H) layer>=1 input weights, same column layout
      whh:  (L, 2H, 8H)          block-diagonal recurrent weights
      b:    (L, 1, 8H)           fused biases (b_ih + b_hh per direction)
      out:  (B, 2H+EV+CR)        [embeddings | log_probs_event | log_probs_crit]
      pre_ref: (T, B, 8H) VMEM scratch -- hoisted per-timestep input projections
      ys_ref:  (2, T, B, H) VMEM scratch -- previous-layer outputs (fwd / bwd planes)
    """
    B = x_ref.shape[1]
    H3, H4, H8 = 3 * H, 4 * H, 8 * H

    # Validity masks: compares hoisted out of the recurrence, shared by layers.
    keeps = [m_ref[t] > 0.0 for t in range(T)]            # T x (B, H) bool

    def fast_sigmoid(v):                                  # one EUP tanh + VPU scale/add
        return 0.5 * jnp.tanh(0.5 * v) + 0.5

    def gate_update(g, c_old):                            # g: (B, 4H) in (i, f, o, g)
        sig = fast_sigmoid(g[:, :H3])                     # i, f, o in one slab
        i_g = sig[:, :H]
        f_g = sig[:, H:2 * H]
        o_g = sig[:, 2 * H:]
        c_new = f_g * c_old + i_g * jnp.tanh(g[:, H3:])
        return o_g * jnp.tanh(c_new), c_new

    h2 = None
    for layer in range(num_layers):
        # ---- input projection for ALL timesteps, hoisted off the recurrence ----
        if layer == 0:
            in2d = x_ref[...].reshape(T * B, x_ref.shape[2])
            pre2d = jnp.dot(in2d, wih0_ref[...],
                            preferred_element_type=jnp.float32)
        else:
            wih = wihr_ref[layer - 1]                     # (2H, 8H)
            yf2d = ys_ref[0].reshape(T * B, H)
            yb2d = ys_ref[1].reshape(T * B, H)
            pre2d = (jnp.dot(yf2d, wih[:H], preferred_element_type=jnp.float32)
                     + jnp.dot(yb2d, wih[H:], preferred_element_type=jnp.float32))
        pre_ref[...] = (pre2d + b_ref[layer]).reshape(T, B, H8)

        whh_bd = whh_ref[layer]                           # (2H, 8H) block-diagonal
        h2 = h0_ref[layer]                                # (B, 2H) = [h_f | h_b]
        c2 = c0_ref[layer]
        last = layer == num_layers - 1

        # Merged time loop: fwd direction steps time s, bwd steps time T-1-s.
        for s in range(T):
            r = T - 1 - s
            # TODO(synk): keep whh_bd resident via pltpu.matmul_push_rhs/acc_lhs/pop
            # to avoid the per-step RHS reload; kept on jnp.dot for portability.
            rec = jnp.dot(h2, whh_bd, preferred_element_type=jnp.float32)  # (B, 8H)
            hf_new, cf_new = gate_update(rec[:, :H4] + pre_ref[s, :, :H4], c2[:, :H])
            hb_new, cb_new = gate_update(rec[:, H4:] + pre_ref[r, :, H4:], c2[:, H:])

            kf, kb = keeps[s], keeps[r]
            hf = jnp.where(kf, hf_new, h2[:, :H])
            cf = jnp.where(kf, cf_new, c2[:, :H])
            hb = jnp.where(kb, hb_new, h2[:, H:])
            cb = jnp.where(kb, cb_new, c2[:, H:])

            if not last:                                  # layer output to VMEM scratch
                ys_ref[0, s, :, :] = hf                   # fwd output at time s
                ys_ref[1, r, :, :] = hb                   # bwd output at time r

            h2 = jnp.concatenate([hf, hb], axis=-1)
            c2 = jnp.concatenate([cf, cb], axis=-1)
        # TODO(synk): inter-layer dropout (p=0.5) is train-mode only; eval forward omits it.

    # Embeddings: [fwd hidden at t=len_b-1 | bwd hidden at t=0] of the top layer == h2.
    emb = h2
    logits = jnp.dot(emb, wh_ref[...], preferred_element_type=jnp.float32) + bh_ref[...]

    def log_softmax(y):
        mx = jnp.max(y, axis=-1, keepdims=True)
        sh = y - mx
        return sh - jnp.log(jnp.sum(jnp.exp(sh), axis=-1, keepdims=True))

    # Single lane-contiguous output slab: [emb | log_probs_event | log_probs_crit].
    out_ref[...] = jnp.concatenate(
        [emb, log_softmax(logits[:, :EV]), log_softmax(logits[:, EV:EV + CR])],
        axis=-1)


# ----------------------------------------------------------------------------
# Parameter construction (deterministic, PyTorch-style init ranges)
# ----------------------------------------------------------------------------
def init_params(key, embedding_dim, hidden_dim, num_layers,
                event_output_size, crit_output_size, batch_size):
    H = hidden_dim
    k_lstm = 1.0 / jnp.sqrt(H)
    params = {"lstm": []}
    for layer in range(num_layers):
        din = embedding_dim if layer == 0 else 2 * H
        layer_p = {}
        for direction in ("fwd", "bwd"):
            key, k1, k2, k3, k4 = jax.random.split(key, 5)
            # Stored pre-transposed (din, 4H) with gate order (i, f, o, g).
            # To load PyTorch weights: take weight_ih (4H, din) in (i,f,g,o)
            # order, permute gate blocks to (i,f,o,g), then transpose.
            wih = jax.random.uniform(k1, (din, 4 * H), jnp.float32, -k_lstm, k_lstm)
            whh = jax.random.uniform(k2, (H, 4 * H), jnp.float32, -k_lstm, k_lstm)
            b_ih = jax.random.uniform(k3, (4 * H,), jnp.float32, -k_lstm, k_lstm)
            b_hh = jax.random.uniform(k4, (4 * H,), jnp.float32, -k_lstm, k_lstm)
            layer_p[direction] = (wih, whh, (b_ih + b_hh).reshape(1, 4 * H))
        params["lstm"].append(layer_p)

    k_lin = 1.0 / jnp.sqrt(2 * H)
    key, k1, k2, k3, k4 = jax.random.split(key, 5)
    params["w_event"] = jax.random.uniform(k1, (2 * H, event_output_size),
                                           jnp.float32, -k_lin, k_lin)
    params["b_event"] = jax.random.uniform(k2, (1, event_output_size),
                                           jnp.float32, -k_lin, k_lin)
    params["w_crit"] = jax.random.uniform(k3, (2 * H, crit_output_size),
                                          jnp.float32, -k_lin, k_lin)
    params["b_crit"] = jax.random.uniform(k4, (1, crit_output_size),
                                          jnp.float32, -k_lin, k_lin)

    # init_hidden(): torch.randn(2*num_layers, B, H) for h and c.  The module
    # re-draws these at every forward; here drawn once, deterministically.
    key, kh, kc = jax.random.split(key, 3)
    params["h0"] = jax.random.normal(kh, (2 * num_layers, batch_size, H), jnp.float32)
    params["c0"] = jax.random.normal(kc, (2 * num_layers, batch_size, H), jnp.float32)
    return params


def _block_diag_whh(whh_f, whh_b):
    H = whh_f.shape[0]
    bd = jnp.zeros((2 * H, 8 * H), jnp.float32)
    bd = bd.at[:H, :4 * H].set(whh_f)
    bd = bd.at[H:, 4 * H:].set(whh_b)
    return bd


# ----------------------------------------------------------------------------
# Forward pass (matches BiLSTM_BERT_MultiTask.forward, eval mode)
# ----------------------------------------------------------------------------
def bilstm_multitask_forward(params, encoded_sentence, sentences_length,
                             num_layers, hidden_dim):
    """encoded_sentence: (B, T, E) batch-first; sentences_length: (B,) int32,
    sorted descending with sentences_length[0] == T (pack_padded_sequence)."""
    B, T, E = encoded_sentence.shape
    H = hidden_dim
    B_pad = max(8, ((B + 7) // 8) * 8)                    # pad batch to sublane mult.

    # TODO(synk): at BERT-sized E this transpose is a full extra HBM round trip;
    # fold it into a gridded layer-0 projection (batch-first index_map) at scale.
    x_tm = jnp.transpose(encoded_sentence, (1, 0, 2))     # (T, B, E) time-major
    lengths = sentences_length.astype(jnp.int32)
    h0 = params["h0"]
    c0 = params["c0"]
    if B_pad != B:
        x_tm = jnp.pad(x_tm, ((0, 0), (0, B_pad - B), (0, 0)))
        lengths = jnp.pad(lengths, (0, B_pad - B))        # padded rows: length 0
        h0 = jnp.pad(h0, ((0, 0), (0, B_pad - B), (0, 0)))
        c0 = jnp.pad(c0, ((0, 0), (0, B_pad - B), (0, 0)))

    # (T, B, H) validity mask, lane-broadcast once so the kernel never rebroadcasts.
    mask = (jnp.arange(T, dtype=jnp.int32)[:, None] < lengths[None, :])
    mask = jnp.broadcast_to(mask[:, :, None], (T, B_pad, H)).astype(jnp.float32)

    # Initial states lane-fused per layer: [fwd | bwd].
    h0f = jnp.stack([jnp.concatenate([h0[2 * l], h0[2 * l + 1]], axis=-1)
                     for l in range(num_layers)], axis=0)          # (L, B, 2H)
    c0f = jnp.stack([jnp.concatenate([c0[2 * l], c0[2 * l + 1]], axis=-1)
                     for l in range(num_layers)], axis=0)

    # Pack weights into a few stacked arrays (few large DMAs instead of 6*L small).
    wih0 = None
    whh_list, b_list, wihr_list = [], [], []
    for layer in range(num_layers):
        wih_f, whh_f, b_f = params["lstm"][layer]["fwd"]
        wih_b, whh_b, b_b = params["lstm"][layer]["bwd"]
        fused_ih = jnp.concatenate([wih_f, wih_b], axis=1)         # (Din, 8H)
        if layer == 0:
            wih0 = fused_ih
        else:
            wihr_list.append(fused_ih)
        whh_list.append(_block_diag_whh(whh_f, whh_b))             # (2H, 8H)
        b_list.append(jnp.concatenate([b_f, b_b], axis=-1))        # (1, 8H)
    whh_all = jnp.stack(whh_list, axis=0)                          # (L, 2H, 8H)
    b_all = jnp.stack(b_list, axis=0)                              # (L, 1, 8H)
    wih_rest = (jnp.stack(wihr_list, axis=0) if wihr_list
                else jnp.zeros((1, 2 * H, 8 * H), jnp.float32))    # dummy if L == 1

    # Fuse the two heads into one matmul.
    w_heads = jnp.concatenate([params["w_event"], params["w_crit"]], axis=1)
    b_heads = jnp.concatenate([params["b_event"], params["b_crit"]], axis=1)
    EV = params["w_event"].shape[1]
    CR = params["w_crit"].shape[1]

    kernel = functools.partial(fused_bilstm_kernel, num_layers=num_layers,
                               T=T, H=H, EV=EV, CR=CR)
    # TODO(synk): for real BERT embedding sizes, tile the layer-0 projection over a
    # grid (x in pl.ANY + per-T-slab DMA) to respect v7x's 64 MiB VMEM, and split the
    # batch across the two v7x TensorCores (parallel grid axis) when B is large.
    out = pl.pallas_call(
        kernel,
        out_shape=jax.ShapeDtypeStruct((B_pad, 2 * H + EV + CR), jnp.float32),
        in_specs=[_VMEM] * 10,
        out_specs=_VMEM,
        scratch_shapes=[pltpu.VMEM((T, B_pad, 8 * H), jnp.float32),   # pre buffer
                        pltpu.VMEM((2, T, B_pad, H), jnp.float32)],   # layer outputs
    )(x_tm, mask, h0f, c0f, w_heads, b_heads, wih0, wih_rest, whh_all, b_all)

    emb = out[:B, :2 * H]
    log_e = out[:B, 2 * H:2 * H + EV]
    log_c = out[:B, 2 * H + EV:]
    return log_e, log_c, emb


# ----------------------------------------------------------------------------
if __name__ == "__main__":
    EMBEDDING_DIM = 32
    HIDDEN_DIM = 32
    NUM_LAYERS = 2
    EVENT_OUT = 8
    CRIT_OUT = 4
    BATCH = 4
    SEQ = 8

    key = jax.random.PRNGKey(0)
    k_params, k_x = jax.random.split(key)
    params = init_params(k_params, EMBEDDING_DIM, HIDDEN_DIM, NUM_LAYERS,
                         EVENT_OUT, CRIT_OUT, BATCH)

    encoded_sentence = jax.random.normal(k_x, (BATCH, SEQ, EMBEDDING_DIM),
                                         jnp.float32)
    # pack_padded_sequence requires descending lengths; lengths[0] == SEQ.
    sentences_length = jnp.array([8, 6, 5, 3], dtype=jnp.int32)

    fwd = jax.jit(functools.partial(bilstm_multitask_forward,
                                    num_layers=NUM_LAYERS,
                                    hidden_dim=HIDDEN_DIM))
    log_e, log_c, emb = fwd(params, encoded_sentence, sentences_length)
    jax.block_until_ready((log_e, log_c, emb))

    assert log_e.shape == (BATCH, EVENT_OUT)
    assert log_c.shape == (BATCH, CRIT_OUT)
    assert emb.shape == (BATCH, 2 * HIDDEN_DIM)
    assert bool(jnp.all(jnp.isfinite(log_e))) and bool(jnp.all(jnp.isfinite(log_c)))
    # log_softmax sanity: each row sums to ~1 in prob space.
    assert bool(jnp.allclose(jnp.sum(jnp.exp(log_e), axis=1), 1.0, atol=1e-4))
    assert bool(jnp.allclose(jnp.sum(jnp.exp(log_c), axis=1), 1.0, atol=1e-4))
    print("KERNEL_OK")
</pallas_src>

<mosaic_0001>
module attributes {stable_mosaic.version = 11 : i64} {
  func.func @fused_bilstm_kernel(%arg0: memref<8x8x32xf32, #tpu.memory_space<vmem>>, %arg1: memref<8x8x32xf32, #tpu.memory_space<vmem>>, %arg2: memref<2x8x64xf32, #tpu.memory_space<vmem>>, %arg3: memref<2x8x64xf32, #tpu.memory_space<vmem>>, %arg4: memref<64x12xf32, #tpu.memory_space<vmem>>, %arg5: memref<1x12xf32, #tpu.memory_space<vmem>>, %arg6: memref<32x256xf32, #tpu.memory_space<vmem>>, %arg7: memref<1x64x256xf32, #tpu.memory_space<vmem>>, %arg8: memref<2x64x256xf32, #tpu.memory_space<vmem>>, %arg9: memref<2x1x256xf32, #tpu.memory_space<vmem>>, %arg10: memref<8x76xf32, #tpu.memory_space<vmem>>, %arg11: memref<8x8x256xf32, #tpu.memory_space<vmem>>, %arg12: memref<2x8x8x32xf32, #tpu.memory_space<vmem>>) attributes {dimension_semantics = [], scalar_prefetch = 0 : i64, scratch_operands = 2 : i64, tpu.core_type = #tpu.core_type<tc>} {
    %c0 = arith.constant 0 : index
    %c0_0 = arith.constant 0 : index
    %c0_1 = arith.constant 0 : index
    %0 = vector.load %arg1[%c0, %c0_0, %c0_1] : memref<8x8x32xf32, #tpu.memory_space<vmem>>, vector<1x8x32xf32>
    %1 = vector.shape_cast %0 : vector<1x8x32xf32> to vector<8x32xf32>
    %cst = arith.constant 0.000000e+00 : f32
    %2 = vector.broadcast %cst : f32 to vector<8x32xf32>
    %3 = arith.cmpf ogt, %1, %2 : vector<8x32xf32>
    %c1 = arith.constant 1 : index
    %c0_2 = arith.constant 0 : index
    %c0_3 = arith.constant 0 : index
    %4 = vector.load %arg1[%c1, %c0_2, %c0_3] : memref<8x8x32xf32, #tpu.memory_space<vmem>>, vector<1x8x32xf32>
    %5 = vector.shape_cast %4 : vector<1x8x32xf32> to vector<8x32xf32>
    %cst_4 = arith.constant 0.000000e+00 : f32
    %6 = vector.broadcast %cst_4 : f32 to vector<8x32xf32>
    %7 = arith.cmpf ogt, %5, %6 : vector<8x32xf32>
    %c2 = arith.constant 2 : index
    %c0_5 = arith.constant 0 : index
    %c0_6 = arith.constant 0 : index
    %8 = vector.load %arg1[%c2, %c0_5, %c0_6] : memref<8x8x32xf32, #tpu.memory_space<vmem>>, vector<1x8x32xf32>
    %9 = vector.shape_cast %8 : vector<1x8x32xf32> to vector<8x32xf32>
    %cst_7 = arith.constant 0.000000e+00 : f32
    %10 = vector.broadcast %cst_7 : f32 to vector<8x32xf32>
    %11 = arith.cmpf ogt, %9, %10 : vector<8x32xf32>
    %c3 = arith.constant 3 : index
    %c0_8 = arith.constant 0 : index
    %c0_9 = arith.constant 0 : index
    %12 = vector.load %arg1[%c3, %c0_8, %c0_9] : memref<8x8x32xf32, #tpu.memory_space<vmem>>, vector<1x8x32xf32>
    %13 = vector.shape_cast %12 : vector<1x8x32xf32> to vector<8x32xf32>
    %cst_10 = arith.constant 0.000000e+00 : f32
    %14 = vector.broadcast %cst_10 : f32 to vector<8x32xf32>
    %15 = arith.cmpf ogt, %13, %14 : vector<8x32xf32>
    %c4 = arith.constant 4 : index
    %c0_11 = arith.constant 0 : index
    %c0_12 = arith.constant 0 : index
    %16 = vector.load %arg1[%c4, %c0_11, %c0_12] : memref<8x8x32xf32, #tpu.memory_space<vmem>>, vector<1x8x32xf32>
    %17 = vector.shape_cast %16 : vector<1x8x32xf32> to vector<8x32xf32>
    %cst_13 = arith.constant 0.000000e+00 : f32
    %18 = vector.broadcast %cst_13 : f32 to vector<8x32xf32>
    %19 = arith.cmpf ogt, %17, %18 : vector<8x32xf32>
    %c5 = arith.constant 5 : index
    %c0_14 = arith.constant 0 : index
    %c0_15 = arith.constant 0 : index
    %20 = vector.load %arg1[%c5, %c0_14, %c0_15] : memref<8x8x32xf32, #tpu.memory_space<vmem>>, vector<1x8x32xf32>
    %21 = vector.shape_cast %20 : vector<1x8x32xf32> to vector<8x32xf32>
    %cst_16 = arith.constant 0.000000e+00 : f32
    %22 = vector.broadcast %cst_16 : f32 to vector<8x32xf32>
    %23 = arith.cmpf ogt, %21, %22 : vector<8x32xf32>
    %c6 = arith.constant 6 : index
    %c0_17 = arith.constant 0 : index
    %c0_18 = arith.constant 0 : index
    %24 = vector.load %arg1[%c6, %c0_17, %c0_18] : memref<8x8x32xf32, #tpu.memory_space<vmem>>, vector<1x8x32xf32>
    %25 = vector.shape_cast %24 : vector<1x8x32xf32> to vector<8x32xf32>
    %cst_19 = arith.constant 0.000000e+00 : f32
    %26 = vector.broadcast %cst_19 : f32 to vector<8x32xf32>
    %27 = arith.cmpf ogt, %25, %26 : vector<8x32xf32>
    %c7 = arith.constant 7 : index
    %c0_20 = arith.constant 0 : index
    %c0_21 = arith.constant 0 : index
    %28 = vector.load %arg1[%c7, %c0_20, %c0_21] : memref<8x8x32xf32, #tpu.memory_space<vmem>>, vector<1x8x32xf32>
    %29 = vector.shape_cast %28 : vector<1x8x32xf32> to vector<8x32xf32>
    %cst_22 = arith.constant 0.000000e+00 : f32
    %30 = vector.broadcast %cst_22 : f32 to vector<8x32xf32>
    %31 = arith.cmpf ogt, %29, %30 : vector<8x32xf32>
    %c0_23 = arith.constant 0 : index
    %c0_24 = arith.constant 0 : index
    %c0_25 = arith.constant 0 : index
    %32 = vector.load %arg0[%c0_23, %c0_24, %c0_25] : memref<8x8x32xf32, #tpu.memory_space<vmem>>, vector<8x8x32xf32>
    %33 = vector.shape_cast %32 : vector<8x8x32xf32> to vector<64x32xf32>
    %c0_26 = arith.constant 0 : index
    %c0_27 = arith.constant 0 : index
    %34 = vector.load %arg6[%c0_26, %c0_27] : memref<32x256xf32, #tpu.memory_space<vmem>>, vector<32x256xf32>
    %cst_28 = arith.constant dense<0.000000e+00> : vector<64x256xf32>
    %35 = tpu.matmul %33, %34, %cst_28 {dimension_numbers = #tpu.dot_dimension_numbers<[1], [0], [0], [1], [0, 0, 1, 1], [], []>} : vector<64x32xf32>, vector<32x256xf32>, vector<64x256xf32> -> vector<64x256xf32>
    %c0_29 = arith.constant 0 : index
    %c0_30 = arith.constant 0 : index
    %c0_31 = arith.constant 0 : index
    %36 = vector.load %arg9[%c0_29, %c0_30, %c0_31] : memref<2x1x256xf32, #tpu.memory_space<vmem>>, vector<1x1x256xf32>
    %37 = vector.shape_cast %36 : vector<1x1x256xf32> to vector<1x256xf32>
    %38 = vector.broadcast %37 : vector<1x256xf32> to vector<64x256xf32>
    %39 = arith.addf %35, %38 : vector<64x256xf32>
    %40 = vector.shape_cast %39 : vector<64x256xf32> to vector<8x8x256xf32>
    %c0_32 = arith.constant 0 : index
    %c0_33 = arith.constant 0 : index
    %c0_34 = arith.constant 0 : index
    %41 = vector.load %arg11[%c0_32, %c0_33, %c0_34] : memref<8x8x256xf32, #tpu.memory_space<vmem>>, vector<8x8x256xf32>
    tpu.vector_store %arg11[%c0_32, %c0_33, %c0_34], %40 {strides = array<i32>} : memref<8x8x256xf32, #tpu.memory_space<vmem>>, vector<8x8x256xf32>,
    %c0_35 = arith.constant 0 : index
    %c0_36 = arith.constant 0 : index
    %c0_37 = arith.constant 0 : index
    %42 = vector.load %arg8[%c0_35, %c0_36, %c0_37] : memref<2x64x256xf32, #tpu.memory_space<vmem>>, vector<1x64x256xf32>
    %43 = vector.shape_cast %42 : vector<1x64x256xf32> to vector<64x256xf32>
    %c0_38 = arith.constant 0 : index
    %c0_39 = arith.constant 0 : index
    %c0_40 = arith.constant 0 : index
    %44 = vector.load %arg2[%c0_38, %c0_39, %c0_40] : memref<2x8x64xf32, #tpu.memory_space<vmem>>, vector<1x8x64xf32>
    %45 = vector.shape_cast %44 : vector<1x8x64xf32> to vector<8x64xf32>
    %c0_41 = arith.constant 0 : index
    %c0_42 = arith.constant 0 : index
    %c0_43 = arith.constant 0 : index
    %46 = vector.load %arg3[%c0_41, %c0_42, %c0_43] : memref<2x8x64xf32, #tpu.memory_space<vmem>>, vector<1x8x64xf32>
    %47 = vector.shape_cast %46 : vector<1x8x64xf32> to vector<8x64xf32>
    %cst_44 = arith.constant dense<0.000000e+00> : vector<8x256xf32>
    %48 = tpu.matmul %45, %43, %cst_44 {dimension_numbers = #tpu.dot_dimension_numbers<[1], [0], [0], [1], [0, 0, 1, 1], [], []>} : vector<8x64xf32>, vector<64x256xf32>, vector<8x256xf32> -> vector<8x256xf32>
    %49 = vector.extract_strided_slice %48 {offsets = [0, 0], sizes = [8, 128], strides = [1, 1]} : vector<8x256xf32> to vector<8x128xf32>
    %c0_45 = arith.constant 0 : index
    %c0_46 = arith.constant 0 : index
    %c0_47 = arith.constant 0 : index
    %50 = vector.load %arg11[%c0_45, %c0_46, %c0_47] : memref<8x8x256xf32, #tpu.memory_space<vmem>>, vector<1x8x128xf32>
    %51 = vector.shape_cast %50 : vector<1x8x128xf32> to vector<8x128xf32>
    %52 = arith.addf %49, %51 : vector<8x128xf32>
    %53 = vector.extract_strided_slice %47 {offsets = [0, 0], sizes = [8, 32], strides = [1, 1]} : vector<8x64xf32> to vector<8x32xf32>
    %54 = vector.extract_strided_slice %52 {offsets = [0, 0], sizes = [8, 96], strides = [1, 1]} : vector<8x128xf32> to vector<8x96xf32>
    %cst_48 = arith.constant 5.000000e-01 : f32
    %55 = vector.broadcast %cst_48 : f32 to vector<8x96xf32>
    %56 = arith.mulf %55, %54 : vector<8x96xf32>
    %57 = math.tanh %56 : vector<8x96xf32>
    %cst_49 = arith.constant 5.000000e-01 : f32
    %58 = vector.broadcast %cst_49 : f32 to vector<8x96xf32>
    %59 = arith.mulf %58, %57 : vector<8x96xf32>
    %cst_50 = arith.constant 5.000000e-01 : f32
    %60 = vector.broadcast %cst_50 : f32 to vector<8x96xf32>
    %61 = arith.addf %59, %60 : vector<8x96xf32>
    %62 = vector.extract_strided_slice %61 {offsets = [0, 0], sizes = [8, 32], strides = [1, 1]} : vector<8x96xf32> to vector<8x32xf32>
    %63 = vector.extract_strided_slice %61 {offsets = [0, 32], sizes = [8, 32], strides = [1, 1]} : vector<8x96xf32> to vector<8x32xf32>
    %64 = vector.extract_strided_slice %61 {offsets = [0, 64], sizes = [8, 32], strides = [1, 1]} : vector<8x96xf32> to vector<8x32xf32>
    %65 = arith.mulf %63, %53 : vector<8x32xf32>
    %66 = vector.extract_strided_slice %52 {offsets = [0, 96], sizes = [8, 32], strides = [1, 1]} : vector<8x128xf32> to vector<8x32xf32>
    %67 = math.tanh %66 : vector<8x32xf32>
    %68 = arith.mulf %62, %67 : vector<8x32xf32>
    %69 = arith.addf %65, %68 : vector<8x32xf32>
    %70 = math.tanh %69 : vector<8x32xf32>
    %71 = arith.mulf %64, %70 : vector<8x32xf32>
    %72 = vector.extract_strided_slice %48 {offsets = [0, 128], sizes = [8, 128], strides = [1, 1]} : vector<8x256xf32> to vector<8x128xf32>
    %c7_51 = arith.constant 7 : index
    %c0_52 = arith.constant 0 : index
    %c128 = arith.constant 128 : index
    %73 = vector.load %arg11[%c7_51, %c0_52, %c128] : memref<8x8x256xf32, #tpu.memory_space<vmem>>, vector<1x8x128xf32>
    %74 = vector.shape_cast %73 : vector<1x8x128xf32> to vector<8x128xf32>
    %75 = arith.addf %72, %74 : vector<8x128xf32>
    %76 = vector.extract_strided_slice %47 {offsets = [0, 32], sizes = [8, 32], strides = [1, 1]} : vector<8x64xf32> to vector<8x32xf32>
    %77 = vector.extract_strided_slice %75 {offsets = [0, 0], sizes = [8, 96], strides = [1, 1]} : vector<8x128xf32> to vector<8x96xf32>
    %cst_53 = arith.constant 5.000000e-01 : f32
    %78 = vector.broadcast %cst_53 : f32 to vector<8x96xf32>
    %79 = arith.mulf %78, %77 : vector<8x96xf32>
    %80 = math.tanh %79 : vector<8x96xf32>
    %cst_54 = arith.constant 5.000000e-01 : f32
    %81 = vector.broadcast %cst_54 : f32 to vector<8x96xf32>
    %82 = arith.mulf %81, %80 : vector<8x96xf32>
    %cst_55 = arith.constant 5.000000e-01 : f32
    %83 = vector.broadcast %cst_55 : f32 to vector<8x96xf32>
    %84 = arith.addf %82, %83 : vector<8x96xf32>
    %85 = vector.extract_strided_slice %84 {offsets = [0, 0], sizes = [8, 32], strides = [1, 1]} : vector<8x96xf32> to vector<8x32xf32>
    %86 = vector.extract_strided_slice %84 {offsets = [0, 32], sizes = [8, 32], strides = [1, 1]} : vector<8x96xf32> to vector<8x32xf32>
    %87 = vector.extract_strided_slice %84 {offsets = [0, 64], sizes = [8, 32], strides = [1, 1]} : vector<8x96xf32> to vector<8x32xf32>
    %88 = arith.mulf %86, %76 : vector<8x32xf32>
    %89 = vector.extract_strided_slice %75 {offsets = [0, 96], sizes = [8, 32], strides = [1, 1]} : vector<8x128xf32> to vector<8x32xf32>
    %90 = math.tanh %89 : vector<8x32xf32>
    %91 = arith.mulf %85, %90 : vector<8x32xf32>
    %92 = arith.addf %88, %91 : vector<8x32xf32>
    %93 = math.tanh %92 : vector<8x32xf32>
    %94 = arith.mulf %87, %93 : vector<8x32xf32>
    %95 = vector.extract_strided_slice %45 {offsets = [0, 0], sizes = [8, 32], strides = [1, 1]} : vector<8x64xf32> to vector<8x32xf32>
    %96 = arith.select %3, %71, %95 : vector<8x32xi1>, vector<8x32xf32>
    %97 = vector.extract_strided_slice %47 {offsets = [0, 0], sizes = [8, 32], strides = [1, 1]} : vector<8x64xf32> to vector<8x32xf32>
    %98 = arith.select %3, %69, %97 : vector<8x32xi1>, vector<8x32xf32>
    %99 = vector.extract_strided_slice %45 {offsets = [0, 32], sizes = [8, 32], strides = [1, 1]} : vector<8x64xf32> to vector<8x32xf32>
    %100 = arith.select %31, %94, %99 : vector<8x32xi1>, vector<8x32xf32>
    %101 = vector.extract_strided_slice %47 {offsets = [0, 32], sizes = [8, 32], strides = [1, 1]} : vector<8x64xf32> to vector<8x32xf32>
    %102 = arith.select %31, %92, %101 : vector<8x32xi1>, vector<8x32xf32>
    %c0_56 = arith.constant 0 : index
    %c0_57 = arith.constant 0 : index
    %c0_58 = arith.constant 0 : index
    %c0_59 = arith.constant 0 : index
    %103 = vector.load %arg12[%c0_56, %c0_57, %c0_58, %c0_59] : memref<2x8x8x32xf32, #tpu.memory_space<vmem>>, vector<1x1x8x32xf32>
    %104 = vector.shape_cast %103 : vector<1x1x8x32xf32> to vector<8x32xf32>
    %105 = vector.shape_cast %96 : vector<8x32xf32> to vector<1x1x8x32xf32>
    tpu.vector_store %arg12[%c0_56, %c0_57, %c0_58, %c0_59], %105 {strides = array<i32>} : memref<2x8x8x32xf32, #tpu.memory_space<vmem>>, vector<1x1x8x32xf32>,
    %c1_60 = arith.constant 1 : index
    %c7_61 = arith.constant 7 : index
    %c0_62 = arith.constant 0 : index
    %c0_63 = arith.constant 0 : index
    %106 = vector.load %arg12[%c1_60, %c7_61, %c0_62, %c0_63] : memref<2x8x8x32xf32, #tpu.memory_space<vmem>>, vector<1x1x8x32xf32>
    %107 = vector.shape_cast %106 : vector<1x1x8x32xf32> to vector<8x32xf32>
    %108 = vector.shape_cast %100 : vector<8x32xf32> to vector<1x1x8x32xf32>
    tpu.vector_store %arg12[%c1_60, %c7_61, %c0_62, %c0_63], %108 {strides = array<i32>} : memref<2x8x8x32xf32, #tpu.memory_space<vmem>>, vector<1x1x8x32xf32>,
    %109 = tpu.concatenate %96, %100 in 1 : vector<8x32xf32>, vector<8x32xf32> -> vector<8x64xf32>
    %110 = tpu.concatenate %98, %102 in 1 : vector<8x32xf32>, vector<8x32xf32> -> vector<8x64xf32>
    %cst_64 = arith.constant dense<0.000000e+00> : vector<8x256xf32>
    %111 = tpu.matmul %109, %43, %cst_64 {dimension_numbers = #tpu.dot_dimension_numbers<[1], [0], [0], [1], [0, 0, 1, 1], [], []>} : vector<8x64xf32>, vector<64x256xf32>, vector<8x256xf32> -> vector<8x256xf32>
    %112 = vector.extract_strided_slice %111 {offsets = [0, 0], sizes = [8, 128], strides = [1, 1]} : vector<8x256xf32> to vector<8x128xf32>
    %c1_65 = arith.constant 1 : index
    %c0_66 = arith.constant 0 : index
    %c0_67 = arith.constant 0 : index
    %113 = vector.load %arg11[%c1_65, %c0_66, %c0_67] : memref<8x8x256xf32, #tpu.memory_space<vmem>>, vector<1x8x128xf32>
    %114 = vector.shape_cast %113 : vector<1x8x128xf32> to vector<8x128xf32>
    %115 = arith.addf %112, %114 : vector<8x128xf32>
    %116 = vector.extract_strided_slice %110 {offsets = [0, 0], sizes = [8, 32], strides = [1, 1]} : vector<8x64xf32> to vector<8x32xf32>
    %117 = vector.extract_strided_slice %115 {offsets = [0, 0], sizes = [8, 96], strides = [1, 1]} : vector<8x128xf32> to vector<8x96xf32>
    %cst_68 = arith.constant 5.000000e-01 : f32
    %118 = vector.broadcast %cst_68 : f32 to vector<8x96xf32>
    %119 = arith.mulf %118, %117 : vector<8x96xf32>
    %120 = math.tanh %119 : vector<8x96xf32>
    %cst_69 = arith.constant 5.000000e-01 : f32
    %121 = vector.broadcast %cst_69 : f32 to vector<8x96xf32>
    %122 = arith.mulf %121, %120 : vector<8x96xf32>
    %cst_70 = arith.constant 5.000000e-01 : f32
    %123 = vector.broadcast %cst_70 : f32 to vector<8x96xf32>
    %124 = arith.addf %122, %123 : vector<8x96xf32>
    %125 = vector.extract_strided_slice %124 {offsets = [0, 0], sizes = [8, 32], strides = [1, 1]} : vector<8x96xf32> to vector<8x32xf32>
    %126 = vector.extract_strided_slice %124 {offsets = [0, 32], sizes = [8, 32], strides = [1, 1]} : vector<8x96xf32> to vector<8x32xf32>
    %127 = vector.extract_strided_slice %124 {offsets = [0, 64], sizes = [8, 32], strides = [1, 1]} : vector<8x96xf32> to vector<8x32xf32>
    %128 = arith.mulf %126, %116 : vector<8x32xf32>
    %129 = vector.extract_strided_slice %115 {offsets = [0, 96], sizes = [8, 32], strides = [1, 1]} : vector<8x128xf32> to vector<8x32xf32>
    %130 = math.tanh %129 : vector<8x32xf32>
    %131 = arith.mulf %125, %130 : vector<8x32xf32>
    %132 = arith.addf %128, %131 : vector<8x32xf32>
    %133 = math.tanh %132 : vector<8x32xf32>
    %134 = arith.mulf %127, %133 : vector<8x32xf32>
    %135 = vector.extract_strided_slice %111 {offsets = [0, 128], sizes = [8, 128], strides = [1, 1]} : vector<8x256xf32> to vector<8x128xf32>
    %c6_71 = arith.constant 6 : index
    %c0_72 = arith.constant 0 : index
    %c128_73 = arith.constant 128 : index
    %136 = vector.load %arg11[%c6_71, %c0_72, %c128_73] : memref<8x8x256xf32, #tpu.memory_space<vmem>>, vector<1x8x128xf32>
    %137 = vector.shape_cast %136 : vector<1x8x128xf32> to vector<8x128xf32>
    %138 = arith.addf %135, %137 : vector<8x128xf32>
    %139 = vector.extract_strided_slice %110 {offsets = [0, 32], sizes = [8, 32], strides = [1, 1]} : vector<8x64xf32> to vector<8x32xf32>
    %140 = vector.extract_strided_slice %138 {offsets = [0, 0], sizes = [8, 96], strides = [1, 1]} : vector<8x128xf32> to vector<8x96xf32>
    %cst_74 = arith.constant 5.000000e-01 : f32
    %141 = vector.broadcast %cst_74 : f32 to vector<8x96xf32>
    %142 = arith.mulf %141, %140 : vector<8x96xf32>
    %143 = math.tanh %142 : vector<8x96xf32>
    %cst_75 = arith.constant 5.000000e-01 : f32
    %144 = vector.broadcast %cst_75 : f32 to vector<8x96xf32>
    %145 = arith.mulf %144, %143 : vector<8x96xf32>
    %cst_76 = arith.constant 5.000000e-01 : f32
    %146 = vector.broadcast %cst_76 : f32 to vector<8x96xf32>
    %147 = arith.addf %145, %146 : vector<8x96xf32>
    %148 = vector.extract_strided_slice %147 {offsets = [0, 0], sizes = [8, 32], strides = [1, 1]} : vector<8x96xf32> to vector<8x32xf32>
    %149 = vector.extract_strided_slice %147 {offsets = [0, 32], sizes = [8, 32], strides = [1, 1]} : vector<8x96xf32> to vector<8x32xf32>
    %150 = vector.extract_strided_slice %147 {offsets = [0, 64], sizes = [8, 32], strides = [1, 1]} : vector<8x96xf32> to vector<8x32xf32>
    %151 = arith.mulf %149, %139 : vector<8x32xf32>
    %152 = vector.extract_strided_slice %138 {offsets = [0, 96], sizes = [8, 32], strides = [1, 1]} : vector<8x128xf32> to vector<8x32xf32>
    %153 = math.tanh %152 : vector<8x32xf32>
    %154 = arith.mulf %148, %153 : vector<8x32xf32>
    %155 = arith.addf %151, %154 : vector<8x32xf32>
    %156 = math.tanh %155 : vector<8x32xf32>
    %157 = arith.mulf %150, %156 : vector<8x32xf32>
    %158 = vector.extract_strided_slice %109 {offsets = [0, 0], sizes = [8, 32], strides = [1, 1]} : vector<8x64xf32> to vector<8x32xf32>
    %159 = arith.select %7, %134, %158 : vector<8x32xi1>, vector<8x32xf32>
    %160 = vector.extract_strided_slice %110 {offsets = [0, 0], sizes = [8, 32], strides = [1, 1]} : vector<8x64xf32> to vector<8x32xf32>
    %161 = arith.select %7, %132, %160 : vector<8x32xi1>, vector<8x32xf32>
    %162 = vector.extract_strided_slice %109 {offsets = [0, 32], sizes = [8, 32], strides = [1, 1]} : vector<8x64xf32> to vector<8x32xf32>
    %163 = arith.select %27, %157, %162 : vector<8x32xi1>, vector<8x32xf32>
    %164 = vector.extract_strided_slice %110 {offsets = [0, 32], sizes = [8, 32], strides = [1, 1]} : vector<8x64xf32> to vector<8x32xf32>
    %165 = arith.select %27, %155, %164 : vector<8x32xi1>, vector<8x32xf32>
    %c0_77 = arith.constant 0 : index
    %c1_78 = arith.constant 1 : index
    %c0_79 = arith.constant 0 : index
    %c0_80 = arith.constant 0 : index
    %166 = vector.load %arg12[%c0_77, %c1_78, %c0_79, %c0_80] : memref<2x8x8x32xf32, #tpu.memory_space<vmem>>, vector<1x1x8x32xf32>
    %167 = vector.shape_cast %166 : vector<1x1x8x32xf32> to vector<8x32xf32>
    %168 = vector.shape_cast %159 : vector<8x32xf32> to vector<1x1x8x32xf32>
    tpu.vector_store %arg12[%c0_77, %c1_78, %c0_79, %c0_80], %168 {strides = array<i32>} : memref<2x8x8x32xf32, #tpu.memory_space<vmem>>, vector<1x1x8x32xf32>,
    %c1_81 = arith.constant 1 : index
    %c6_82 = arith.constant 6 : index
    %c0_83 = arith.constant 0 : index
    %c0_84 = arith.constant 0 : index
    %169 = vector.load %arg12[%c1_81, %c6_82, %c0_83, %c0_84] : memref<2x8x8x32xf32, #tpu.memory_space<vmem>>, vector<1x1x8x32xf32>
    %170 = vector.shape_cast %169 : vector<1x1x8x32xf32> to vector<8x32xf32>
    %171 = vector.shape_cast %163 : vector<8x32xf32> to vector<1x1x8x32xf32>
    tpu.vector_store %arg12[%c1_81, %c6_82, %c0_83, %c0_84], %171 {strides = array<i32>} : memref<2x8x8x32xf32, #tpu.memory_space<vmem>>, vector<1x1x8x32xf32>,
    %172 = tpu.concatenate %159, %163 in 1 : vector<8x32xf32>, vector<8x32xf32> -> vector<8x64xf32>
    %173 = tpu.concatenate %161, %165 in 1 : vector<8x32xf32>, vector<8x32xf32> -> vector<8x64xf32>
    %cst_85 = arith.constant dense<0.000000e+00> : vector<8x256xf32>
    %174 = tpu.matmul %172, %43, %cst_85 {dimension_numbers = #tpu.dot_dimension_numbers<[1], [0], [0], [1], [0, 0, 1, 1], [], []>} : vector<8x64xf32>, vector<64x256xf32>, vector<8x256xf32> -> vector<8x256xf32>
    %175 = vector.extract_strided_slice %174 {offsets = [0, 0], sizes = [8, 128], strides = [1, 1]} : vector<8x256xf32> to vector<8x128xf32>
    %c2_86 = arith.constant 2 : index
    %c0_87 = arith.constant 0 : index
    %c0_88 = arith.constant 0 : index
    %176 = vector.load %arg11[%c2_86, %c0_87, %c0_88] : memref<8x8x256xf32, #tpu.memory_space<vmem>>, vector<1x8x128xf32>
    %177 = vector.shape_cast %176 : vector<1x8x128xf32> to vector<8x128xf32>
    %178 = arith.addf %175, %177 : vector<8x128xf32>
    %179 = vector.extract_strided_slice %173 {offsets = [0, 0], sizes = [8, 32], strides = [1, 1]} : vector<8x64xf32> to vector<8x32xf32>
    %180 = vector.extract_strided_slice %178 {offsets = [0, 0], sizes = [8, 96], strides = [1, 1]} : vector<8x128xf32> to vector<8x96xf32>
    %cst_89 = arith.constant 5.000000e-01 : f32
    %181 = vector.broadcast %cst_89 : f32 to vector<8x96xf32>
    %182 = arith.mulf %181, %180 : vector<8x96xf32>
    %183 = math.tanh %182 : vector<8x96xf32>
    %cst_90 = arith.constant 5.000000e-01 : f32
    %184 = vector.broadcast %cst_90 : f32 to vector<8x96xf32>
    %185 = arith.mulf %184, %183 : vector<8x96xf32>
    %cst_91 = arith.constant 5.000000e-01 : f32
    %186 = vector.broadcast %cst_91 : f32 to vector<8x96xf32>
    %187 = arith.addf %185, %186 : vector<8x96xf32>
    %188 = vector.extract_strided_slice %187 {offsets = [0, 0], sizes = [8, 32], strides = [1, 1]} : vector<8x96xf32> to vector<8x32xf32>
    %189 = vector.extract_strided_slice %187 {offsets = [0, 32], sizes = [8, 32], strides = [1, 1]} : vector<8x96xf32> to vector<8x32xf32>
    %190 = vector.extract_strided_slice %187 {offsets = [0, 64], sizes = [8, 32], strides = [1, 1]} : vector<8x96xf32> to vector<8x32xf32>
    %191 = arith.mulf %189, %179 : vector<8x32xf32>
    %192 = vector.extract_strided_slice %178 {offsets = [0, 96], sizes = [8, 32], strides = [1, 1]} : vector<8x128xf32> to vector<8x32xf32>
    %193 = math.tanh %192 : vector<8x32xf32>
    %194 = arith.mulf %188, %193 : vector<8x32xf32>
    %195 = arith.addf %191, %194 : vector<8x32xf32>
    %196 = math.tanh %195 : vector<8x32xf32>
    %197 = arith.mulf %190, %196 : vector<8x32xf32>
    %198 = vector.extract_strided_slice %174 {offsets = [0, 128], sizes = [8, 128], strides = [1, 1]} : vector<8x256xf32> to vector<8x128xf32>
    %c5_92 = arith.constant 5 : index
    %c0_93 = arith.constant 0 : index
    %c128_94 = arith.constant 128 : index
    %199 = vector.load %arg11[%c5_92, %c0_93, %c128_94] : memref<8x8x256xf32, #tpu.memory_space<vmem>>, vector<1x8x128xf32>
    %200 = vector.shape_cast %199 : vector<1x8x128xf32> to vector<8x128xf32>
    %201 = arith.addf %198, %200 : vector<8x128xf32>
    %202 = vector.extract_strided_slice %173 {offsets = [0, 32], sizes = [8, 32], strides = [1, 1]} : vector<8x64xf32> to vector<8x32xf32>
    %203 = vector.extract_strided_slice %201 {offsets = [0, 0], sizes = [8, 96], strides = [1, 1]} : vector<8x128xf32> to vector<8x96xf32>
    %cst_95 = arith.constant 5.000000e-01 : f32
    %204 = vector.broadcast %cst_95 : f32 to vector<8x96xf32>
    %205 = arith.mulf %204, %203 : vector<8x96xf32>
    %206 = math.tanh %205 : vector<8x96xf32>
    %cst_96 = arith.constant 5.000000e-01 : f32
    %207 = vector.broadcast %cst_96 : f32 to vector<8x96xf32>
    %208 = arith.mulf %207, %206 : vector<8x96xf32>
    %cst_97 = arith.constant 5.000000e-01 : f32
    %209 = vector.broadcast %cst_97 : f32 to vector<8x96xf32>
    %210 = arith.addf %208, %209 : vector<8x96xf32>
    %211 = vector.extract_strided_slice %210 {offsets = [0, 0], sizes = [8, 32], strides = [1, 1]} : vector<8x96xf32> to vector<8x32xf32>
    %212 = vector.extract_strided_slice %210 {offsets = [0, 32], sizes = [8, 32], strides = [1, 1]} : vector<8x96xf32> to vector<8x32xf32>
    %213 = vector.extract_strided_slice %210 {offsets = [0, 64], sizes = [8, 32], strides = [1, 1]} : vector<8x96xf32> to vector<8x32xf32>
    %214 = arith.mulf %212, %202 : vector<8x32xf32>
    %215 = vector.extract_strided_slice %201 {offsets = [0, 96], sizes = [8, 32], strides = [1, 1]} : vector<8x128xf32> to vector<8x32xf32>
    %216 = math.tanh %215 : vector<8x32xf32>
    %217 = arith.mulf %211, %216 : vector<8x32xf32>
    %218 = arith.addf %214, %217 : vector<8x32xf32>
    %219 = math.tanh %218 : vector<8x32xf32>
    %220 = arith.mulf %213, %219 : vector<8x32xf32>
    %221 = vector.extract_strided_slice %172 {offsets = [0, 0], sizes = [8, 32], strides = [1, 1]} : vector<8x64xf32> to vector<8x32xf32>
    %222 = arith.select %11, %197, %221 : vector<8x32xi1>, vector<8x32xf32>
    %223 = vector.extract_strided_slice %173 {offsets = [0, 0], sizes = [8, 32], strides = [1, 1]} : vector<8x64xf32> to vector<8x32xf32>
    %224 = arith.select %11, %195, %223 : vector<8x32xi1>, vector<8x32xf32>
    %225 = vector.extract_strided_slice %172 {offsets = [0, 32], sizes = [8, 32], strides = [1, 1]} : vector<8x64xf32> to vector<8x32xf32>
    %226 = arith.select %23, %220, %225 : vector<8x32xi1>, vector<8x32xf32>
    %227 = vector.extract_strided_slice %173 {offsets = [0, 32], sizes = [8, 32], strides = [1, 1]} : vector<8x64xf32> to vector<8x32xf32>
    %228 = arith.select %23, %218, %227 : vector<8x32xi1>, vector<8x32xf32>
    %c0_98 = arith.constant 0 : index
    %c2_99 = arith.constant 2 : index
    %c0_100 = arith.constant 0 : index
    %c0_101 = arith.constant 0 : index
    %229 = vector.load %arg12[%c0_98, %c2_99, %c0_100, %c0_101] : memref<2x8x8x32xf32, #tpu.memory_space<vmem>>, vector<1x1x8x32xf32>
    %230 = vector.shape_cast %229 : vector<1x1x8x32xf32> to vector<8x32xf32>
    %231 = vector.shape_cast %222 : vector<8x32xf32> to vector<1x1x8x32xf32>
    tpu.vector_store %arg12[%c0_98, %c2_99, %c0_100, %c0_101], %231 {strides = array<i32>} : memref<2x8x8x32xf32, #tpu.memory_space<vmem>>, vector<1x1x8x32xf32>,
    %c1_102 = arith.constant 1 : index
    %c5_103 = arith.constant 5 : index
    %c0_104 = arith.constant 0 : index
    %c0_105 = arith.constant 0 : index
    %232 = vector.load %arg12[%c1_102, %c5_103, %c0_104, %c0_105] : memref<2x8x8x32xf32, #tpu.memory_space<vmem>>, vector<1x1x8x32xf32>
    %233 = vector.shape_cast %232 : vector<1x1x8x32xf32> to vector<8x32xf32>
    %234 = vector.shape_cast %226 : vector<8x32xf32> to vector<1x1x8x32xf32>
    tpu.vector_store %arg12[%c1_102, %c5_103, %c0_104, %c0_105], %234 {strides = array<i32>} : memref<2x8x8x32xf32, #tpu.memory_space<vmem>>, vector<1x1x8x32xf32>,
    %235 = tpu.concatenate %222, %226 in 1 : vector<8x32xf32>, vector<8x32xf32> -> vector<8x64xf32>
    %236 = tpu.concatenate %224, %228 in 1 : vector<8x32xf32>, vector<8x32xf32> -> vector<8x64xf32>
    %cst_106 = arith.constant dense<0.000000e+00> : vector<8x256xf32>
    %237 = tpu.matmul %235, %43, %cst_106 {dimension_numbers = #tpu.dot_dimension_numbers<[1], [0], [0], [1], [0, 0, 1, 1], [], []>} : vector<8x64xf32>, vector<64x256xf32>, vector<8x256xf32> -> vector<8x256xf32>
    %238 = vector.extract_strided_slice %237 {offsets = [0, 0], sizes = [8, 128], strides = [1, 1]} : vector<8x256xf32> to vector<8x128xf32>
    %c3_107 = arith.constant 3 : index
    %c0_108 = arith.constant 0 : index
    %c0_109 = arith.constant 0 : index
    %239 = vector.load %arg11[%c3_107, %c0_108, %c0_109] : memref<8x8x256xf32, #tpu.memory_space<vmem>>, vector<1x8x128xf32>
    %240 = vector.shape_cast %239 : vector<1x8x128xf32> to vector<8x128xf32>
    %241 = arith.addf %238, %240 : vector<8x128xf32>
    %242 = vector.extract_strided_slice %236 {offsets = [0, 0], sizes = [8, 32], strides = [1, 1]} : vector<8x64xf32> to vector<8x32xf32>
    %243 = vector.extract_strided_slice %241 {offsets = [0, 0], sizes = [8, 96], strides = [1, 1]} : vector<8x128xf32> to vector<8x96xf32>
    %cst_110 = arith.constant 5.000000e-01 : f32
    %244 = vector.broadcast %cst_110 : f32 to vector<8x96xf32>
    %245 = arith.mulf %244, %243 : vector<8x96xf32>
    %246 = math.tanh %245 : vector<8x96xf32>
    %cst_111 = arith.constant 5.000000e-01 : f32
    %247 = vector.broadcast %cst_111 : f32 to vector<8x96xf32>
    %248 = arith.mulf %247, %246 : vector<8x96xf32>
    %cst_112 = arith.constant 5.000000e-01 : f32
    %249 = vector.broadcast %cst_112 : f32 to vector<8x96xf32>
    %250 = arith.addf %248, %249 : vector<8x96xf32>
    %251 = vector.extract_strided_slice %250 {offsets = [0, 0], sizes = [8, 32], strides = [1, 1]} : vector<8x96xf32> to vector<8x32xf32>
    %252 = vector.extract_strided_slice %250 {offsets = [0, 32], sizes = [8, 32], strides = [1, 1]} : vector<8x96xf32> to vector<8x32xf32>
    %253 = vector.extract_strided_slice %250 {offsets = [0, 64], sizes = [8, 32], strides = [1, 1]} : vector<8x96xf32> to vector<8x32xf32>
    %254 = arith.mulf %252, %242 : vector<8x32xf32>
    %255 = vector.extract_strided_slice %241 {offsets = [0, 96], sizes = [8, 32], strides = [1, 1]} : vector<8x128xf32> to vector<8x32xf32>
    %256 = math.tanh %255 : vector<8x32xf32>
    %257 = arith.mulf %251, %256 : vector<8x32xf32>
    %258 = arith.addf %254, %257 : vector<8x32xf32>
    %259 = math.tanh %258 : vector<8x32xf32>
    %260 = arith.mulf %253, %259 : vector<8x32xf32>
    %261 = vector.extract_strided_slice %237 {offsets = [0, 128], sizes = [8, 128], strides = [1, 1]} : vector<8x256xf32> to vector<8x128xf32>
    %c4_113 = arith.constant 4 : index
    %c0_114 = arith.constant 0 : index
    %c128_115 = arith.constant 128 : index
    %262 = vector.load %arg11[%c4_113, %c0_114, %c128_115] : memref<8x8x256xf32, #tpu.memory_space<vmem>>, vector<1x8x128xf32>
    %263 = vector.shape_cast %262 : vector<1x8x128xf32> to vector<8x128xf32>
    %264 = arith.addf %261, %263 : vector<8x128xf32>
    %265 = vector.extract_strided_slice %236 {offsets = [0, 32], sizes = [8, 32], strides = [1, 1]} : vector<8x64xf32> to vector<8x32xf32>
    %266 = vector.extract_strided_slice %264 {offsets = [0, 0], sizes = [8, 96], strides = [1, 1]} : vector<8x128xf32> to vector<8x96xf32>
    %cst_116 = arith.constant 5.000000e-01 : f32
    %267 = vector.broadcast %cst_116 : f32 to vector<8x96xf32>
    %268 = arith.mulf %267, %266 : vector<8x96xf32>
    %269 = math.tanh %268 : vector<8x96xf32>
    %cst_117 = arith.constant 5.000000e-01 : f32
    %270 = vector.broadcast %cst_117 : f32 to vector<8x96xf32>
    %271 = arith.mulf %270, %269 : vector<8x96xf32>
    %cst_118 = arith.constant 5.000000e-01 : f32
    %272 = vector.broadcast %cst_118 : f32 to vector<8x96xf32>
    %273 = arith.addf %271, %272 : vector<8x96xf32>
    %274 = vector.extract_strided_slice %273 {offsets = [0, 0], sizes = [8, 32], strides = [1, 1]} : vector<8x96xf32> to vector<8x32xf32>
    %275 = vector.extract_strided_slice %273 {offsets = [0, 32], sizes = [8, 32], strides = [1, 1]} : vector<8x96xf32> to vector<8x32xf32>
    %276 = vector.extract_strided_slice %273 {offsets = [0, 64], sizes = [8, 32], strides = [1, 1]} : vector<8x96xf32> to vector<8x32xf32>
    %277 = arith.mulf %275, %265 : vector<8x32xf32>
    %278 = vector.extract_strided_slice %264 {offsets = [0, 96], sizes = [8, 32], strides = [1, 1]} : vector<8x128xf32> to vector<8x32xf32>
    %279 = math.tanh %278 : vector<8x32xf32>
    %280 = arith.mulf %274, %279 : vector<8x32xf32>
    %281 = arith.addf %277, %280 : vector<8x32xf32>
    %282 = math.tanh %281 : vector<8x32xf32>
    %283 = arith.mulf %276, %282 : vector<8x32xf32>
    %284 = vector.extract_strided_slice %235 {offsets = [0, 0], sizes = [8, 32], strides = [1, 1]} : vector<8x64xf32> to vector<8x32xf32>
    %285 = arith.select %15, %260, %284 : vector<8x32xi1>, vector<8x32xf32>
    %286 = vector.extract_strided_slice %236 {offsets = [0, 0], sizes = [8, 32], strides = [1, 1]} : vector<8x64xf32> to vector<8x32xf32>
    %287 = arith.select %15, %258, %286 : vector<8x32xi1>, vector<8x32xf32>
    %288 = vector.extract_strided_slice %235 {offsets = [0, 32], sizes = [8, 32], strides = [1, 1]} : vector<8x64xf32> to vector<8x32xf32>
    %289 = arith.select %19, %283, %288 : vector<8x32xi1>, vector<8x32xf32>
    %290 = vector.extract_strided_slice %236 {offsets = [0, 32], sizes = [8, 32], strides = [1, 1]} : vector<8x64xf32> to vector<8x32xf32>
    %291 = arith.select %19, %281, %290 : vector<8x32xi1>, vector<8x32xf32>
    %c0_119 = arith.constant 0 : index
    %c3_120 = arith.constant 3 : index
    %c0_121 = arith.constant 0 : index
    %c0_122 = arith.constant 0 : index
    %292 = vector.load %arg12[%c0_119, %c3_120, %c0_121, %c0_122] : memref<2x8x8x32xf32, #tpu.memory_space<vmem>>, vector<1x1x8x32xf32>
    %293 = vector.shape_cast %292 : vector<1x1x8x32xf32> to vector<8x32xf32>
    %294 = vector.shape_cast %285 : vector<8x32xf32> to vector<1x1x8x32xf32>
    tpu.vector_store %arg12[%c0_119, %c3_120, %c0_121, %c0_122], %294 {strides = array<i32>} : memref<2x8x8x32xf32, #tpu.memory_space<vmem>>, vector<1x1x8x32xf32>,
    %c1_123 = arith.constant 1 : index
    %c4_124 = arith.constant 4 : index
    %c0_125 = arith.constant 0 : index
    %c0_126 = arith.constant 0 : index
    %295 = vector.load %arg12[%c1_123, %c4_124, %c0_125, %c0_126] : memref<2x8x8x32xf32, #tpu.memory_space<vmem>>, vector<1x1x8x32xf32>
    %296 = vector.shape_cast %295 : vector<1x1x8x32xf32> to vector<8x32xf32>
    %297 = vector.shape_cast %289 : vector<8x32xf32> to vector<1x1x8x32xf32>
    tpu.vector_store %arg12[%c1_123, %c4_124, %c0_125, %c0_126], %297 {strides = array<i32>} : memref<2x8x8x32xf32, #tpu.memory_space<vmem>>, vector<1x1x8x32xf32>,
    %298 = tpu.concatenate %285, %289 in 1 : vector<8x32xf32>, vector<8x32xf32> -> vector<8x64xf32>
    %299 = tpu.concatenate %287, %291 in 1 : vector<8x32xf32>, vector<8x32xf32> -> vector<8x64xf32>
    %cst_127 = arith.constant dense<0.000000e+00> : vector<8x256xf32>
    %300 = tpu.matmul %298, %43, %cst_127 {dimension_numbers = #tpu.dot_dimension_numbers<[1], [0], [0], [1], [0, 0, 1, 1], [], []>} : vector<8x64xf32>, vector<64x256xf32>, vector<8x256xf32> -> vector<8x256xf32>
    %301 = vector.extract_strided_slice %300 {offsets = [0, 0], sizes = [8, 128], strides = [1, 1]} : vector<8x256xf32> to vector<8x128xf32>
    %c4_128 = arith.constant 4 : index
    %c0_129 = arith.constant 0 : index
    %c0_130 = arith.constant 0 : index
    %302 = vector.load %arg11[%c4_128, %c0_129, %c0_130] : memref<8x8x256xf32, #tpu.memory_space<vmem>>, vector<1x8x128xf32>
    %303 = vector.shape_cast %302 : vector<1x8x128xf32> to vector<8x128xf32>
    %304 = arith.addf %301, %303 : vector<8x128xf32>
    %305 = vector.extract_strided_slice %299 {offsets = [0, 0], sizes = [8, 32], strides = [1, 1]} : vector<8x64xf32> to vector<8x32xf32>
    %306 = vector.extract_strided_slice %304 {offsets = [0, 0], sizes = [8, 96], strides = [1, 1]} : vector<8x128xf32> to vector<8x96xf32>
    %cst_131 = arith.constant 5.000000e-01 : f32
    %307 = vector.broadcast %cst_131 : f32 to vector<8x96xf32>
    %308 = arith.mulf %307, %306 : vector<8x96xf32>
    %309 = math.tanh %308 : vector<8x96xf32>
    %cst_132 = arith.constant 5.000000e-01 : f32
    %310 = vector.broadcast %cst_132 : f32 to vector<8x96xf32>
    %311 = arith.mulf %310, %309 : vector<8x96xf32>
    %cst_133 = arith.constant 5.000000e-01 : f32
    %312 = vector.broadcast %cst_133 : f32 to vector<8x96xf32>
    %313 = arith.addf %311, %312 : vector<8x96xf32>
    %314 = vector.extract_strided_slice %313 {offsets = [0, 0], sizes = [8, 32], strides = [1, 1]} : vector<8x96xf32> to vector<8x32xf32>
    %315 = vector.extract_strided_slice %313 {offsets = [0, 32], sizes = [8, 32], strides = [1, 1]} : vector<8x96xf32> to vector<8x32xf32>
    %316 = vector.extract_strided_slice %313 {offsets = [0, 64], sizes = [8, 32], strides = [1, 1]} : vector<8x96xf32> to vector<8x32xf32>
    %317 = arith.mulf %315, %305 : vector<8x32xf32>
    %318 = vector.extract_strided_slice %304 {offsets = [0, 96], sizes = [8, 32], strides = [1, 1]} : vector<8x128xf32> to vector<8x32xf32>
    %319 = math.tanh %318 : vector<8x32xf32>
    %320 = arith.mulf %314, %319 : vector<8x32xf32>
    %321 = arith.addf %317, %320 : vector<8x32xf32>
    %322 = math.tanh %321 : vector<8x32xf32>
    %323 = arith.mulf %316, %322 : vector<8x32xf32>
    %324 = vector.extract_strided_slice %300 {offsets = [0, 128], sizes = [8, 128], strides = [1, 1]} : vector<8x256xf32> to vector<8x128xf32>
    %c3_134 = arith.constant 3 : index
    %c0_135 = arith.constant 0 : index
    %c128_136 = arith.constant 128 : index
    %325 = vector.load %arg11[%c3_134, %c0_135, %c128_136] : memref<8x8x256xf32, #tpu.memory_space<vmem>>, vector<1x8x128xf32>
    %326 = vector.shape_cast %325 : vector<1x8x128xf32> to vector<8x128xf32>
    %327 = arith.addf %324, %326 : vector<8x128xf32>
    %328 = vector.extract_strided_slice %299 {offsets = [0, 32], sizes = [8, 32], strides = [1, 1]} : vector<8x64xf32> to vector<8x32xf32>
    %329 = vector.extract_strided_slice %327 {offsets = [0, 0], sizes = [8, 96], strides = [1, 1]} : vector<8x128xf32> to vector<8x96xf32>
    %cst_137 = arith.constant 5.000000e-01 : f32
    %330 = vector.broadcast %cst_137 : f32 to vector<8x96xf32>
    %331 = arith.mulf %330, %329 : vector<8x96xf32>
    %332 = math.tanh %331 : vector<8x96xf32>
    %cst_138 = arith.constant 5.000000e-01 : f32
    %333 = vector.broadcast %cst_138 : f32 to vector<8x96xf32>
    %334 = arith.mulf %333, %332 : vector<8x96xf32>
    %cst_139 = arith.constant 5.000000e-01 : f32
    %335 = vector.broadcast %cst_139 : f32 to vector<8x96xf32>
    %336 = arith.addf %334, %335 : vector<8x96xf32>
    %337 = vector.extract_strided_slice %336 {offsets = [0, 0], sizes = [8, 32], strides = [1, 1]} : vector<8x96xf32> to vector<8x32xf32>
    %338 = vector.extract_strided_slice %336 {offsets = [0, 32], sizes = [8, 32], strides = [1, 1]} : vector<8x96xf32> to vector<8x32xf32>
    %339 = vector.extract_strided_slice %336 {offsets = [0, 64], sizes = [8, 32], strides = [1, 1]} : vector<8x96xf32> to vector<8x32xf32>
    %340 = arith.mulf %338, %328 : vector<8x32xf32>
    %341 = vector.extract_strided_slice %327 {offsets = [0, 96], sizes = [8, 32], strides = [1, 1]} : vector<8x128xf32> to vector<8x32xf32>
    %342 = math.tanh %341 : vector<8x32xf32>
    %343 = arith.mulf %337, %342 : vector<8x32xf32>
    %344 = arith.addf %340, %343 : vector<8x32xf32>
    %345 = math.tanh %344 : vector<8x32xf32>
    %346 = arith.mulf %339, %345 : vector<8x32xf32>
    %347 = vector.extract_strided_slice %298 {offsets = [0, 0], sizes = [8, 32], strides = [1, 1]} : vector<8x64xf32> to vector<8x32xf32>
    %348 = arith.select %19, %323, %347 : vector<8x32xi1>, vector<8x32xf32>
    %349 = vector.extract_strided_slice %299 {offsets = [0, 0], sizes = [8, 32], strides = [1, 1]} : vector<8x64xf32> to vector<8x32xf32>
    %350 = arith.select %19, %321, %349 : vector<8x32xi1>, vector<8x32xf32>
    %351 = vector.extract_strided_slice %298 {offsets = [0, 32], sizes = [8, 32], strides = [1, 1]} : vector<8x64xf32> to vector<8x32xf32>
    %352 = arith.select %15, %346, %351 : vector<8x32xi1>, vector<8x32xf32>
    %353 = vector.extract_strided_slice %299 {offsets = [0, 32], sizes = [8, 32], strides = [1, 1]} : vector<8x64xf32> to vector<8x32xf32>
    %354 = arith.select %15, %344, %353 : vector<8x32xi1>, vector<8x32xf32>
    %c0_140 = arith.constant 0 : index
    %c4_141 = arith.constant 4 : index
    %c0_142 = arith.constant 0 : index
    %c0_143 = arith.constant 0 : index
    %355 = vector.load %arg12[%c0_140, %c4_141, %c0_142, %c0_143] : memref<2x8x8x32xf32, #tpu.memory_space<vmem>>, vector<1x1x8x32xf32>
    %356 = vector.shape_cast %355 : vector<1x1x8x32xf32> to vector<8x32xf32>
    %357 = vector.shape_cast %348 : vector<8x32xf32> to vector<1x1x8x32xf32>
    tpu.vector_store %arg12[%c0_140, %c4_141, %c0_142, %c0_143], %357 {strides = array<i32>} : memref<2x8x8x32xf32, #tpu.memory_space<vmem>>, vector<1x1x8x32xf32>,
    %c1_144 = arith.constant 1 : index
    %c3_145 = arith.constant 3 : index
    %c0_146 = arith.constant 0 : index
    %c0_147 = arith.constant 0 : index
    %358 = vector.load %arg12[%c1_144, %c3_145, %c0_146, %c0_147] : memref<2x8x8x32xf32, #tpu.memory_space<vmem>>, vector<1x1x8x32xf32>
    %359 = vector.shape_cast %358 : vector<1x1x8x32xf32> to vector<8x32xf32>
    %360 = vector.shape_cast %352 : vector<8x32xf32> to vector<1x1x8x32xf32>
    tpu.vector_store %arg12[%c1_144, %c3_145, %c0_146, %c0_147], %360 {strides = array<i32>} : memref<2x8x8x32xf32, #tpu.memory_space<vmem>>, vector<1x1x8x32xf32>,
    %361 = tpu.concatenate %348, %352 in 1 : vector<8x32xf32>, vector<8x32xf32> -> vector<8x64xf32>
    %362 = tpu.concatenate %350, %354 in 1 : vector<8x32xf32>, vector<8x32xf32> -> vector<8x64xf32>
    %cst_148 = arith.constant dense<0.000000e+00> : vector<8x256xf32>
    %363 = tpu.matmul %361, %43, %cst_148 {dimension_numbers = #tpu.dot_dimension_numbers<[1], [0], [0], [1], [0, 0, 1, 1], [], []>} : vector<8x64xf32>, vector<64x256xf32>, vector<8x256xf32> -> vector<8x256xf32>
    %364 = vector.extract_strided_slice %363 {offsets = [0, 0], sizes = [8, 128], strides = [1, 1]} : vector<8x256xf32> to vector<8x128xf32>
    %c5_149 = arith.constant 5 : index
    %c0_150 = arith.constant 0 : index
    %c0_151 = arith.constant 0 : index
    %365 = vector.load %arg11[%c5_149, %c0_150, %c0_151] : memref<8x8x256xf32, #tpu.memory_space<vmem>>, vector<1x8x128xf32>
    %366 = vector.shape_cast %365 : vector<1x8x128xf32> to vector<8x128xf32>
    %367 = arith.addf %364, %366 : vector<8x128xf32>
    %368 = vector.extract_strided_slice %362 {offsets = [0, 0], sizes = [8, 32], strides = [1, 1]} : vector<8x64xf32> to vector<8x32xf32>
    %369 = vector.extract_strided_slice %367 {offsets = [0, 0], sizes = [8, 96], strides = [1, 1]} : vector<8x128xf32> to vector<8x96xf32>
    %cst_152 = arith.constant 5.000000e-01 : f32
    %370 = vector.broadcast %cst_152 : f32 to vector<8x96xf32>
    %371 = arith.mulf %370, %369 : vector<8x96xf32>
    %372 = math.tanh %371 : vector<8x96xf32>
    %cst_153 = arith.constant 5.000000e-01 : f32
    %373 = vector.broadcast %cst_153 : f32 to vector<8x96xf32>
    %374 = arith.mulf %373, %372 : vector<8x96xf32>
    %cst_154 = arith.constant 5.000000e-01 : f32
    %375 = vector.broadcast %cst_154 : f32 to vector<8x96xf32>
    %376 = arith.addf %374, %375 : vector<8x96xf32>
    %377 = vector.extract_strided_slice %376 {offsets = [0, 0], sizes = [8, 32], strides = [1, 1]} : vector<8x96xf32> to vector<8x32xf32>
    %378 = vector.extract_strided_slice %376 {offsets = [0, 32], sizes = [8, 32], strides = [1, 1]} : vector<8x96xf32> to vector<8x32xf32>
    %379 = vector.extract_strided_slice %376 {offsets = [0, 64], sizes = [8, 32], strides = [1, 1]} : vector<8x96xf32> to vector<8x32xf32>
    %380 = arith.mulf %378, %368 : vector<8x32xf32>
    %381 = vector.extract_strided_slice %367 {offsets = [0, 96], sizes = [8, 32], strides = [1, 1]} : vector<8x128xf32> to vector<8x32xf32>
    %382 = math.tanh %381 : vector<8x32xf32>
    %383 = arith.mulf %377, %382 : vector<8x32xf32>
    %384 = arith.addf %380, %383 : vector<8x32xf32>
    %385 = math.tanh %384 : vector<8x32xf32>
    %386 = arith.mulf %379, %385 : vector<8x32xf32>
    %387 = vector.extract_strided_slice %363 {offsets = [0, 128], sizes = [8, 128], strides = [1, 1]} : vector<8x256xf32> to vector<8x128xf32>
    %c2_155 = arith.constant 2 : index
    %c0_156 = arith.constant 0 : index
    %c128_157 = arith.constant 128 : index
    %388 = vector.load %arg11[%c2_155, %c0_156, %c128_157] : memref<8x8x256xf32, #tpu.memory_space<vmem>>, vector<1x8x128xf32>
    %389 = vector.shape_cast %388 : vector<1x8x128xf32> to vector<8x128xf32>
    %390 = arith.addf %387, %389 : vector<8x128xf32>
    %391 = vector.extract_strided_slice %362 {offsets = [0, 32], sizes = [8, 32], strides = [1, 1]} : vector<8x64xf32> to vector<8x32xf32>
    %392 = vector.extract_strided_slice %390 {offsets = [0, 0], sizes = [8, 96], strides = [1, 1]} : vector<8x128xf32> to vector<8x96xf32>
    %cst_158 = arith.constant 5.000000e-01 : f32
    %393 = vector.broadcast %cst_158 : f32 to vector<8x96xf32>
    %394 = arith.mulf %393, %392 : vector<8x96xf32>
    %395 = math.tanh %394 : vector<8x96xf32>
    %cst_159 = arith.constant 5.000000e-01 : f32
    %396 = vector.broadcast %cst_159 : f32 to vector<8x96xf32>
    %397 = arith.mulf %396, %395 : vector<8x96xf32>
    %cst_160 = arith.constant 5.000000e-01 : f32
    %398 = vector.broadcast %cst_160 : f32 to vector<8x96xf32>
    %399 = arith.addf %397, %398 : vector<8x96xf32>
    %400 = vector.extract_strided_slice %399 {offsets = [0, 0], sizes = [8, 32], strides = [1, 1]} : vector<8x96xf32> to vector<8x32xf32>
    %401 = vector.extract_strided_slice %399 {offsets = [0, 32], sizes = [8, 32], strides = [1, 1]} : vector<8x96xf32> to vector<8x32xf32>
    %402 = vector.extract_strided_slice %399 {offsets = [0, 64], sizes = [8, 32], strides = [1, 1]} : vector<8x96xf32> to vector<8x32xf32>
    %403 = arith.mulf %401, %391 : vector<8x32xf32>
    %404 = vector.extract_strided_slice %390 {offsets = [0, 96], sizes = [8, 32], strides = [1, 1]} : vector<8x128xf32> to vector<8x32xf32>
    %405 = math.tanh %404 : vector<8x32xf32>
    %406 = arith.mulf %400, %405 : vector<8x32xf32>
    %407 = arith.addf %403, %406 : vector<8x32xf32>
    %408 = math.tanh %407 : vector<8x32xf32>
    %409 = arith.mulf %402, %408 : vector<8x32xf32>
    %410 = vector.extract_strided_slice %361 {offsets = [0, 0], sizes = [8, 32], strides = [1, 1]} : vector<8x64xf32> to vector<8x32xf32>
    %411 = arith.select %23, %386, %410 : vector<8x32xi1>, vector<8x32xf32>
    %412 = vector.extract_strided_slice %362 {offsets = [0, 0], sizes = [8, 32], strides = [1, 1]} : vector<8x64xf32> to vector<8x32xf32>
    %413 = arith.select %23, %384, %412 : vector<8x32xi1>, vector<8x32xf32>
    %414 = vector.extract_strided_slice %361 {offsets = [0, 32], sizes = [8, 32], strides = [1, 1]} : vector<8x64xf32> to vector<8x32xf32>
    %415 = arith.select %11, %409, %414 : vector<8x32xi1>, vector<8x32xf32>
    %416 = vector.extract_strided_slice %362 {offsets = [0, 32], sizes = [8, 32], strides = [1, 1]} : vector<8x64xf32> to vector<8x32xf32>
    %417 = arith.select %11, %407, %416 : vector<8x32xi1>, vector<8x32xf32>
    %c0_161 = arith.constant 0 : index
    %c5_162 = arith.constant 5 : index
    %c0_163 = arith.constant 0 : index
    %c0_164 = arith.constant 0 : index
    %418 = vector.load %arg12[%c0_161, %c5_162, %c0_163, %c0_164] : memref<2x8x8x32xf32, #tpu.memory_space<vmem>>, vector<1x1x8x32xf32>
    %419 = vector.shape_cast %418 : vector<1x1x8x32xf32> to vector<8x32xf32>
    %420 = vector.shape_cast %411 : vector<8x32xf32> to vector<1x1x8x32xf32>
    tpu.vector_store %arg12[%c0_161, %c5_162, %c0_163, %c0_164], %420 {strides = array<i32>} : memref<2x8x8x32xf32, #tpu.memory_space<vmem>>, vector<1x1x8x32xf32>,
    %c1_165 = arith.constant 1 : index
    %c2_166 = arith.constant 2 : index
    %c0_167 = arith.constant 0 : index
    %c0_168 = arith.constant 0 : index
    %421 = vector.load %arg12[%c1_165, %c2_166, %c0_167, %c0_168] : memref<2x8x8x32xf32, #tpu.memory_space<vmem>>, vector<1x1x8x32xf32>
    %422 = vector.shape_cast %421 : vector<1x1x8x32xf32> to vector<8x32xf32>
    %423 = vector.shape_cast %415 : vector<8x32xf32> to vector<1x1x8x32xf32>
    tpu.vector_store %arg12[%c1_165, %c2_166, %c0_167, %c0_168], %423 {strides = array<i32>} : memref<2x8x8x32xf32, #tpu.memory_space<vmem>>, vector<1x1x8x32xf32>,
    %424 = tpu.concatenate %411, %415 in 1 : vector<8x32xf32>, vector<8x32xf32> -> vector<8x64xf32>
    %425 = tpu.concatenate %413, %417 in 1 : vector<8x32xf32>, vector<8x32xf32> -> vector<8x64xf32>
    %cst_169 = arith.constant dense<0.000000e+00> : vector<8x256xf32>
    %426 = tpu.matmul %424, %43, %cst_169 {dimension_numbers = #tpu.dot_dimension_numbers<[1], [0], [0], [1], [0, 0, 1, 1], [], []>} : vector<8x64xf32>, vector<64x256xf32>, vector<8x256xf32> -> vector<8x256xf32>
    %427 = vector.extract_strided_slice %426 {offsets = [0, 0], sizes = [8, 128], strides = [1, 1]} : vector<8x256xf32> to vector<8x128xf32>
    %c6_170 = arith.constant 6 : index
    %c0_171 = arith.constant 0 : index
    %c0_172 = arith.constant 0 : index
    %428 = vector.load %arg11[%c6_170, %c0_171, %c0_172] : memref<8x8x256xf32, #tpu.memory_space<vmem>>, vector<1x8x128xf32>
    %429 = vector.shape_cast %428 : vector<1x8x128xf32> to vector<8x128xf32>
    %430 = arith.addf %427, %429 : vector<8x128xf32>
    %431 = vector.extract_strided_slice %425 {offsets = [0, 0], sizes = [8, 32], strides = [1, 1]} : vector<8x64xf32> to vector<8x32xf32>
    %432 = vector.extract_strided_slice %430 {offsets = [0, 0], sizes = [8, 96], strides = [1, 1]} : vector<8x128xf32> to vector<8x96xf32>
    %cst_173 = arith.constant 5.000000e-01 : f32
    %433 = vector.broadcast %cst_173 : f32 to vector<8x96xf32>
    %434 = arith.mulf %433, %432 : vector<8x96xf32>
    %435 = math.tanh %434 : vector<8x96xf32>
    %cst_174 = arith.constant 5.000000e-01 : f32
    %436 = vector.broadcast %cst_174 : f32 to vector<8x96xf32>
    %437 = arith.mulf %436, %435 : vector<8x96xf32>
    %cst_175 = arith.constant 5.000000e-01 : f32
    %438 = vector.broadcast %cst_175 : f32 to vector<8x96xf32>
    %439 = arith.addf %437, %438 : vector<8x96xf32>
    %440 = vector.extract_strided_slice %439 {offsets = [0, 0], sizes = [8, 32], strides = [1, 1]} : vector<8x96xf32> to vector<8x32xf32>
    %441 = vector.extract_strided_slice %439 {offsets = [0, 32], sizes = [8, 32], strides = [1, 1]} : vector<8x96xf32> to vector<8x32xf32>
    %442 = vector.extract_strided_slice %439 {offsets = [0, 64], sizes = [8, 32], strides = [1, 1]} : vector<8x96xf32> to vector<8x32xf32>
    %443 = arith.mulf %441, %431 : vector<8x32xf32>
    %444 = vector.extract_strided_slice %430 {offsets = [0, 96], sizes = [8, 32], strides = [1, 1]} : vector<8x128xf32> to vector<8x32xf32>
    %445 = math.tanh %444 : vector<8x32xf32>
    %446 = arith.mulf %440, %445 : vector<8x32xf32>
    %447 = arith.addf %443, %446 : vector<8x32xf32>
    %448 = math.tanh %447 : vector<8x32xf32>
    %449 = arith.mulf %442, %448 : vector<8x32xf32>
    %450 = vector.extract_strided_slice %426 {offsets = [0, 128], sizes = [8, 128], strides = [1, 1]} : vector<8x256xf32> to vector<8x128xf32>
    %c1_176 = arith.constant 1 : index
    %c0_177 = arith.constant 0 : index
    %c128_178 = arith.constant 128 : index
    %451 = vector.load %arg11[%c1_176, %c0_177, %c128_178] : memref<8x8x256xf32, #tpu.memory_space<vmem>>, vector<1x8x128xf32>
    %452 = vector.shape_cast %451 : vector<1x8x128xf32> to vector<8x128xf32>
    %453 = arith.addf %450, %452 : vector<8x128xf32>
    %454 = vector.extract_strided_slice %425 {offsets = [0, 32], sizes = [8, 32], strides = [1, 1]} : vector<8x64xf32> to vector<8x32xf32>
    %455 = vector.extract_strided_slice %453 {offsets = [0, 0], sizes = [8, 96], strides = [1, 1]} : vector<8x128xf32> to vector<8x96xf32>
    %cst_179 = arith.constant 5.000000e-01 : f32
    %456 = vector.broadcast %cst_179 : f32 to vector<8x96xf32>
    %457 = arith.mulf %456, %455 : vector<8x96xf32>
    %458 = math.tanh %457 : vector<8x96xf32>
    %cst_180 = arith.constant 5.000000e-01 : f32
    %459 = vector.broadcast %cst_180 : f32 to vector<8x96xf32>
    %460 = arith.mulf %459, %458 : vector<8x96xf32>
    %cst_181 = arith.constant 5.000000e-01 : f32
    %461 = vector.broadcast %cst_181 : f32 to vector<8x96xf32>
    %462 = arith.addf %460, %461 : vector<8x96xf32>
    %463 = vector.extract_strided_slice %462 {offsets = [0, 0], sizes = [8, 32], strides = [1, 1]} : vector<8x96xf32> to vector<8x32xf32>
    %464 = vector.extract_strided_slice %462 {offsets = [0, 32], sizes = [8, 32], strides = [1, 1]} : vector<8x96xf32> to vector<8x32xf32>
    %465 = vector.extract_strided_slice %462 {offsets = [0, 64], sizes = [8, 32], strides = [1, 1]} : vector<8x96xf32> to vector<8x32xf32>
    %466 = arith.mulf %464, %454 : vector<8x32xf32>
    %467 = vector.extract_strided_slice %453 {offsets = [0, 96], sizes = [8, 32], strides = [1, 1]} : vector<8x128xf32> to vector<8x32xf32>
    %468 = math.tanh %467 : vector<8x32xf32>
    %469 = arith.mulf %463, %468 : vector<8x32xf32>
    %470 = arith.addf %466, %469 : vector<8x32xf32>
    %471 = math.tanh %470 : vector<8x32xf32>
    %472 = arith.mulf %465, %471 : vector<8x32xf32>
    %473 = vector.extract_strided_slice %424 {offsets = [0, 0], sizes = [8, 32], strides = [1, 1]} : vector<8x64xf32> to vector<8x32xf32>
    %474 = arith.select %27, %449, %473 : vector<8x32xi1>, vector<8x32xf32>
    %475 = vector.extract_strided_slice %425 {offsets = [0, 0], sizes = [8, 32], strides = [1, 1]} : vector<8x64xf32> to vector<8x32xf32>
    %476 = arith.select %27, %447, %475 : vector<8x32xi1>, vector<8x32xf32>
    %477 = vector.extract_strided_slice %424 {offsets = [0, 32], sizes = [8, 32], strides = [1, 1]} : vector<8x64xf32> to vector<8x32xf32>
    %478 = arith.select %7, %472, %477 : vector<8x32xi1>, vector<8x32xf32>
    %479 = vector.extract_strided_slice %425 {offsets = [0, 32], sizes = [8, 32], strides = [1, 1]} : vector<8x64xf32> to vector<8x32xf32>
    %480 = arith.select %7, %470, %479 : vector<8x32xi1>, vector<8x32xf32>
    %c0_182 = arith.constant 0 : index
    %c6_183 = arith.constant 6 : index
    %c0_184 = arith.constant 0 : index
    %c0_185 = arith.constant 0 : index
    %481 = vector.load %arg12[%c0_182, %c6_183, %c0_184, %c0_185] : memref<2x8x8x32xf32, #tpu.memory_space<vmem>>, vector<1x1x8x32xf32>
    %482 = vector.shape_cast %481 : vector<1x1x8x32xf32> to vector<8x32xf32>
    %483 = vector.shape_cast %474 : vector<8x32xf32> to vector<1x1x8x32xf32>
    tpu.vector_store %arg12[%c0_182, %c6_183, %c0_184, %c0_185], %483 {strides = array<i32>} : memref<2x8x8x32xf32, #tpu.memory_space<vmem>>, vector<1x1x8x32xf32>,
    %c1_186 = arith.constant 1 : index
    %c1_187 = arith.constant 1 : index
    %c0_188 = arith.constant 0 : index
    %c0_189 = arith.constant 0 : index
    %484 = vector.load %arg12[%c1_186, %c1_187, %c0_188, %c0_189] : memref<2x8x8x32xf32, #tpu.memory_space<vmem>>, vector<1x1x8x32xf32>
    %485 = vector.shape_cast %484 : vector<1x1x8x32xf32> to vector<8x32xf32>
    %486 = vector.shape_cast %478 : vector<8x32xf32> to vector<1x1x8x32xf32>
    tpu.vector_store %arg12[%c1_186, %c1_187, %c0_188, %c0_189], %486 {strides = array<i32>} : memref<2x8x8x32xf32, #tpu.memory_space<vmem>>, vector<1x1x8x32xf32>,
    %487 = tpu.concatenate %474, %478 in 1 : vector<8x32xf32>, vector<8x32xf32> -> vector<8x64xf32>
    %488 = tpu.concatenate %476, %480 in 1 : vector<8x32xf32>, vector<8x32xf32> -> vector<8x64xf32>
    %cst_190 = arith.constant dense<0.000000e+00> : vector<8x256xf32>
    %489 = tpu.matmul %487, %43, %cst_190 {dimension_numbers = #tpu.dot_dimension_numbers<[1], [0], [0], [1], [0, 0, 1, 1], [], []>} : vector<8x64xf32>, vector<64x256xf32>, vector<8x256xf32> -> vector<8x256xf32>
    %490 = vector.extract_strided_slice %489 {offsets = [0, 0], sizes = [8, 128], strides = [1, 1]} : vector<8x256xf32> to vector<8x128xf32>
    %c7_191 = arith.constant 7 : index
    %c0_192 = arith.constant 0 : index
    %c0_193 = arith.constant 0 : index
    %491 = vector.load %arg11[%c7_191, %c0_192, %c0_193] : memref<8x8x256xf32, #tpu.memory_space<vmem>>, vector<1x8x128xf32>
    %492 = vector.shape_cast %491 : vector<1x8x128xf32> to vector<8x128xf32>
    %493 = arith.addf %490, %492 : vector<8x128xf32>
    %494 = vector.extract_strided_slice %488 {offsets = [0, 0], sizes = [8, 32], strides = [1, 1]} : vector<8x64xf32> to vector<8x32xf32>
    %495 = vector.extract_strided_slice %493 {offsets = [0, 0], sizes = [8, 96], strides = [1, 1]} : vector<8x128xf32> to vector<8x96xf32>
    %cst_194 = arith.constant 5.000000e-01 : f32
    %496 = vector.broadcast %cst_194 : f32 to vector<8x96xf32>
    %497 = arith.mulf %496, %495 : vector<8x96xf32>
    %498 = math.tanh %497 : vector<8x96xf32>
    %cst_195 = arith.constant 5.000000e-01 : f32
    %499 = vector.broadcast %cst_195 : f32 to vector<8x96xf32>
    %500 = arith.mulf %499, %498 : vector<8x96xf32>
    %cst_196 = arith.constant 5.000000e-01 : f32
    %501 = vector.broadcast %cst_196 : f32 to vector<8x96xf32>
    %502 = arith.addf %500, %501 : vector<8x96xf32>
    %503 = vector.extract_strided_slice %502 {offsets = [0, 0], sizes = [8, 32], strides = [1, 1]} : vector<8x96xf32> to vector<8x32xf32>
    %504 = vector.extract_strided_slice %502 {offsets = [0, 32], sizes = [8, 32], strides = [1, 1]} : vector<8x96xf32> to vector<8x32xf32>
    %505 = vector.extract_strided_slice %502 {offsets = [0, 64], sizes = [8, 32], strides = [1, 1]} : vector<8x96xf32> to vector<8x32xf32>
    %506 = arith.mulf %504, %494 : vector<8x32xf32>
    %507 = vector.extract_strided_slice %493 {offsets = [0, 96], sizes = [8, 32], strides = [1, 1]} : vector<8x128xf32> to vector<8x32xf32>
    %508 = math.tanh %507 : vector<8x32xf32>
    %509 = arith.mulf %503, %508 : vector<8x32xf32>
    %510 = arith.addf %506, %509 : vector<8x32xf32>
    %511 = math.tanh %510 : vector<8x32xf32>
    %512 = arith.mulf %505, %511 : vector<8x32xf32>
    %513 = vector.extract_strided_slice %489 {offsets = [0, 128], sizes = [8, 128], strides = [1, 1]} : vector<8x256xf32> to vector<8x128xf32>
    %c0_197 = arith.constant 0 : index
    %c0_198 = arith.constant 0 : index
    %c128_199 = arith.constant 128 : index
    %514 = vector.load %arg11[%c0_197, %c0_198, %c128_199] : memref<8x8x256xf32, #tpu.memory_space<vmem>>, vector<1x8x128xf32>
    %515 = vector.shape_cast %514 : vector<1x8x128xf32> to vector<8x128xf32>
    %516 = arith.addf %513, %515 : vector<8x128xf32>
    %517 = vector.extract_strided_slice %488 {offsets = [0, 32], sizes = [8, 32], strides = [1, 1]} : vector<8x64xf32> to vector<8x32xf32>
    %518 = vector.extract_strided_slice %516 {offsets = [0, 0], sizes = [8, 96], strides = [1, 1]} : vector<8x128xf32> to vector<8x96xf32>
    %cst_200 = arith.constant 5.000000e-01 : f32
    %519 = vector.broadcast %cst_200 : f32 to vector<8x96xf32>
    %520 = arith.mulf %519, %518 : vector<8x96xf32>
    %521 = math.tanh %520 : vector<8x96xf32>
    %cst_201 = arith.constant 5.000000e-01 : f32
    %522 = vector.broadcast %cst_201 : f32 to vector<8x96xf32>
    %523 = arith.mulf %522, %521 : vector<8x96xf32>
    %cst_202 = arith.constant 5.000000e-01 : f32
    %524 = vector.broadcast %cst_202 : f32 to vector<8x96xf32>
    %525 = arith.addf %523, %524 : vector<8x96xf32>
    %526 = vector.extract_strided_slice %525 {offsets = [0, 0], sizes = [8, 32], strides = [1, 1]} : vector<8x96xf32> to vector<8x32xf32>
    %527 = vector.extract_strided_slice %525 {offsets = [0, 32], sizes = [8, 32], strides = [1, 1]} : vector<8x96xf32> to vector<8x32xf32>
    %528 = vector.extract_strided_slice %525 {offsets = [0, 64], sizes = [8, 32], strides = [1, 1]} : vector<8x96xf32> to vector<8x32xf32>
    %529 = arith.mulf %527, %517 : vector<8x32xf32>
    %530 = vector.extract_strided_slice %516 {offsets = [0, 96], sizes = [8, 32], strides = [1, 1]} : vector<8x128xf32> to vector<8x32xf32>
    %531 = math.tanh %530 : vector<8x32xf32>
    %532 = arith.mulf %526, %531 : vector<8x32xf32>
    %533 = arith.addf %529, %532 : vector<8x32xf32>
    %534 = math.tanh %533 : vector<8x32xf32>
    %535 = arith.mulf %528, %534 : vector<8x32xf32>
    %536 = vector.extract_strided_slice %487 {offsets = [0, 0], sizes = [8, 32], strides = [1, 1]} : vector<8x64xf32> to vector<8x32xf32>
    %537 = arith.select %31, %512, %536 : vector<8x32xi1>, vector<8x32xf32>
    %538 = vector.extract_strided_slice %487 {offsets = [0, 32], sizes = [8, 32], strides = [1, 1]} : vector<8x64xf32> to vector<8x32xf32>
    %539 = arith.select %3, %535, %538 : vector<8x32xi1>, vector<8x32xf32>
    %c0_203 = arith.constant 0 : index
    %c7_204 = arith.constant 7 : index
    %c0_205 = arith.constant 0 : index
    %c0_206 = arith.constant 0 : index
    %540 = vector.load %arg12[%c0_203, %c7_204, %c0_205, %c0_206] : memref<2x8x8x32xf32, #tpu.memory_space<vmem>>, vector<1x1x8x32xf32>
    %541 = vector.shape_cast %540 : vector<1x1x8x32xf32> to vector<8x32xf32>
    %542 = vector.shape_cast %537 : vector<8x32xf32> to vector<1x1x8x32xf32>
    tpu.vector_store %arg12[%c0_203, %c7_204, %c0_205, %c0_206], %542 {strides = array<i32>} : memref<2x8x8x32xf32, #tpu.memory_space<vmem>>, vector<1x1x8x32xf32>,
    %c1_207 = arith.constant 1 : index
    %c0_208 = arith.constant 0 : index
    %c0_209 = arith.constant 0 : index
    %c0_210 = arith.constant 0 : index
    %543 = vector.load %arg12[%c1_207, %c0_208, %c0_209, %c0_210] : memref<2x8x8x32xf32, #tpu.memory_space<vmem>>, vector<1x1x8x32xf32>
    %544 = vector.shape_cast %543 : vector<1x1x8x32xf32> to vector<8x32xf32>
    %545 = vector.shape_cast %539 : vector<8x32xf32> to vector<1x1x8x32xf32>
    tpu.vector_store %arg12[%c1_207, %c0_208, %c0_209, %c0_210], %545 {strides = array<i32>} : memref<2x8x8x32xf32, #tpu.memory_space<vmem>>, vector<1x1x8x32xf32>,
    %c0_211 = arith.constant 0 : index
    %c0_212 = arith.constant 0 : index
    %c0_213 = arith.constant 0 : index
    %546 = vector.load %arg7[%c0_211, %c0_212, %c0_213] : memref<1x64x256xf32, #tpu.memory_space<vmem>>, vector<1x64x256xf32>
    %547 = vector.shape_cast %546 : vector<1x64x256xf32> to vector<64x256xf32>
    %c0_214 = arith.constant 0 : index
    %c0_215 = arith.constant 0 : index
    %c0_216 = arith.constant 0 : index
    %c0_217 = arith.constant 0 : index
    %548 = vector.load %arg12[%c0_214, %c0_215, %c0_216, %c0_217] : memref<2x8x8x32xf32, #tpu.memory_space<vmem>>, vector<1x8x8x32xf32>
    %549 = vector.shape_cast %548 : vector<1x8x8x32xf32> to vector<8x8x32xf32>
    %550 = vector.shape_cast %549 : vector<8x8x32xf32> to vector<64x32xf32>
    %c1_218 = arith.constant 1 : index
    %c0_219 = arith.constant 0 : index
    %c0_220 = arith.constant 0 : index
    %c0_221 = arith.constant 0 : index
    %551 = vector.load %arg12[%c1_218, %c0_219, %c0_220, %c0_221] : memref<2x8x8x32xf32, #tpu.memory_space<vmem>>, vector<1x8x8x32xf32>
    %552 = vector.shape_cast %551 : vector<1x8x8x32xf32> to vector<8x8x32xf32>
    %553 = vector.shape_cast %552 : vector<8x8x32xf32> to vector<64x32xf32>
    %554 = vector.extract_strided_slice %547 {offsets = [0, 0], sizes = [32, 256], strides = [1, 1]} : vector<64x256xf32> to vector<32x256xf32>
    %cst_222 = arith.constant dense<0.000000e+00> : vector<64x256xf32>
    %555 = tpu.matmul %550, %554, %cst_222 {dimension_numbers = #tpu.dot_dimension_numbers<[1], [0], [0], [1], [0, 0, 1, 1], [], []>} : vector<64x32xf32>, vector<32x256xf32>, vector<64x256xf32> -> vector<64x256xf32>
    %556 = vector.extract_strided_slice %547 {offsets = [32, 0], sizes = [32, 256], strides = [1, 1]} : vector<64x256xf32> to vector<32x256xf32>
    %cst_223 = arith.constant dense<0.000000e+00> : vector<64x256xf32>
    %557 = tpu.matmul %553, %556, %cst_223 {dimension_numbers = #tpu.dot_dimension_numbers<[1], [0], [0], [1], [0, 0, 1, 1], [], []>} : vector<64x32xf32>, vector<32x256xf32>, vector<64x256xf32> -> vector<64x256xf32>
    %558 = arith.addf %555, %557 : vector<64x256xf32>
    %c1_224 = arith.constant 1 : index
    %c0_225 = arith.constant 0 : index
    %c0_226 = arith.constant 0 : index
    %559 = vector.load %arg9[%c1_224, %c0_225, %c0_226] : memref<2x1x256xf32, #tpu.memory_space<vmem>>, vector<1x1x256xf32>
    %560 = vector.shape_cast %559 : vector<1x1x256xf32> to vector<1x256xf32>
    %561 = vector.broadcast %560 : vector<1x256xf32> to vector<64x256xf32>
    %562 = arith.addf %558, %561 : vector<64x256xf32>
    %563 = vector.shape_cast %562 : vector<64x256xf32> to vector<8x8x256xf32>
    %c0_227 = arith.constant 0 : index
    %c0_228 = arith.constant 0 : index
    %c0_229 = arith.constant 0 : index
    %564 = vector.load %arg11[%c0_227, %c0_228, %c0_229] : memref<8x8x256xf32, #tpu.memory_space<vmem>>, vector<8x8x256xf32>
    tpu.vector_store %arg11[%c0_227, %c0_228, %c0_229], %563 {strides = array<i32>} : memref<8x8x256xf32, #tpu.memory_space<vmem>>, vector<8x8x256xf32>,
    %c1_230 = arith.constant 1 : index
    %c0_231 = arith.constant 0 : index
    %c0_232 = arith.constant 0 : index
    %565 = vector.load %arg8[%c1_230, %c0_231, %c0_232] : memref<2x64x256xf32, #tpu.memory_space<vmem>>, vector<1x64x256xf32>
    %566 = vector.shape_cast %565 : vector<1x64x256xf32> to vector<64x256xf32>
    %c1_233 = arith.constant 1 : index
    %c0_234 = arith.constant 0 : index
    %c0_235 = arith.constant 0 : index
    %567 = vector.load %arg2[%c1_233, %c0_234, %c0_235] : memref<2x8x64xf32, #tpu.memory_space<vmem>>, vector<1x8x64xf32>
    %568 = vector.shape_cast %567 : vector<1x8x64xf32> to vector<8x64xf32>
    %c1_236 = arith.constant 1 : index
    %c0_237 = arith.constant 0 : index
    %c0_238 = arith.constant 0 : index
    %569 = vector.load %arg3[%c1_236, %c0_237, %c0_238] : memref<2x8x64xf32, #tpu.memory_space<vmem>>, vector<1x8x64xf32>
    %570 = vector.shape_cast %569 : vector<1x8x64xf32> to vector<8x64xf32>
    %cst_239 = arith.constant dense<0.000000e+00> : vector<8x256xf32>
    %571 = tpu.matmul %568, %566, %cst_239 {dimension_numbers = #tpu.dot_dimension_numbers<[1], [0], [0], [1], [0, 0, 1, 1], [], []>} : vector<8x64xf32>, vector<64x256xf32>, vector<8x256xf32> -> vector<8x256xf32>
    %572 = vector.extract_strided_slice %571 {offsets = [0, 0], sizes = [8, 128], strides = [1, 1]} : vector<8x256xf32> to vector<8x128xf32>
    %c0_240 = arith.constant 0 : index
    %c0_241 = arith.constant 0 : index
    %c0_242 = arith.constant 0 : index
    %573 = vector.load %arg11[%c0_240, %c0_241, %c0_242] : memref<8x8x256xf32, #tpu.memory_space<vmem>>, vector<1x8x128xf32>
    %574 = vector.shape_cast %573 : vector<1x8x128xf32> to vector<8x128xf32>
    %575 = arith.addf %572, %574 : vector<8x128xf32>
    %576 = vector.extract_strided_slice %570 {offsets = [0, 0], sizes = [8, 32], strides = [1, 1]} : vector<8x64xf32> to vector<8x32xf32>
    %577 = vector.extract_strided_slice %575 {offsets = [0, 0], sizes = [8, 96], strides = [1, 1]} : vector<8x128xf32> to vector<8x96xf32>
    %cst_243 = arith.constant 5.000000e-01 : f32
    %578 = vector.broadcast %cst_243 : f32 to vector<8x96xf32>
    %579 = arith.mulf %578, %577 : vector<8x96xf32>
    %580 = math.tanh %579 : vector<8x96xf32>
    %cst_244 = arith.constant 5.000000e-01 : f32
    %581 = vector.broadcast %cst_244 : f32 to vector<8x96xf32>
    %582 = arith.mulf %581, %580 : vector<8x96xf32>
    %cst_245 = arith.constant 5.000000e-01 : f32
    %583 = vector.broadcast %cst_245 : f32 to vector<8x96xf32>
    %584 = arith.addf %582, %583 : vector<8x96xf32>
    %585 = vector.extract_strided_slice %584 {offsets = [0, 0], sizes = [8, 32], strides = [1, 1]} : vector<8x96xf32> to vector<8x32xf32>
    %586 = vector.extract_strided_slice %584 {offsets = [0, 32], sizes = [8, 32], strides = [1, 1]} : vector<8x96xf32> to vector<8x32xf32>
    %587 = vector.extract_strided_slice %584 {offsets = [0, 64], sizes = [8, 32], strides = [1, 1]} : vector<8x96xf32> to vector<8x32xf32>
    %588 = arith.mulf %586, %576 : vector<8x32xf32>
    %589 = vector.extract_strided_slice %575 {offsets = [0, 96], sizes = [8, 32], strides = [1, 1]} : vector<8x128xf32> to vector<8x32xf32>
    %590 = math.tanh %589 : vector<8x32xf32>
    %591 = arith.mulf %585, %590 : vector<8x32xf32>
    %592 = arith.addf %588, %591 : vector<8x32xf32>
    %593 = math.tanh %592 : vector<8x32xf32>
    %594 = arith.mulf %587, %593 : vector<8x32xf32>
    %595 = vector.extract_strided_slice %571 {offsets = [0, 128], sizes = [8, 128], strides = [1, 1]} : vector<8x256xf32> to vector<8x128xf32>
    %c7_246 = arith.constant 7 : index
    %c0_247 = arith.constant 0 : index
    %c128_248 = arith.constant 128 : index
    %596 = vector.load %arg11[%c7_246, %c0_247, %c128_248] : memref<8x8x256xf32, #tpu.memory_space<vmem>>, vector<1x8x128xf32>
    %597 = vector.shape_cast %596 : vector<1x8x128xf32> to vector<8x128xf32>
    %598 = arith.addf %595, %597 : vector<8x128xf32>
    %599 = vector.extract_strided_slice %570 {offsets = [0, 32], sizes = [8, 32], strides = [1, 1]} : vector<8x64xf32> to vector<8x32xf32>
    %600 = vector.extract_strided_slice %598 {offsets = [0, 0], sizes = [8, 96], strides = [1, 1]} : vector<8x128xf32> to vector<8x96xf32>
    %cst_249 = arith.constant 5.000000e-01 : f32
    %601 = vector.broadcast %cst_249 : f32 to vector<8x96xf32>
    %602 = arith.mulf %601, %600 : vector<8x96xf32>
    %603 = math.tanh %602 : vector<8x96xf32>
    %cst_250 = arith.constant 5.000000e-01 : f32
    %604 = vector.broadcast %cst_250 : f32 to vector<8x96xf32>
    %605 = arith.mulf %604, %603 : vector<8x96xf32>
    %cst_251 = arith.constant 5.000000e-01 : f32
    %606 = vector.broadcast %cst_251 : f32 to vector<8x96xf32>
    %607 = arith.addf %605, %606 : vector<8x96xf32>
    %608 = vector.extract_strided_slice %607 {offsets = [0, 0], sizes = [8, 32], strides = [1, 1]} : vector<8x96xf32> to vector<8x32xf32>
    %609 = vector.extract_strided_slice %607 {offsets = [0, 32], sizes = [8, 32], strides = [1, 1]} : vector<8x96xf32> to vector<8x32xf32>
    %610 = vector.extract_strided_slice %607 {offsets = [0, 64], sizes = [8, 32], strides = [1, 1]} : vector<8x96xf32> to vector<8x32xf32>
    %611 = arith.mulf %609, %599 : vector<8x32xf32>
    %612 = vector.extract_strided_slice %598 {offsets = [0, 96], sizes = [8, 32], strides = [1, 1]} : vector<8x128xf32> to vector<8x32xf32>
    %613 = math.tanh %612 : vector<8x32xf32>
    %614 = arith.mulf %608, %613 : vector<8x32xf32>
    %615 = arith.addf %611, %614 : vector<8x32xf32>
    %616 = math.tanh %615 : vector<8x32xf32>
    %617 = arith.mulf %610, %616 : vector<8x32xf32>
    %618 = vector.extract_strided_slice %568 {offsets = [0, 0], sizes = [8, 32], strides = [1, 1]} : vector<8x64xf32> to vector<8x32xf32>
    %619 = arith.select %3, %594, %618 : vector<8x32xi1>, vector<8x32xf32>
    %620 = vector.extract_strided_slice %570 {offsets = [0, 0], sizes = [8, 32], strides = [1, 1]} : vector<8x64xf32> to vector<8x32xf32>
    %621 = arith.select %3, %592, %620 : vector<8x32xi1>, vector<8x32xf32>
    %622 = vector.extract_strided_slice %568 {offsets = [0, 32], sizes = [8, 32], strides = [1, 1]} : vector<8x64xf32> to vector<8x32xf32>
    %623 = arith.select %31, %617, %622 : vector<8x32xi1>, vector<8x32xf32>
    %624 = vector.extract_strided_slice %570 {offsets = [0, 32], sizes = [8, 32], strides = [1, 1]} : vector<8x64xf32> to vector<8x32xf32>
    %625 = arith.select %31, %615, %624 : vector<8x32xi1>, vector<8x32xf32>
    %626 = tpu.concatenate %619, %623 in 1 : vector<8x32xf32>, vector<8x32xf32> -> vector<8x64xf32>
    %627 = tpu.concatenate %621, %625 in 1 : vector<8x32xf32>, vector<8x32xf32> -> vector<8x64xf32>
    %cst_252 = arith.constant dense<0.000000e+00> : vector<8x256xf32>
    %628 = tpu.matmul %626, %566, %cst_252 {dimension_numbers = #tpu.dot_dimension_numbers<[1], [0], [0], [1], [0, 0, 1, 1], [], []>} : vector<8x64xf32>, vector<64x256xf32>, vector<8x256xf32> -> vector<8x256xf32>
    %629 = vector.extract_strided_slice %628 {offsets = [0, 0], sizes = [8, 128], strides = [1, 1]} : vector<8x256xf32> to vector<8x128xf32>
    %c1_253 = arith.constant 1 : index
    %c0_254 = arith.constant 0 : index
    %c0_255 = arith.constant 0 : index
    %630 = vector.load %arg11[%c1_253, %c0_254, %c0_255] : memref<8x8x256xf32, #tpu.memory_space<vmem>>, vector<1x8x128xf32>
    %631 = vector.shape_cast %630 : vector<1x8x128xf32> to vector<8x128xf32>
    %632 = arith.addf %629, %631 : vector<8x128xf32>
    %633 = vector.extract_strided_slice %627 {offsets = [0, 0], sizes = [8, 32], strides = [1, 1]} : vector<8x64xf32> to vector<8x32xf32>
    %634 = vector.extract_strided_slice %632 {offsets = [0, 0], sizes = [8, 96], strides = [1, 1]} : vector<8x128xf32> to vector<8x96xf32>
    %cst_256 = arith.constant 5.000000e-01 : f32
    %635 = vector.broadcast %cst_256 : f32 to vector<8x96xf32>
    %636 = arith.mulf %635, %634 : vector<8x96xf32>
    %637 = math.tanh %636 : vector<8x96xf32>
    %cst_257 = arith.constant 5.000000e-01 : f32
    %638 = vector.broadcast %cst_257 : f32 to vector<8x96xf32>
    %639 = arith.mulf %638, %637 : vector<8x96xf32>
    %cst_258 = arith.constant 5.000000e-01 : f32
    %640 = vector.broadcast %cst_258 : f32 to vector<8x96xf32>
    %641 = arith.addf %639, %640 : vector<8x96xf32>
    %642 = vector.extract_strided_slice %641 {offsets = [0, 0], sizes = [8, 32], strides = [1, 1]} : vector<8x96xf32> to vector<8x32xf32>
    %643 = vector.extract_strided_slice %641 {offsets = [0, 32], sizes = [8, 32], strides = [1, 1]} : vector<8x96xf32> to vector<8x32xf32>
    %644 = vector.extract_strided_slice %641 {offsets = [0, 64], sizes = [8, 32], strides = [1, 1]} : vector<8x96xf32> to vector<8x32xf32>
    %645 = arith.mulf %643, %633 : vector<8x32xf32>
    %646 = vector.extract_strided_slice %632 {offsets = [0, 96], sizes = [8, 32], strides = [1, 1]} : vector<8x128xf32> to vector<8x32xf32>
    %647 = math.tanh %646 : vector<8x32xf32>
    %648 = arith.mulf %642, %647 : vector<8x32xf32>
    %649 = arith.addf %645, %648 : vector<8x32xf32>
    %650 = math.tanh %649 : vector<8x32xf32>
    %651 = arith.mulf %644, %650 : vector<8x32xf32>
    %652 = vector.extract_strided_slice %628 {offsets = [0, 128], sizes = [8, 128], strides = [1, 1]} : vector<8x256xf32> to vector<8x128xf32>
    %c6_259 = arith.constant 6 : index
    %c0_260 = arith.constant 0 : index
    %c128_261 = arith.constant 128 : index
    %653 = vector.load %arg11[%c6_259, %c0_260, %c128_261] : memref<8x8x256xf32, #tpu.memory_space<vmem>>, vector<1x8x128xf32>
    %654 = vector.shape_cast %653 : vector<1x8x128xf32> to vector<8x128xf32>
    %655 = arith.addf %652, %654 : vector<8x128xf32>
    %656 = vector.extract_strided_slice %627 {offsets = [0, 32], sizes = [8, 32], strides = [1, 1]} : vector<8x64xf32> to vector<8x32xf32>
    %657 = vector.extract_strided_slice %655 {offsets = [0, 0], sizes = [8, 96], strides = [1, 1]} : vector<8x128xf32> to vector<8x96xf32>
    %cst_262 = arith.constant 5.000000e-01 : f32
    %658 = vector.broadcast %cst_262 : f32 to vector<8x96xf32>
    %659 = arith.mulf %658, %657 : vector<8x96xf32>
    %660 = math.tanh %659 : vector<8x96xf32>
    %cst_263 = arith.constant 5.000000e-01 : f32
    %661 = vector.broadcast %cst_263 : f32 to vector<8x96xf32>
    %662 = arith.mulf %661, %660 : vector<8x96xf32>
    %cst_264 = arith.constant 5.000000e-01 : f32
    %663 = vector.broadcast %cst_264 : f32 to vector<8x96xf32>
    %664 = arith.addf %662, %663 : vector<8x96xf32>
    %665 = vector.extract_strided_slice %664 {offsets = [0, 0], sizes = [8, 32], strides = [1, 1]} : vector<8x96xf32> to vector<8x32xf32>
    %666 = vector.extract_strided_slice %664 {offsets = [0, 32], sizes = [8, 32], strides = [1, 1]} : vector<8x96xf32> to vector<8x32xf32>
    %667 = vector.extract_strided_slice %664 {offsets = [0, 64], sizes = [8, 32], strides = [1, 1]} : vector<8x96xf32> to vector<8x32xf32>
    %668 = arith.mulf %666, %656 : vector<8x32xf32>
    %669 = vector.extract_strided_slice %655 {offsets = [0, 96], sizes = [8, 32], strides = [1, 1]} : vector<8x128xf32> to vector<8x32xf32>
    %670 = math.tanh %669 : vector<8x32xf32>
    %671 = arith.mulf %665, %670 : vector<8x32xf32>
    %672 = arith.addf %668, %671 : vector<8x32xf32>
    %673 = math.tanh %672 : vector<8x32xf32>
    %674 = arith.mulf %667, %673 : vector<8x32xf32>
    %675 = vector.extract_strided_slice %626 {offsets = [0, 0], sizes = [8, 32], strides = [1, 1]} : vector<8x64xf32> to vector<8x32xf32>
    %676 = arith.select %7, %651, %675 : vector<8x32xi1>, vector<8x32xf32>
    %677 = vector.extract_strided_slice %627 {offsets = [0, 0], sizes = [8, 32], strides = [1, 1]} : vector<8x64xf32> to vector<8x32xf32>
    %678 = arith.select %7, %649, %677 : vector<8x32xi1>, vector<8x32xf32>
    %679 = vector.extract_strided_slice %626 {offsets = [0, 32], sizes = [8, 32], strides = [1, 1]} : vector<8x64xf32> to vector<8x32xf32>
    %680 = arith.select %27, %674, %679 : vector<8x32xi1>, vector<8x32xf32>
    %681 = vector.extract_strided_slice %627 {offsets = [0, 32], sizes = [8, 32], strides = [1, 1]} : vector<8x64xf32> to vector<8x32xf32>
    %682 = arith.select %27, %672, %681 : vector<8x32xi1>, vector<8x32xf32>
    %683 = tpu.concatenate %676, %680 in 1 : vector<8x32xf32>, vector<8x32xf32> -> vector<8x64xf32>
    %684 = tpu.concatenate %678, %682 in 1 : vector<8x32xf32>, vector<8x32xf32> -> vector<8x64xf32>
    %cst_265 = arith.constant dense<0.000000e+00> : vector<8x256xf32>
    %685 = tpu.matmul %683, %566, %cst_265 {dimension_numbers = #tpu.dot_dimension_numbers<[1], [0], [0], [1], [0, 0, 1, 1], [], []>} : vector<8x64xf32>, vector<64x256xf32>, vector<8x256xf32> -> vector<8x256xf32>
    %686 = vector.extract_strided_slice %685 {offsets = [0, 0], sizes = [8, 128], strides = [1, 1]} : vector<8x256xf32> to vector<8x128xf32>
    %c2_266 = arith.constant 2 : index
    %c0_267 = arith.constant 0 : index
    %c0_268 = arith.constant 0 : index
    %687 = vector.load %arg11[%c2_266, %c0_267, %c0_268] : memref<8x8x256xf32, #tpu.memory_space<vmem>>, vector<1x8x128xf32>
    %688 = vector.shape_cast %687 : vector<1x8x128xf32> to vector<8x128xf32>
    %689 = arith.addf %686, %688 : vector<8x128xf32>
    %690 = vector.extract_strided_slice %684 {offsets = [0, 0], sizes = [8, 32], strides = [1, 1]} : vector<8x64xf32> to vector<8x32xf32>
    %691 = vector.extract_strided_slice %689 {offsets = [0, 0], sizes = [8, 96], strides = [1, 1]} : vector<8x128xf32> to vector<8x96xf32>
    %cst_269 = arith.constant 5.000000e-01 : f32
    %692 = vector.broadcast %cst_269 : f32 to vector<8x96xf32>
    %693 = arith.mulf %692, %691 : vector<8x96xf32>
    %694 = math.tanh %693 : vector<8x96xf32>
    %cst_270 = arith.constant 5.000000e-01 : f32
    %695 = vector.broadcast %cst_270 : f32 to vector<8x96xf32>
    %696 = arith.mulf %695, %694 : vector<8x96xf32>
    %cst_271 = arith.constant 5.000000e-01 : f32
    %697 = vector.broadcast %cst_271 : f32 to vector<8x96xf32>
    %698 = arith.addf %696, %697 : vector<8x96xf32>
    %699 = vector.extract_strided_slice %698 {offsets = [0, 0], sizes = [8, 32], strides = [1, 1]} : vector<8x96xf32> to vector<8x32xf32>
    %700 = vector.extract_strided_slice %698 {offsets = [0, 32], sizes = [8, 32], strides = [1, 1]} : vector<8x96xf32> to vector<8x32xf32>
    %701 = vector.extract_strided_slice %698 {offsets = [0, 64], sizes = [8, 32], strides = [1, 1]} : vector<8x96xf32> to vector<8x32xf32>
    %702 = arith.mulf %700, %690 : vector<8x32xf32>
    %703 = vector.extract_strided_slice %689 {offsets = [0, 96], sizes = [8, 32], strides = [1, 1]} : vector<8x128xf32> to vector<8x32xf32>
    %704 = math.tanh %703 : vector<8x32xf32>
    %705 = arith.mulf %699, %704 : vector<8x32xf32>
    %706 = arith.addf %702, %705 : vector<8x32xf32>
    %707 = math.tanh %706 : vector<8x32xf32>
    %708 = arith.mulf %701, %707 : vector<8x32xf32>
    %709 = vector.extract_strided_slice %685 {offsets = [0, 128], sizes = [8, 128], strides = [1, 1]} : vector<8x256xf32> to vector<8x128xf32>
    %c5_272 = arith.constant 5 : index
    %c0_273 = arith.constant 0 : index
    %c128_274 = arith.constant 128 : index
    %710 = vector.load %arg11[%c5_272, %c0_273, %c128_274] : memref<8x8x256xf32, #tpu.memory_space<vmem>>, vector<1x8x128xf32>
    %711 = vector.shape_cast %710 : vector<1x8x128xf32> to vector<8x128xf32>
    %712 = arith.addf %709, %711 : vector<8x128xf32>
    %713 = vector.extract_strided_slice %684 {offsets = [0, 32], sizes = [8, 32], strides = [1, 1]} : vector<8x64xf32> to vector<8x32xf32>
    %714 = vector.extract_strided_slice %712 {offsets = [0, 0], sizes = [8, 96], strides = [1, 1]} : vector<8x128xf32> to vector<8x96xf32>
    %cst_275 = arith.constant 5.000000e-01 : f32
    %715 = vector.broadcast %cst_275 : f32 to vector<8x96xf32>
    %716 = arith.mulf %715, %714 : vector<8x96xf32>
    %717 = math.tanh %716 : vector<8x96xf32>
    %cst_276 = arith.constant 5.000000e-01 : f32
    %718 = vector.broadcast %cst_276 : f32 to vector<8x96xf32>
    %719 = arith.mulf %718, %717 : vector<8x96xf32>
    %cst_277 = arith.constant 5.000000e-01 : f32
    %720 = vector.broadcast %cst_277 : f32 to vector<8x96xf32>
    %721 = arith.addf %719, %720 : vector<8x96xf32>
    %722 = vector.extract_strided_slice %721 {offsets = [0, 0], sizes = [8, 32], strides = [1, 1]} : vector<8x96xf32> to vector<8x32xf32>
    %723 = vector.extract_strided_slice %721 {offsets = [0, 32], sizes = [8, 32], strides = [1, 1]} : vector<8x96xf32> to vector<8x32xf32>
    %724 = vector.extract_strided_slice %721 {offsets = [0, 64], sizes = [8, 32], strides = [1, 1]} : vector<8x96xf32> to vector<8x32xf32>
    %725 = arith.mulf %723, %713 : vector<8x32xf32>
    %726 = vector.extract_strided_slice %712 {offsets = [0, 96], sizes = [8, 32], strides = [1, 1]} : vector<8x128xf32> to vector<8x32xf32>
    %727 = math.tanh %726 : vector<8x32xf32>
    %728 = arith.mulf %722, %727 : vector<8x32xf32>
    %729 = arith.addf %725, %728 : vector<8x32xf32>
    %730 = math.tanh %729 : vector<8x32xf32>
    %731 = arith.mulf %724, %730 : vector<8x32xf32>
    %732 = vector.extract_strided_slice %683 {offsets = [0, 0], sizes = [8, 32], strides = [1, 1]} : vector<8x64xf32> to vector<8x32xf32>
    %733 = arith.select %11, %708, %732 : vector<8x32xi1>, vector<8x32xf32>
    %734 = vector.extract_strided_slice %684 {offsets = [0, 0], sizes = [8, 32], strides = [1, 1]} : vector<8x64xf32> to vector<8x32xf32>
    %735 = arith.select %11, %706, %734 : vector<8x32xi1>, vector<8x32xf32>
    %736 = vector.extract_strided_slice %683 {offsets = [0, 32], sizes = [8, 32], strides = [1, 1]} : vector<8x64xf32> to vector<8x32xf32>
    %737 = arith.select %23, %731, %736 : vector<8x32xi1>, vector<8x32xf32>
    %738 = vector.extract_strided_slice %684 {offsets = [0, 32], sizes = [8, 32], strides = [1, 1]} : vector<8x64xf32> to vector<8x32xf32>
    %739 = arith.select %23, %729, %738 : vector<8x32xi1>, vector<8x32xf32>
    %740 = tpu.concatenate %733, %737 in 1 : vector<8x32xf32>, vector<8x32xf32> -> vector<8x64xf32>
    %741 = tpu.concatenate %735, %739 in 1 : vector<8x32xf32>, vector<8x32xf32> -> vector<8x64xf32>
    %cst_278 = arith.constant dense<0.000000e+00> : vector<8x256xf32>
    %742 = tpu.matmul %740, %566, %cst_278 {dimension_numbers = #tpu.dot_dimension_numbers<[1], [0], [0], [1], [0, 0, 1, 1], [], []>} : vector<8x64xf32>, vector<64x256xf32>, vector<8x256xf32> -> vector<8x256xf32>
    %743 = vector.extract_strided_slice %742 {offsets = [0, 0], sizes = [8, 128], strides = [1, 1]} : vector<8x256xf32> to vector<8x128xf32>
    %c3_279 = arith.constant 3 : index
    %c0_280 = arith.constant 0 : index
    %c0_281 = arith.constant 0 : index
    %744 = vector.load %arg11[%c3_279, %c0_280, %c0_281] : memref<8x8x256xf32, #tpu.memory_space<vmem>>, vector<1x8x128xf32>
    %745 = vector.shape_cast %744 : vector<1x8x128xf32> to vector<8x128xf32>
    %746 = arith.addf %743, %745 : vector<8x128xf32>
    %747 = vector.extract_strided_slice %741 {offsets = [0, 0], sizes = [8, 32], strides = [1, 1]} : vector<8x64xf32> to vector<8x32xf32>
    %748 = vector.extract_strided_slice %746 {offsets = [0, 0], sizes = [8, 96], strides = [1, 1]} : vector<8x128xf32> to vector<8x96xf32>
    %cst_282 = arith.constant 5.000000e-01 : f32
    %749 = vector.broadcast %cst_282 : f32 to vector<8x96xf32>
    %750 = arith.mulf %749, %748 : vector<8x96xf32>
    %751 = math.tanh %750 : vector<8x96xf32>
    %cst_283 = arith.constant 5.000000e-01 : f32
    %752 = vector.broadcast %cst_283 : f32 to vector<8x96xf32>
    %753 = arith.mulf %752, %751 : vector<8x96xf32>
    %cst_284 = arith.constant 5.000000e-01 : f32
    %754 = vector.broadcast %cst_284 : f32 to vector<8x96xf32>
    %755 = arith.addf %753, %754 : vector<8x96xf32>
    %756 = vector.extract_strided_slice %755 {offsets = [0, 0], sizes = [8, 32], strides = [1, 1]} : vector<8x96xf32> to vector<8x32xf32>
    %757 = vector.extract_strided_slice %755 {offsets = [0, 32], sizes = [8, 32], strides = [1, 1]} : vector<8x96xf32> to vector<8x32xf32>
    %758 = vector.extract_strided_slice %755 {offsets = [0, 64], sizes = [8, 32], strides = [1, 1]} : vector<8x96xf32> to vector<8x32xf32>
    %759 = arith.mulf %757, %747 : vector<8x32xf32>
    %760 = vector.extract_strided_slice %746 {offsets = [0, 96], sizes = [8, 32], strides = [1, 1]} : vector<8x128xf32> to vector<8x32xf32>
    %761 = math.tanh %760 : vector<8x32xf32>
    %762 = arith.mulf %756, %761 : vector<8x32xf32>
    %763 = arith.addf %759, %762 : vector<8x32xf32>
    %764 = math.tanh %763 : vector<8x32xf32>
    %765 = arith.mulf %758, %764 : vector<8x32xf32>
    %766 = vector.extract_strided_slice %742 {offsets = [0, 128], sizes = [8, 128], strides = [1, 1]} : vector<8x256xf32> to vector<8x128xf32>
    %c4_285 = arith.constant 4 : index
    %c0_286 = arith.constant 0 : index
    %c128_287 = arith.constant 128 : index
    %767 = vector.load %arg11[%c4_285, %c0_286, %c128_287] : memref<8x8x256xf32, #tpu.memory_space<vmem>>, vector<1x8x128xf32>
    %768 = vector.shape_cast %767 : vector<1x8x128xf32> to vector<8x128xf32>
    %769 = arith.addf %766, %768 : vector<8x128xf32>
    %770 = vector.extract_strided_slice %741 {offsets = [0, 32], sizes = [8, 32], strides = [1, 1]} : vector<8x64xf32> to vector<8x32xf32>
    %771 = vector.extract_strided_slice %769 {offsets = [0, 0], sizes = [8, 96], strides = [1, 1]} : vector<8x128xf32> to vector<8x96xf32>
    %cst_288 = arith.constant 5.000000e-01 : f32
    %772 = vector.broadcast %cst_288 : f32 to vector<8x96xf32>
    %773 = arith.mulf %772, %771 : vector<8x96xf32>
    %774 = math.tanh %773 : vector<8x96xf32>
    %cst_289 = arith.constant 5.000000e-01 : f32
    %775 = vector.broadcast %cst_289 : f32 to vector<8x96xf32>
    %776 = arith.mulf %775, %774 : vector<8x96xf32>
    %cst_290 = arith.constant 5.000000e-01 : f32
    %777 = vector.broadcast %cst_290 : f32 to vector<8x96xf32>
    %778 = arith.addf %776, %777 : vector<8x96xf32>
    %779 = vector.extract_strided_slice %778 {offsets = [0, 0], sizes = [8, 32], strides = [1, 1]} : vector<8x96xf32> to vector<8x32xf32>
    %780 = vector.extract_strided_slice %778 {offsets = [0, 32], sizes = [8, 32], strides = [1, 1]} : vector<8x96xf32> to vector<8x32xf32>
    %781 = vector.extract_strided_slice %778 {offsets = [0, 64], sizes = [8, 32], strides = [1, 1]} : vector<8x96xf32> to vector<8x32xf32>
    %782 = arith.mulf %780, %770 : vector<8x32xf32>
    %783 = vector.extract_strided_slice %769 {offsets = [0, 96], sizes = [8, 32], strides = [1, 1]} : vector<8x128xf32> to vector<8x32xf32>
    %784 = math.tanh %783 : vector<8x32xf32>
    %785 = arith.mulf %779, %784 : vector<8x32xf32>
    %786 = arith.addf %782, %785 : vector<8x32xf32>
    %787 = math.tanh %786 : vector<8x32xf32>
    %788 = arith.mulf %781, %787 : vector<8x32xf32>
    %789 = vector.extract_strided_slice %740 {offsets = [0, 0], sizes = [8, 32], strides = [1, 1]} : vector<8x64xf32> to vector<8x32xf32>
    %790 = arith.select %15, %765, %789 : vector<8x32xi1>, vector<8x32xf32>
    %791 = vector.extract_strided_slice %741 {offsets = [0, 0], sizes = [8, 32], strides = [1, 1]} : vector<8x64xf32> to vector<8x32xf32>
    %792 = arith.select %15, %763, %791 : vector<8x32xi1>, vector<8x32xf32>
    %793 = vector.extract_strided_slice %740 {offsets = [0, 32], sizes = [8, 32], strides = [1, 1]} : vector<8x64xf32> to vector<8x32xf32>
    %794 = arith.select %19, %788, %793 : vector<8x32xi1>, vector<8x32xf32>
    %795 = vector.extract_strided_slice %741 {offsets = [0, 32], sizes = [8, 32], strides = [1, 1]} : vector<8x64xf32> to vector<8x32xf32>
    %796 = arith.select %19, %786, %795 : vector<8x32xi1>, vector<8x32xf32>
    %797 = tpu.concatenate %790, %794 in 1 : vector<8x32xf32>, vector<8x32xf32> -> vector<8x64xf32>
    %798 = tpu.concatenate %792, %796 in 1 : vector<8x32xf32>, vector<8x32xf32> -> vector<8x64xf32>
    %cst_291 = arith.constant dense<0.000000e+00> : vector<8x256xf32>
    %799 = tpu.matmul %797, %566, %cst_291 {dimension_numbers = #tpu.dot_dimension_numbers<[1], [0], [0], [1], [0, 0, 1, 1], [], []>} : vector<8x64xf32>, vector<64x256xf32>, vector<8x256xf32> -> vector<8x256xf32>
    %800 = vector.extract_strided_slice %799 {offsets = [0, 0], sizes = [8, 128], strides = [1, 1]} : vector<8x256xf32> to vector<8x128xf32>
    %c4_292 = arith.constant 4 : index
    %c0_293 = arith.constant 0 : index
    %c0_294 = arith.constant 0 : index
    %801 = vector.load %arg11[%c4_292, %c0_293, %c0_294] : memref<8x8x256xf32, #tpu.memory_space<vmem>>, vector<1x8x128xf32>
    %802 = vector.shape_cast %801 : vector<1x8x128xf32> to vector<8x128xf32>
    %803 = arith.addf %800, %802 : vector<8x128xf32>
    %804 = vector.extract_strided_slice %798 {offsets = [0, 0], sizes = [8, 32], strides = [1, 1]} : vector<8x64xf32> to vector<8x32xf32>
    %805 = vector.extract_strided_slice %803 {offsets = [0, 0], sizes = [8, 96], strides = [1, 1]} : vector<8x128xf32> to vector<8x96xf32>
    %cst_295 = arith.constant 5.000000e-01 : f32
    %806 = vector.broadcast %cst_295 : f32 to vector<8x96xf32>
    %807 = arith.mulf %806, %805 : vector<8x96xf32>
    %808 = math.tanh %807 : vector<8x96xf32>
    %cst_296 = arith.constant 5.000000e-01 : f32
    %809 = vector.broadcast %cst_296 : f32 to vector<8x96xf32>
    %810 = arith.mulf %809, %808 : vector<8x96xf32>
    %cst_297 = arith.constant 5.000000e-01 : f32
    %811 = vector.broadcast %cst_297 : f32 to vector<8x96xf32>
    %812 = arith.addf %810, %811 : vector<8x96xf32>
    %813 = vector.extract_strided_slice %812 {offsets = [0, 0], sizes = [8, 32], strides = [1, 1]} : vector<8x96xf32> to vector<8x32xf32>
    %814 = vector.extract_strided_slice %812 {offsets = [0, 32], sizes = [8, 32], strides = [1, 1]} : vector<8x96xf32> to vector<8x32xf32>
    %815 = vector.extract_strided_slice %812 {offsets = [0, 64], sizes = [8, 32], strides = [1, 1]} : vector<8x96xf32> to vector<8x32xf32>
    %816 = arith.mulf %814, %804 : vector<8x32xf32>
    %817 = vector.extract_strided_slice %803 {offsets = [0, 96], sizes = [8, 32], strides = [1, 1]} : vector<8x128xf32> to vector<8x32xf32>
    %818 = math.tanh %817 : vector<8x32xf32>
    %819 = arith.mulf %813, %818 : vector<8x32xf32>
    %820 = arith.addf %816, %819 : vector<8x32xf32>
    %821 = math.tanh %820 : vector<8x32xf32>
    %822 = arith.mulf %815, %821 : vector<8x32xf32>
    %823 = vector.extract_strided_slice %799 {offsets = [0, 128], sizes = [8, 128], strides = [1, 1]} : vector<8x256xf32> to vector<8x128xf32>
    %c3_298 = arith.constant 3 : index
    %c0_299 = arith.constant 0 : index
    %c128_300 = arith.constant 128 : index
    %824 = vector.load %arg11[%c3_298, %c0_299, %c128_300] : memref<8x8x256xf32, #tpu.memory_space<vmem>>, vector<1x8x128xf32>
    %825 = vector.shape_cast %824 : vector<1x8x128xf32> to vector<8x128xf32>
    %826 = arith.addf %823, %825 : vector<8x128xf32>
    %827 = vector.extract_strided_slice %798 {offsets = [0, 32], sizes = [8, 32], strides = [1, 1]} : vector<8x64xf32> to vector<8x32xf32>
    %828 = vector.extract_strided_slice %826 {offsets = [0, 0], sizes = [8, 96], strides = [1, 1]} : vector<8x128xf32> to vector<8x96xf32>
    %cst_301 = arith.constant 5.000000e-01 : f32
    %829 = vector.broadcast %cst_301 : f32 to vector<8x96xf32>
    %830 = arith.mulf %829, %828 : vector<8x96xf32>
    %831 = math.tanh %830 : vector<8x96xf32>
    %cst_302 = arith.constant 5.000000e-01 : f32
    %832 = vector.broadcast %cst_302 : f32 to vector<8x96xf32>
    %833 = arith.mulf %832, %831 : vector<8x96xf32>
    %cst_303 = arith.constant 5.000000e-01 : f32
    %834 = vector.broadcast %cst_303 : f32 to vector<8x96xf32>
    %835 = arith.addf %833, %834 : vector<8x96xf32>
    %836 = vector.extract_strided_slice %835 {offsets = [0, 0], sizes = [8, 32], strides = [1, 1]} : vector<8x96xf32> to vector<8x32xf32>
    %837 = vector.extract_strided_slice %835 {offsets = [0, 32], sizes = [8, 32], strides = [1, 1]} : vector<8x96xf32> to vector<8x32xf32>
    %838 = vector.extract_strided_slice %835 {offsets = [0, 64], sizes = [8, 32], strides = [1, 1]} : vector<8x96xf32> to vector<8x32xf32>
    %839 = arith.mulf %837, %827 : vector<8x32xf32>
    %840 = vector.extract_strided_slice %826 {offsets = [0, 96], sizes = [8, 32], strides = [1, 1]} : vector<8x128xf32> to vector<8x32xf32>
    %841 = math.tanh %840 : vector<8x32xf32>
    %842 = arith.mulf %836, %841 : vector<8x32xf32>
    %843 = arith.addf %839, %842 : vector<8x32xf32>
    %844 = math.tanh %843 : vector<8x32xf32>
    %845 = arith.mulf %838, %844 : vector<8x32xf32>
    %846 = vector.extract_strided_slice %797 {offsets = [0, 0], sizes = [8, 32], strides = [1, 1]} : vector<8x64xf32> to vector<8x32xf32>
    %847 = arith.select %19, %822, %846 : vector<8x32xi1>, vector<8x32xf32>
    %848 = vector.extract_strided_slice %798 {offsets = [0, 0], sizes = [8, 32], strides = [1, 1]} : vector<8x64xf32> to vector<8x32xf32>
    %849 = arith.select %19, %820, %848 : vector<8x32xi1>, vector<8x32xf32>
    %850 = vector.extract_strided_slice %797 {offsets = [0, 32], sizes = [8, 32], strides = [1, 1]} : vector<8x64xf32> to vector<8x32xf32>
    %851 = arith.select %15, %845, %850 : vector<8x32xi1>, vector<8x32xf32>
    %852 = vector.extract_strided_slice %798 {offsets = [0, 32], sizes = [8, 32], strides = [1, 1]} : vector<8x64xf32> to vector<8x32xf32>
    %853 = arith.select %15, %843, %852 : vector<8x32xi1>, vector<8x32xf32>
    %854 = tpu.concatenate %847, %851 in 1 : vector<8x32xf32>, vector<8x32xf32> -> vector<8x64xf32>
    %855 = tpu.concatenate %849, %853 in 1 : vector<8x32xf32>, vector<8x32xf32> -> vector<8x64xf32>
    %cst_304 = arith.constant dense<0.000000e+00> : vector<8x256xf32>
    %856 = tpu.matmul %854, %566, %cst_304 {dimension_numbers = #tpu.dot_dimension_numbers<[1], [0], [0], [1], [0, 0, 1, 1], [], []>} : vector<8x64xf32>, vector<64x256xf32>, vector<8x256xf32> -> vector<8x256xf32>
    %857 = vector.extract_strided_slice %856 {offsets = [0, 0], sizes = [8, 128], strides = [1, 1]} : vector<8x256xf32> to vector<8x128xf32>
    %c5_305 = arith.constant 5 : index
    %c0_306 = arith.constant 0 : index
    %c0_307 = arith.constant 0 : index
    %858 = vector.load %arg11[%c5_305, %c0_306, %c0_307] : memref<8x8x256xf32, #tpu.memory_space<vmem>>, vector<1x8x128xf32>
    %859 = vector.shape_cast %858 : vector<1x8x128xf32> to vector<8x128xf32>
    %860 = arith.addf %857, %859 : vector<8x128xf32>
    %861 = vector.extract_strided_slice %855 {offsets = [0, 0], sizes = [8, 32], strides = [1, 1]} : vector<8x64xf32> to vector<8x32xf32>
    %862 = vector.extract_strided_slice %860 {offsets = [0, 0], sizes = [8, 96], strides = [1, 1]} : vector<8x128xf32> to vector<8x96xf32>
    %cst_308 = arith.constant 5.000000e-01 : f32
    %863 = vector.broadcast %cst_308 : f32 to vector<8x96xf32>
    %864 = arith.mulf %863, %862 : vector<8x96xf32>
    %865 = math.tanh %864 : vector<8x96xf32>
    %cst_309 = arith.constant 5.000000e-01 : f32
    %866 = vector.broadcast %cst_309 : f32 to vector<8x96xf32>
    %867 = arith.mulf %866, %865 : vector<8x96xf32>
    %cst_310 = arith.constant 5.000000e-01 : f32
    %868 = vector.broadcast %cst_310 : f32 to vector<8x96xf32>
    %869 = arith.addf %867, %868 : vector<8x96xf32>
    %870 = vector.extract_strided_slice %869 {offsets = [0, 0], sizes = [8, 32], strides = [1, 1]} : vector<8x96xf32> to vector<8x32xf32>
    %871 = vector.extract_strided_slice %869 {offsets = [0, 32], sizes = [8, 32], strides = [1, 1]} : vector<8x96xf32> to vector<8x32xf32>
    %872 = vector.extract_strided_slice %869 {offsets = [0, 64], sizes = [8, 32], strides = [1, 1]} : vector<8x96xf32> to vector<8x32xf32>
    %873 = arith.mulf %871, %861 : vector<8x32xf32>
    %874 = vector.extract_strided_slice %860 {offsets = [0, 96], sizes = [8, 32], strides = [1, 1]} : vector<8x128xf32> to vector<8x32xf32>
    %875 = math.tanh %874 : vector<8x32xf32>
    %876 = arith.mulf %870, %875 : vector<8x32xf32>
    %877 = arith.addf %873, %876 : vector<8x32xf32>
    %878 = math.tanh %877 : vector<8x32xf32>
    %879 = arith.mulf %872, %878 : vector<8x32xf32>
    %880 = vector.extract_strided_slice %856 {offsets = [0, 128], sizes = [8, 128], strides = [1, 1]} : vector<8x256xf32> to vector<8x128xf32>
    %c2_311 = arith.constant 2 : index
    %c0_312 = arith.constant 0 : index
    %c128_313 = arith.constant 128 : index
    %881 = vector.load %arg11[%c2_311, %c0_312, %c128_313] : memref<8x8x256xf32, #tpu.memory_space<vmem>>, vector<1x8x128xf32>
    %882 = vector.shape_cast %881 : vector<1x8x128xf32> to vector<8x128xf32>
    %883 = arith.addf %880, %882 : vector<8x128xf32>
    %884 = vector.extract_strided_slice %855 {offsets = [0, 32], sizes = [8, 32], strides = [1, 1]} : vector<8x64xf32> to vector<8x32xf32>
    %885 = vector.extract_strided_slice %883 {offsets = [0, 0], sizes = [8, 96], strides = [1, 1]} : vector<8x128xf32> to vector<8x96xf32>
    %cst_314 = arith.constant 5.000000e-01 : f32
    %886 = vector.broadcast %cst_314 : f32 to vector<8x96xf32>
    %887 = arith.mulf %886, %885 : vector<8x96xf32>
    %888 = math.tanh %887 : vector<8x96xf32>
    %cst_315 = arith.constant 5.000000e-01 : f32
    %889 = vector.broadcast %cst_315 : f32 to vector<8x96xf32>
    %890 = arith.mulf %889, %888 : vector<8x96xf32>
    %cst_316 = arith.constant 5.000000e-01 : f32
    %891 = vector.broadcast %cst_316 : f32 to vector<8x96xf32>
    %892 = arith.addf %890, %891 : vector<8x96xf32>
    %893 = vector.extract_strided_slice %892 {offsets = [0, 0], sizes = [8, 32], strides = [1, 1]} : vector<8x96xf32> to vector<8x32xf32>
    %894 = vector.extract_strided_slice %892 {offsets = [0, 32], sizes = [8, 32], strides = [1, 1]} : vector<8x96xf32> to vector<8x32xf32>
    %895 = vector.extract_strided_slice %892 {offsets = [0, 64], sizes = [8, 32], strides = [1, 1]} : vector<8x96xf32> to vector<8x32xf32>
    %896 = arith.mulf %894, %884 : vector<8x32xf32>
    %897 = vector.extract_strided_slice %883 {offsets = [0, 96], sizes = [8, 32], strides = [1, 1]} : vector<8x128xf32> to vector<8x32xf32>
    %898 = math.tanh %897 : vector<8x32xf32>
    %899 = arith.mulf %893, %898 : vector<8x32xf32>
    %900 = arith.addf %896, %899 : vector<8x32xf32>
    %901 = math.tanh %900 : vector<8x32xf32>
    %902 = arith.mulf %895, %901 : vector<8x32xf32>
    %903 = vector.extract_strided_slice %854 {offsets = [0, 0], sizes = [8, 32], strides = [1, 1]} : vector<8x64xf32> to vector<8x32xf32>
    %904 = arith.select %23, %879, %903 : vector<8x32xi1>, vector<8x32xf32>
    %905 = vector.extract_strided_slice %855 {offsets = [0, 0], sizes = [8, 32], strides = [1, 1]} : vector<8x64xf32> to vector<8x32xf32>
    %906 = arith.select %23, %877, %905 : vector<8x32xi1>, vector<8x32xf32>
    %907 = vector.extract_strided_slice %854 {offsets = [0, 32], sizes = [8, 32], strides = [1, 1]} : vector<8x64xf32> to vector<8x32xf32>
    %908 = arith.select %11, %902, %907 : vector<8x32xi1>, vector<8x32xf32>
    %909 = vector.extract_strided_slice %855 {offsets = [0, 32], sizes = [8, 32], strides = [1, 1]} : vector<8x64xf32> to vector<8x32xf32>
    %910 = arith.select %11, %900, %909 : vector<8x32xi1>, vector<8x32xf32>
    %911 = tpu.concatenate %904, %908 in 1 : vector<8x32xf32>, vector<8x32xf32> -> vector<8x64xf32>
    %912 = tpu.concatenate %906, %910 in 1 : vector<8x32xf32>, vector<8x32xf32> -> vector<8x64xf32>
    %cst_317 = arith.constant dense<0.000000e+00> : vector<8x256xf32>
    %913 = tpu.matmul %911, %566, %cst_317 {dimension_numbers = #tpu.dot_dimension_numbers<[1], [0], [0], [1], [0, 0, 1, 1], [], []>} : vector<8x64xf32>, vector<64x256xf32>, vector<8x256xf32> -> vector<8x256xf32>
    %914 = vector.extract_strided_slice %913 {offsets = [0, 0], sizes = [8, 128], strides = [1, 1]} : vector<8x256xf32> to vector<8x128xf32>
    %c6_318 = arith.constant 6 : index
    %c0_319 = arith.constant 0 : index
    %c0_320 = arith.constant 0 : index
    %915 = vector.load %arg11[%c6_318, %c0_319, %c0_320] : memref<8x8x256xf32, #tpu.memory_space<vmem>>, vector<1x8x128xf32>
    %916 = vector.shape_cast %915 : vector<1x8x128xf32> to vector<8x128xf32>
    %917 = arith.addf %914, %916 : vector<8x128xf32>
    %918 = vector.extract_strided_slice %912 {offsets = [0, 0], sizes = [8, 32], strides = [1, 1]} : vector<8x64xf32> to vector<8x32xf32>
    %919 = vector.extract_strided_slice %917 {offsets = [0, 0], sizes = [8, 96], strides = [1, 1]} : vector<8x128xf32> to vector<8x96xf32>
    %cst_321 = arith.constant 5.000000e-01 : f32
    %920 = vector.broadcast %cst_321 : f32 to vector<8x96xf32>
    %921 = arith.mulf %920, %919 : vector<8x96xf32>
    %922 = math.tanh %921 : vector<8x96xf32>
    %cst_322 = arith.constant 5.000000e-01 : f32
    %923 = vector.broadcast %cst_322 : f32 to vector<8x96xf32>
    %924 = arith.mulf %923, %922 : vector<8x96xf32>
    %cst_323 = arith.constant 5.000000e-01 : f32
    %925 = vector.broadcast %cst_323 : f32 to vector<8x96xf32>
    %926 = arith.addf %924, %925 : vector<8x96xf32>
    %927 = vector.extract_strided_slice %926 {offsets = [0, 0], sizes = [8, 32], strides = [1, 1]} : vector<8x96xf32> to vector<8x32xf32>
    %928 = vector.extract_strided_slice %926 {offsets = [0, 32], sizes = [8, 32], strides = [1, 1]} : vector<8x96xf32> to vector<8x32xf32>
    %929 = vector.extract_strided_slice %926 {offsets = [0, 64], sizes = [8, 32], strides = [1, 1]} : vector<8x96xf32> to vector<8x32xf32>
    %930 = arith.mulf %928, %918 : vector<8x32xf32>
    %931 = vector.extract_strided_slice %917 {offsets = [0, 96], sizes = [8, 32], strides = [1, 1]} : vector<8x128xf32> to vector<8x32xf32>
    %932 = math.tanh %931 : vector<8x32xf32>
    %933 = arith.mulf %927, %932 : vector<8x32xf32>
    %934 = arith.addf %930, %933 : vector<8x32xf32>
    %935 = math.tanh %934 : vector<8x32xf32>
    %936 = arith.mulf %929, %935 : vector<8x32xf32>
    %937 = vector.extract_strided_slice %913 {offsets = [0, 128], sizes = [8, 128], strides = [1, 1]} : vector<8x256xf32> to vector<8x128xf32>
    %c1_324 = arith.constant 1 : index
    %c0_325 = arith.constant 0 : index
    %c128_326 = arith.constant 128 : index
    %938 = vector.load %arg11[%c1_324, %c0_325, %c128_326] : memref<8x8x256xf32, #tpu.memory_space<vmem>>, vector<1x8x128xf32>
    %939 = vector.shape_cast %938 : vector<1x8x128xf32> to vector<8x128xf32>
    %940 = arith.addf %937, %939 : vector<8x128xf32>
    %941 = vector.extract_strided_slice %912 {offsets = [0, 32], sizes = [8, 32], strides = [1, 1]} : vector<8x64xf32> to vector<8x32xf32>
    %942 = vector.extract_strided_slice %940 {offsets = [0, 0], sizes = [8, 96], strides = [1, 1]} : vector<8x128xf32> to vector<8x96xf32>
    %cst_327 = arith.constant 5.000000e-01 : f32
    %943 = vector.broadcast %cst_327 : f32 to vector<8x96xf32>
    %944 = arith.mulf %943, %942 : vector<8x96xf32>
    %945 = math.tanh %944 : vector<8x96xf32>
    %cst_328 = arith.constant 5.000000e-01 : f32
    %946 = vector.broadcast %cst_328 : f32 to vector<8x96xf32>
    %947 = arith.mulf %946, %945 : vector<8x96xf32>
    %cst_329 = arith.constant 5.000000e-01 : f32
    %948 = vector.broadcast %cst_329 : f32 to vector<8x96xf32>
    %949 = arith.addf %947, %948 : vector<8x96xf32>
    %950 = vector.extract_strided_slice %949 {offsets = [0, 0], sizes = [8, 32], strides = [1, 1]} : vector<8x96xf32> to vector<8x32xf32>
    %951 = vector.extract_strided_slice %949 {offsets = [0, 32], sizes = [8, 32], strides = [1, 1]} : vector<8x96xf32> to vector<8x32xf32>
    %952 = vector.extract_strided_slice %949 {offsets = [0, 64], sizes = [8, 32], strides = [1, 1]} : vector<8x96xf32> to vector<8x32xf32>
    %953 = arith.mulf %951, %941 : vector<8x32xf32>
    %954 = vector.extract_strided_slice %940 {offsets = [0, 96], sizes = [8, 32], strides = [1, 1]} : vector<8x128xf32> to vector<8x32xf32>
    %955 = math.tanh %954 : vector<8x32xf32>
    %956 = arith.mulf %950, %955 : vector<8x32xf32>
    %957 = arith.addf %953, %956 : vector<8x32xf32>
    %958 = math.tanh %957 : vector<8x32xf32>
    %959 = arith.mulf %952, %958 : vector<8x32xf32>
    %960 = vector.extract_strided_slice %911 {offsets = [0, 0], sizes = [8, 32], strides = [1, 1]} : vector<8x64xf32> to vector<8x32xf32>
    %961 = arith.select %27, %936, %960 : vector<8x32xi1>, vector<8x32xf32>
    %962 = vector.extract_strided_slice %912 {offsets = [0, 0], sizes = [8, 32], strides = [1, 1]} : vector<8x64xf32> to vector<8x32xf32>
    %963 = arith.select %27, %934, %962 : vector<8x32xi1>, vector<8x32xf32>
    %964 = vector.extract_strided_slice %911 {offsets = [0, 32], sizes = [8, 32], strides = [1, 1]} : vector<8x64xf32> to vector<8x32xf32>
    %965 = arith.select %7, %959, %964 : vector<8x32xi1>, vector<8x32xf32>
    %966 = vector.extract_strided_slice %912 {offsets = [0, 32], sizes = [8, 32], strides = [1, 1]} : vector<8x64xf32> to vector<8x32xf32>
    %967 = arith.select %7, %957, %966 : vector<8x32xi1>, vector<8x32xf32>
    %968 = tpu.concatenate %961, %965 in 1 : vector<8x32xf32>, vector<8x32xf32> -> vector<8x64xf32>
    %969 = tpu.concatenate %963, %967 in 1 : vector<8x32xf32>, vector<8x32xf32> -> vector<8x64xf32>
    %cst_330 = arith.constant dense<0.000000e+00> : vector<8x256xf32>
    %970 = tpu.matmul %968, %566, %cst_330 {dimension_numbers = #tpu.dot_dimension_numbers<[1], [0], [0], [1], [0, 0, 1, 1], [], []>} : vector<8x64xf32>, vector<64x256xf32>, vector<8x256xf32> -> vector<8x256xf32>
    %971 = vector.extract_strided_slice %970 {offsets = [0, 0], sizes = [8, 128], strides = [1, 1]} : vector<8x256xf32> to vector<8x128xf32>
    %c7_331 = arith.constant 7 : index
    %c0_332 = arith.constant 0 : index
    %c0_333 = arith.constant 0 : index
    %972 = vector.load %arg11[%c7_331, %c0_332, %c0_333] : memref<8x8x256xf32, #tpu.memory_space<vmem>>, vector<1x8x128xf32>
    %973 = vector.shape_cast %972 : vector<1x8x128xf32> to vector<8x128xf32>
    %974 = arith.addf %971, %973 : vector<8x128xf32>
    %975 = vector.extract_strided_slice %969 {offsets = [0, 0], sizes = [8, 32], strides = [1, 1]} : vector<8x64xf32> to vector<8x32xf32>
    %976 = vector.extract_strided_slice %974 {offsets = [0, 0], sizes = [8, 96], strides = [1, 1]} : vector<8x128xf32> to vector<8x96xf32>
    %cst_334 = arith.constant 5.000000e-01 : f32
    %977 = vector.broadcast %cst_334 : f32 to vector<8x96xf32>
    %978 = arith.mulf %977, %976 : vector<8x96xf32>
    %979 = math.tanh %978 : vector<8x96xf32>
    %cst_335 = arith.constant 5.000000e-01 : f32
    %980 = vector.broadcast %cst_335 : f32 to vector<8x96xf32>
    %981 = arith.mulf %980, %979 : vector<8x96xf32>
    %cst_336 = arith.constant 5.000000e-01 : f32
    %982 = vector.broadcast %cst_336 : f32 to vector<8x96xf32>
    %983 = arith.addf %981, %982 : vector<8x96xf32>
    %984 = vector.extract_strided_slice %983 {offsets = [0, 0], sizes = [8, 32], strides = [1, 1]} : vector<8x96xf32> to vector<8x32xf32>
    %985 = vector.extract_strided_slice %983 {offsets = [0, 32], sizes = [8, 32], strides = [1, 1]} : vector<8x96xf32> to vector<8x32xf32>
    %986 = vector.extract_strided_slice %983 {offsets = [0, 64], sizes = [8, 32], strides = [1, 1]} : vector<8x96xf32> to vector<8x32xf32>
    %987 = arith.mulf %985, %975 : vector<8x32xf32>
    %988 = vector.extract_strided_slice %974 {offsets = [0, 96], sizes = [8, 32], strides = [1, 1]} : vector<8x128xf32> to vector<8x32xf32>
    %989 = math.tanh %988 : vector<8x32xf32>
    %990 = arith.mulf %984, %989 : vector<8x32xf32>
    %991 = arith.addf %987, %990 : vector<8x32xf32>
    %992 = math.tanh %991 : vector<8x32xf32>
    %993 = arith.mulf %986, %992 : vector<8x32xf32>
    %994 = vector.extract_strided_slice %970 {offsets = [0, 128], sizes = [8, 128], strides = [1, 1]} : vector<8x256xf32> to vector<8x128xf32>
    %c0_337 = arith.constant 0 : index
    %c0_338 = arith.constant 0 : index
    %c128_339 = arith.constant 128 : index
    %995 = vector.load %arg11[%c0_337, %c0_338, %c128_339] : memref<8x8x256xf32, #tpu.memory_space<vmem>>, vector<1x8x128xf32>
    %996 = vector.shape_cast %995 : vector<1x8x128xf32> to vector<8x128xf32>
    %997 = arith.addf %994, %996 : vector<8x128xf32>
    %998 = vector.extract_strided_slice %969 {offsets = [0, 32], sizes = [8, 32], strides = [1, 1]} : vector<8x64xf32> to vector<8x32xf32>
    %999 = vector.extract_strided_slice %997 {offsets = [0, 0], sizes = [8, 96], strides = [1, 1]} : vector<8x128xf32> to vector<8x96xf32>
    %cst_340 = arith.constant 5.000000e-01 : f32
    %1000 = vector.broadcast %cst_340 : f32 to vector<8x96xf32>
    %1001 = arith.mulf %1000, %999 : vector<8x96xf32>
    %1002 = math.tanh %1001 : vector<8x96xf32>
    %cst_341 = arith.constant 5.000000e-01 : f32
    %1003 = vector.broadcast %cst_341 : f32 to vector<8x96xf32>
    %1004 = arith.mulf %1003, %1002 : vector<8x96xf32>
    %cst_342 = arith.constant 5.000000e-01 : f32
    %1005 = vector.broadcast %cst_342 : f32 to vector<8x96xf32>
    %1006 = arith.addf %1004, %1005 : vector<8x96xf32>
    %1007 = vector.extract_strided_slice %1006 {offsets = [0, 0], sizes = [8, 32], strides = [1, 1]} : vector<8x96xf32> to vector<8x32xf32>
    %1008 = vector.extract_strided_slice %1006 {offsets = [0, 32], sizes = [8, 32], strides = [1, 1]} : vector<8x96xf32> to vector<8x32xf32>
    %1009 = vector.extract_strided_slice %1006 {offsets = [0, 64], sizes = [8, 32], strides = [1, 1]} : vector<8x96xf32> to vector<8x32xf32>
    %1010 = arith.mulf %1008, %998 : vector<8x32xf32>
    %1011 = vector.extract_strided_slice %997 {offsets = [0, 96], sizes = [8, 32], strides = [1, 1]} : vector<8x128xf32> to vector<8x32xf32>
    %1012 = math.tanh %1011 : vector<8x32xf32>
    %1013 = arith.mulf %1007, %1012 : vector<8x32xf32>
    %1014 = arith.addf %1010, %1013 : vector<8x32xf32>
    %1015 = math.tanh %1014 : vector<8x32xf32>
    %1016 = arith.mulf %1009, %1015 : vector<8x32xf32>
    %1017 = vector.extract_strided_slice %968 {offsets = [0, 0], sizes = [8, 32], strides = [1, 1]} : vector<8x64xf32> to vector<8x32xf32>
    %1018 = arith.select %31, %993, %1017 : vector<8x32xi1>, vector<8x32xf32>
    %1019 = vector.extract_strided_slice %968 {offsets = [0, 32], sizes = [8, 32], strides = [1, 1]} : vector<8x64xf32> to vector<8x32xf32>
    %1020 = arith.select %3, %1016, %1019 : vector<8x32xi1>, vector<8x32xf32>
    %1021 = tpu.concatenate %1018, %1020 in 1 : vector<8x32xf32>, vector<8x32xf32> -> vector<8x64xf32>
    %c0_343 = arith.constant 0 : index
    %c0_344 = arith.constant 0 : index
    %1022 = vector.load %arg4[%c0_343, %c0_344] : memref<64x12xf32, #tpu.memory_space<vmem>>, vector<64x12xf32>
    %cst_345 = arith.constant dense<0.000000e+00> : vector<8x12xf32>
    %1023 = tpu.matmul %1021, %1022, %cst_345 {dimension_numbers = #tpu.dot_dimension_numbers<[1], [0], [0], [1], [0, 0, 1, 1], [], []>} : vector<8x64xf32>, vector<64x12xf32>, vector<8x12xf32> -> vector<8x12xf32>
    %c0_346 = arith.constant 0 : index
    %c0_347 = arith.constant 0 : index
    %1024 = vector.load %arg5[%c0_346, %c0_347] : memref<1x12xf32, #tpu.memory_space<vmem>>, vector<1x12xf32>
    %1025 = vector.broadcast %1024 : vector<1x12xf32> to vector<8x12xf32>
    %1026 = arith.addf %1023, %1025 : vector<8x12xf32>
    %1027 = vector.extract_strided_slice %1026 {offsets = [0, 0], sizes = [8, 8], strides = [1, 1]} : vector<8x12xf32> to vector<8x8xf32>
    %cst_348 = arith.constant dense<0xFF800000> : vector<8xf32>
    %1028 = vector.multi_reduction <maximumf>, %1027, %cst_348 [1] : vector<8x8xf32> to vector<8xf32>
    %1029 = vector.shape_cast %1028 : vector<8xf32> to vector<8x1xf32>
    %1030 = vector.broadcast %1029 : vector<8x1xf32> to vector<8x8xf32>
    %1031 = arith.subf %1027, %1030 : vector<8x8xf32>
    %1032 = math.exp %1031 : vector<8x8xf32>
    %cst_349 = arith.constant dense<0.000000e+00> : vector<8xf32>
    %1033 = vector.multi_reduction <add>, %1032, %cst_349 [1] : vector<8x8xf32> to vector<8xf32>
    %1034 = vector.shape_cast %1033 : vector<8xf32> to vector<8x1xf32>
    %1035 = math.log %1034 : vector<8x1xf32>
    %1036 = vector.broadcast %1035 : vector<8x1xf32> to vector<8x8xf32>
    %1037 = arith.subf %1031, %1036 : vector<8x8xf32>
    %1038 = vector.extract_strided_slice %1026 {offsets = [0, 8], sizes = [8, 4], strides = [1, 1]} : vector<8x12xf32> to vector<8x4xf32>
    %cst_350 = arith.constant dense<0xFF800000> : vector<8xf32>
    %1039 = vector.multi_reduction <maximumf>, %1038, %cst_350 [1] : vector<8x4xf32> to vector<8xf32>
    %1040 = vector.shape_cast %1039 : vector<8xf32> to vector<8x1xf32>
    %1041 = vector.broadcast %1040 : vector<8x1xf32> to vector<8x4xf32>
    %1042 = arith.subf %1038, %1041 : vector<8x4xf32>
    %1043 = math.exp %1042 : vector<8x4xf32>
    %cst_351 = arith.constant dense<0.000000e+00> : vector<8xf32>
    %1044 = vector.multi_reduction <add>, %1043, %cst_351 [1] : vector<8x4xf32> to vector<8xf32>
    %1045 = vector.shape_cast %1044 : vector<8xf32> to vector<8x1xf32>
    %1046 = math.log %1045 : vector<8x1xf32>
    %1047 = vector.broadcast %1046 : vector<8x1xf32> to vector<8x4xf32>
    %1048 = arith.subf %1042, %1047 : vector<8x4xf32>
    %1049 = tpu.concatenate %1021, %1037, %1048 in 1 : vector<8x64xf32>, vector<8x8xf32>, vector<8x4xf32> -> vector<8x76xf32>
    %c0_352 = arith.constant 0 : index
    %c0_353 = arith.constant 0 : index
    %1050 = vector.load %arg10[%c0_352, %c0_353] : memref<8x76xf32, #tpu.memory_space<vmem>>, vector<8x76xf32>
    tpu.vector_store %arg10[%c0_352, %c0_353], %1049 {strides = array<i32>} : memref<8x76xf32, #tpu.memory_space<vmem>>, vector<8x76xf32>,
    return
  }
}

</mosaic_0001>

<bundles_post_ra>
// kernel: bilstm_multitask_forward.1
= control target key start
LH: loop header
LB: loop body
LE: loop exit
PB: predicated region body
PF: predicated region fallthrough
CT: control target
= control target key end

     0   :  { %vm80_vm0 = vcmask 261120   ;;  %vm221_vm1 = vcmask 523264   ;;  %s3018_s18 = smov 32   ;;  %s3019_s20 = smov 96   ;;  %vm2667_vm10 = vcmask 97344   ;;  %vm2654_vm11 = vcmask 64512   ;;  %s4427_s6 = inlined_call_operand.vmem [shape: f32[32,256], index: 6, kind: input, shape index: {}]   ;;  %s4428_s0 = inlined_call_operand.vmem [shape: f32[8,8,32], index: 0, kind: input, shape index: {}]   ;;  %s4429_s8 = inlined_call_operand.vmem [shape: f32[2,64,256], index: 8, kind: input, shape index: {}]   ;;  %s4430_s2 = inlined_call_operand.vmem [shape: f32[2,8,64], index: 2, kind: input, shape index: {}]   ;;  %s4431_s9 = inlined_call_operand.vmem [shape: f32[2,1,256], index: 9, kind: input, shape index: {}]   ;;  %s4432_s3 = inlined_call_operand.vmem [shape: f32[2,8,64], index: 3, kind: input, shape index: {}]   ;;  %s4433_s1 = inlined_call_operand.vmem [shape: f32[8,8,32], index: 1, kind: input, shape index: {}]   ;;  %s4434_s7 = inlined_call_operand.vmem [shape: f32[1,64,256], index: 7, kind: input, shape index: {}]   ;;  %s4435_s5 = inlined_call_operand.vmem [shape: f32[1,12], index: 5, kind: input, shape index: {}]   ;;  %s4436_s4 = inlined_call_operand.vmem [shape: f32[64,12], index: 4, kind: input, shape index: {}]   ;;  %s4437_s10 = inlined_call_operand.vmem [shape: f32[8,76], index: 10, kind: output, shape index: {}]  }
   0x1   :  { %v72_v0 = vld [vmem:[%s4427_s6 + $0x30] sm:$0xff]  ;;  %v70_v1 = vld [vmem:[%s4427_s6 + $0x20] sm:$0xff]  ;;  %v3092_v4 = vld [vmem:[%s4428_s0 + $0x38] sm:$0xff]  ;;  %s3020_s21 = smov 64   ;;  %vm2678_vm12 = vcmask 31744   ;;  %vm2694_vm13 = vcmask 588800  }
   0x2   :  { %2809 = vmatpush.msra.mxu1 %v72_v0  ;;  %117 = vmatpush.msra.mxu0 %v72_v0  ;;  %v68_v2 = vld [vmem:[%s4427_s6 + $0x10] sm:$0xff]  ;;  %v66_v3 = vld [vmem:[%s4427_s6] sm:$0xff]  ;;  %v73_v5 = vld [vmem:[%s4427_s6 + $0x38] sm:$0xff]  ;;  %vm2696_vm14 = vcmask 621568  }
   0x3   :  { %v58_v6 = vld [vmem:[%s4428_s0] sm:$0xff]  ;;  %v71_v7 = vld [vmem:[%s4427_s6 + $0x28] sm:$0xff]  ;;  %v69_v8 = vld [vmem:[%s4427_s6 + $0x18] sm:$0xff] }
   0x4   :  { %2810 = vmatpush.msra.mxu1 %v70_v1  ;;  %118 = vmatpush.msra.mxu0 %v70_v1  ;;  %v67_v9 = vld [vmem:[%s4427_s6 + $0x8] sm:$0xff]  ;;  %v3119_v11 = vld [vmem:[%s4429_s8 + $0x78] sm:$0xff]  ;;  %v60_v13 = vld [vmem:[%s4428_s0 + $0x10] sm:$0xff] }
   0x5   :  { %v59_v10 = vld [vmem:[%s4428_s0 + $0x8] sm:$0xff]  ;;  %253 = vmatpush.msra.mxu3 %v3119_v11  ;;  %v3138_v14 = vld [vmem:[%s4429_s8 + $0x58] sm:$0xff]  ;;  %v3148_v16 = vld [vmem:[%s4429_s8 + $0x70] sm:$0xff] }
   0x6   :  { %2811 = vmatpush.msra.mxu1 %v68_v2  ;;  %119 = vmatpush.msra.mxu0 %v68_v2  ;;  %v3124_v12 = vld [vmem:[%s4429_s8 + $0x68] sm:$0xff]  ;;  %v3156_v17 = vld [vmem:[%s4429_s8 + $0x60] sm:$0xff]  ;;  %v3161_v18 = vld [vmem:[%s4429_s8 + $0x38] sm:$0xff] }
   0x7   :  { %254 = vmatpush.msra.mxu3 %v3124_v12  ;;  %v3143_v15 = vld [vmem:[%s4429_s8 + $0x48] sm:$0xff]  ;;  %233 = vmatpush.msra.mxu2 %v3148_v16  ;;  %v61_v20 = vld [vmem:[%s4428_s0 + $0x18] sm:$0xff]  ;;  %v3184_v21 = vld [vmem:[%s4429_s8 + $0x50] sm:$0xff] }
   0x8   :  { %2812 = vmatpush.msra.mxu1 %v66_v3  ;;  %120 = vmatpush.msra.mxu0 %v66_v3  ;;  %v3170_v19 = vld [vmem:[%s4429_s8 + $0x28] sm:$0xff]  ;;  %v3189_v22 = vld [vmem:[%s4429_s8 + $0x18] sm:$0xff]  ;;  %v3194_v23 = vld [vmem:[%s4429_s8 + $0x40] sm:$0xff] }
   0x9   :  { %2716 = vmatmul.msk.f32.vlgmr.msra.gmra.mxu1 %vm80_vm0, %v3092_v4  ;;  %2709 = vmatmul.msk.f32.vlgmr.msra.gmra.mxu0 %vm80_vm0, %v58_v6  ;;  %v3202_v24 = vld [vmem:[%s4429_s8 + $0x8] sm:$0xff]  ;;  %v3207_v25 = vld [vmem:[%s4430_s2] sm:$0xff]  ;;  %v3212_v26 = vld [vmem:[%s4429_s8 + $0x30] sm:$0xff] }
   0xa   :  { %158 = vmatpush.msrb.mxu1 %v73_v5  ;;  %255 = vmatpush.msra.mxu3 %v3138_v14  ;;  %v3223_v27 = vld [vmem:[%s4429_s8 + $0x20] sm:$0xff]  ;;  %v3239_v29 = vld [vmem:[%s4429_s8 + $0x10] sm:$0xff]  ;;  %v63_v31 = vld [vmem:[%s4428_s0 + $0x28] sm:$0xff] }
   0xb   :  { %779 = vmatpush.msrb.mxu0 %v3148_v16  ;;  %234 = vmatpush.msra.mxu2 %v3156_v17  ;;  %v62_v28 = vld [vmem:[%s4428_s0 + $0x20] sm:$0xff]  ;;  %v64_v32 = vld [vmem:[%s4428_s0 + $0x30] sm:$0xff] }
   0xc   :  { %159 = vmatpush.msrb.mxu1 %v71_v7  ;;  %256 = vmatpush.msra.mxu3 %v3143_v15  ;;  %v3244_v30 = vld [vmem:[%s4429_s8] sm:$0xff] }
   0xd   :  { %780 = vmatpush.msrb.mxu0 %v3156_v17  ;;  %235 = vmatpush.msra.mxu2 %v3184_v21  ;;  %v74_v34 = vld [vmem:[%s4431_s9] sm:$0x3] }
   0xe   :  { %160 = vmatpush.msrb.mxu1 %v69_v8  ;;  %257 = vmatpush.msra.mxu3 %v3161_v18  ;;  %v77_v35 = vperm.slane %v74_v34, 1  ;;  %v3333_v53 = vperm.slane %v74_v34, 0 }
   0xf   :  { %781 = vmatpush.msrb.mxu0 %v3184_v21  ;;  %236 = vmatpush.msra.mxu2 %v3194_v23 }
  0x10   :  { %161 = vmatpush.msrb.mxu1 %v67_v9  ;;  %258 = vmatpush.msra.mxu3 %v3170_v19  ;;  %v3342_v9 = vld [vmem:[%s4432_s3] sm:$0xff] }
  0x11   :  { %2717 = vmatmul.msk.f32.vlgmr.msrb.gmra.mxu1 %vm80_vm0, %v58_v6  ;;  %2710 = vmatmul.msk.f32.gmra.mxu0 %vm80_vm0, %v59_v10 }
  0x12   :  { %799 = vmatpush.msra.mxu1 %v3119_v11  ;;  %259 = vmatpush.msra.mxu3 %v3189_v22 }
  0x13   :  { %237 = vmatpush.msra.mxu2 %v3212_v26  ;;  %782 = vmatpush.msrb.mxu0 %v3194_v23 }
  0x14   :  { %800 = vmatpush.msra.mxu1 %v3124_v12  ;;  %260 = vmatpush.msra.mxu3 %v3202_v24 }
  0x15   :  { %2726 = vmatmul.msk.f32.vlgmr.msra.gmra.mxu3 %vm221_vm1, %v3207_v25  ;;  %238 = vmatpush.msra.mxu2 %v3223_v27 }
  0x16   :  { %801 = vmatpush.msra.mxu1 %v3138_v14  ;;  %388 = vmatpush.msrb.mxu3 %v3119_v11 }
  0x17   :  { %239 = vmatpush.msra.mxu2 %v3239_v29  ;;  %783 = vmatpush.msrb.mxu0 %v3212_v26 }
  0x18   :  { %802 = vmatpush.msra.mxu1 %v3143_v15  ;;  %389 = vmatpush.msrb.mxu3 %v3124_v12 }
  0x19   :  { %2718 = vmatmul.msk.f32.gmra.mxu1 %vm80_vm0, %v59_v10  ;;  %2711 = vmatmul.msk.f32.gmra.mxu0 %vm80_vm0, %v60_v13 }
  0x1a   :  { %803 = vmatpush.msra.mxu1 %v3161_v18  ;;  %390 = vmatpush.msrb.mxu3 %v3138_v14 }
  0x1b   :  { %240 = vmatpush.msra.mxu2 %v3244_v30  ;;  %784 = vmatpush.msrb.mxu0 %v3223_v27 }
  0x1c   :  { %804 = vmatpush.msra.mxu1 %v3170_v19  ;;  %391 = vmatpush.msrb.mxu3 %v3143_v15 }
  0x1d   :  { %2725 = vmatmul.msk.f32.vlgmr.msra.gmra.mxu2 %vm221_vm1, %v3207_v25  ;;  %785 = vmatpush.msrb.mxu0 %v3239_v29 }
  0x1e   :  { %805 = vmatpush.msra.mxu1 %v3189_v22  ;;  %368 = vmatpush.msrb.mxu2 %v3148_v16 }
  0x1f   :  { %392 = vmatpush.msrb.mxu3 %v3161_v18  ;;  %786 = vmatpush.msrb.mxu0 %v3244_v30 }
  0x20   :  { %806 = vmatpush.msra.mxu1 %v3202_v24  ;;  %369 = vmatpush.msrb.mxu2 %v3156_v17 }
  0x21   :  { %2719 = vmatmul.msk.f32.gmra.mxu1 %vm80_vm0, %v60_v13  ;;  %2712 = vmatmul.msk.f32.gmra.mxu0 %vm80_vm0, %v61_v20 }
  0x22   :  { %1069 = vmatpush.msrb.mxu1 %v3119_v11  ;;  %393 = vmatpush.msrb.mxu3 %v3170_v19 }
  0x23   :  { %370 = vmatpush.msrb.mxu2 %v3184_v21  ;;  %1049 = vmatpush.msra.mxu0 %v3148_v16 }
  0x24   :  { %1070 = vmatpush.msrb.mxu1 %v3124_v12  ;;  %394 = vmatpush.msrb.mxu3 %v3189_v22 }
  0x25   :  { %371 = vmatpush.msrb.mxu2 %v3194_v23  ;;  %1050 = vmatpush.msra.mxu0 %v3156_v17 }
  0x26   :  { %1071 = vmatpush.msrb.mxu1 %v3138_v14  ;;  %395 = vmatpush.msrb.mxu3 %v3202_v24 }
  0x27   :  { %372 = vmatpush.msrb.mxu2 %v3212_v26  ;;  %1051 = vmatpush.msra.mxu0 %v3184_v21 }
  0x28   :  { %525 = vmatpush.msra.mxu3 %v3119_v11  ;;  %1072 = vmatpush.msrb.mxu1 %v3143_v15 }
  0x29   :  { %2720 = vmatmul.msk.f32.gmra.mxu1 %vm80_vm0, %v61_v20  ;;  %2713 = vmatmul.msk.f32.gmra.mxu0 %vm80_vm0, %v62_v28 }
  0x2a   :  { %526 = vmatpush.msra.mxu3 %v3124_v12  ;;  %373 = vmatpush.msrb.mxu2 %v3223_v27 }
  0x2b   :  { %1073 = vmatpush.msrb.mxu1 %v3161_v18  ;;  %1052 = vmatpush.msra.mxu0 %v3194_v23 }
  0x2c   :  { %527 = vmatpush.msra.mxu3 %v3138_v14  ;;  %374 = vmatpush.msrb.mxu2 %v3239_v29 }
  0x2d   :  { %1074 = vmatpush.msrb.mxu1 %v3170_v19  ;;  %1053 = vmatpush.msra.mxu0 %v3212_v26 }
  0x2e   :  { %528 = vmatpush.msra.mxu3 %v3143_v15  ;;  %375 = vmatpush.msrb.mxu2 %v3244_v30 }
  0x2f   :  { %1075 = vmatpush.msrb.mxu1 %v3189_v22  ;;  %1054 = vmatpush.msra.mxu0 %v3223_v27 }
  0x30   :  { %505 = vmatpush.msra.mxu2 %v3148_v16  ;;  %529 = vmatpush.msra.mxu3 %v3161_v18 }
  0x31   :  { %2721 = vmatmul.msk.f32.gmra.mxu1 %vm80_vm0, %v62_v28  ;;  %2714 = vmatmul.msk.f32.gmra.mxu0 %vm80_vm0, %v63_v31 }
  0x32   :  { %506 = vmatpush.msra.mxu2 %v3156_v17  ;;  %530 = vmatpush.msra.mxu3 %v3170_v19 }
  0x33   :  { %1076 = vmatpush.msrb.mxu1 %v3202_v24  ;;  %1055 = vmatpush.msra.mxu0 %v3239_v29 }
  0x34   :  { %507 = vmatpush.msra.mxu2 %v3184_v21  ;;  %531 = vmatpush.msra.mxu3 %v3189_v22 }
  0x35   :  { %1056 = vmatpush.msra.mxu0 %v3244_v30 }
  0x36   :  { %508 = vmatpush.msra.mxu2 %v3194_v23  ;;  %532 = vmatpush.msra.mxu3 %v3202_v24 }
  0x38   :  { %509 = vmatpush.msra.mxu2 %v3212_v26 }
  0x39   :  { %2722 = vmatmul.msk.f32.gmra.mxu1 %vm80_vm0, %v63_v31  ;;  %2715 = vmatmul.msk.f32.gmra.mxu0 %vm80_vm0, %v64_v32 }
  0x3a   :  { %510 = vmatpush.msra.mxu2 %v3223_v27 }
  0x3c   :  { %511 = vmatpush.msra.mxu2 %v3239_v29 }
  0x3e   :  { %512 = vmatpush.msra.mxu2 %v3244_v30 }
  0x41   :  { %2723 = vmatmul.msk.f32.gmra.mxu1 %vm80_vm0, %v64_v32 }
  0x49   :  { %2724 = vmatmul.msk.f32.gmra.mxu1 %vm80_vm0, %v3092_v4 }
  0x86   :  { %v3314_v33 = vpop.f32.mrf.mxu1  ;;  %v122_v52 = vpop.f32.mrf.mxu0 }
  0x87   :  { %v123_v56 = vadd.f32 %v122_v52, %v3333_v53  ;;  %v3371_v52 = vld [vmem:[%s4433_s1] sm:$0xff] }
  0x88   :  { %vm36_vm3 = vcmp.gt.f32.partialorder %v3371_v52, 0.0  ;;  %v2817_v52 = vld [vmem:[%s4435_s5] ss:$0 sm:$0xff] }
  0x8e   :  { %v163_v36 = vpop.f32.mrf.mxu1 }
  0x8f   :  { %v3319_v37 = vadd.f32 %v163_v36, %v77_v35 }
  0x96   :  { %v166_v38 = vpop.f32.mrf.mxu1 }
  0x97   :  { %v3321_v39 = vadd.f32 %v166_v38, %v77_v35 }
  0x98   :  { %v262_v50 = vpop.f32.mrf.mxu3 }
  0x9e   :  { %v169_v40 = vpop.f32.mrf.mxu1 }
  0x9f   :  { %v3323_v41 = vadd.f32 %v169_v40, %v77_v35 }
  0xa0   :  { %v242_v57 = vpop.f32.mrf.mxu2 }
  0xa1   :  { %v266_v58 = vadd.f32 %v242_v57, %v123_v56 }
  0xa3   :  { %v267_v62 = vmul.f32 0.5, %v266_v58 }
  0xa6   :  { %v172_v42 = vpop.f32.mrf.mxu1 }
  0xa7   :  { %v3325_v43 = vadd.f32 %v172_v42, %v77_v35 }
  0xae   :  { %v175_v44 = vpop.f32.mrf.mxu1 }
  0xaf   :  { %v3327_v45 = vadd.f32 %v175_v44, %v77_v35 }
  0xb6   :  { %v178_v46 = vpop.f32.mrf.mxu1 }
  0xb7   :  { %v3329_v47 = vadd.f32 %v178_v46, %v77_v35  ;;  %v3361_v46 = vld [vmem:[%s4433_s1 + $0x38] sm:$0xff] }
  0xb8   :  { %vm57_vm2 = vcmp.gt.f32.partialorder %v3361_v46, 0.0 }
  0xbe   :  { %v181_v48 = vpop.f32.mrf.mxu1 }
  0xbf   :  { %v3331_v49 = vadd.f32 %v181_v48, %v77_v35 }
  0xc6   :  { %v184_v51 = vpop.f32.mrf.mxu1 }
  0xc7   :  { %v185_v54 = vadd.f32 %v184_v51, %v77_v35 }
  0xc9   :  { %v295_v55 = vadd.f32 %v262_v50, %v185_v54 }
  0xcb   :  { %2818 = vtanh.f32 %v295_v55  ;;  %v296_v61 = vmul.f32 0.5, %v295_v55 }
  0xcc   :  { %2820 = vtanh.f32 %v266_v58 }
  0xcd   :  { %2822 = vtanh.f32 %v296_v61 }
  0xce   :  { %2824 = vtanh.f32 %v267_v62 }
  0xd1   :  { %v2819_v59 = vpop.eup %2818 }
  0xd2   :  { %303 = vrot.lane.b32.xlu0 %v2819_v59, %s3018_s18  ;;  %v2821_v60 = vpop.eup %2820 }
  0xd3   :  { %v2823_v63 = vpop.eup %2822 }
  0xd4   :  { %v298_v0 = vmul.f32 0.5, %v2823_v63  ;;  %v2825_v2 = vpop.eup %2824 }
  0xd5   :  { %v269_v5 = vmul.f32 0.5, %v2825_v2 }
  0xd6   :  { %v299_v1 = vadd.f32 0.5, %v298_v0 }
  0xd7   :  { %v270_v6 = vadd.f32 0.5, %v269_v5 }
  0xd8   :  { %v300_v10 = vmul.f32 %v299_v1, %v3342_v9 }
  0xda   :  { %278 = vrot.lane.b32.xlu0 %v2821_v60, %s3018_s18 }
 0x144   :  { %v304_v3 = vpop.permute.xlu0 %303 }
 0x145   :  { %v306_v4 = vmul.f32 %v304_v3, %v299_v1 }
 0x147   :  { %308 = vrot.lane.b32.xlu1 %v306_v4, %s3018_s18 }
 0x14c   :  { %v279_v7 = vpop.permute.xlu0 %278 }
 0x14d   :  { %v281_v8 = vmul.f32 %v279_v7, %v270_v6 }
 0x14f   :  { %272 = vrot.lane.b32.xlu1 %v3342_v9, %s3018_s18  ;;  %283 = vrot.lane.b32.xlu2 %v281_v8, %s3018_s18 }
 0x1a9   :  { %v284_v34 = vpop.permute.xlu2 %283 }
 0x1b9   :  { %v309_v13 = vpop.permute.xlu1 %308 }
 0x1ba   :  { %v311_v20 = vadd.f32 %v309_v13, %v300_v10 }
 0x1bc   :  { %2826 = vtanh.f32 %v311_v20 }
 0x1c1   :  { %v273_v28 = vpop.permute.xlu1 %272 }
 0x1c2   :  { %v2827_v31 = vpop.eup %2826  ;;  %v275_v32 = vmul.f32 %v273_v28, %v270_v6 }
 0x1c3   :  { %314 = vrot.lane.b32.xlu2 %v2827_v31, %s3018_s18 }
 0x1c4   :  { %v286_v35 = vadd.f32 %v284_v34, %v275_v32 }
 0x1c6   :  { %2828 = vtanh.f32 %v286_v35 }
 0x1cb   :  { %332 = vrot.lane.b32.xlu2 %v3207_v25, %s3019_s20 }
 0x1cc   :  { %v2829_v36 = vpop.eup %2828 }
 0x1cd   :  { %289 = vrot.lane.b32.xlu0 %v2829_v36, %s3018_s18 }
 0x1d3   :  { %337 = vrot.lane.b32.xlu2 %v311_v20, %s3019_s20 }
 0x1db   :  { %324 = vrot.lane.b32.xlu2 %v286_v35, %s3019_s20 }
 0x21d   :  { %v315_v38 = vpop.permute.xlu2 %314 }
 0x21e   :  { %v317_v40 = vmul.f32 %v315_v38, %v299_v1  ;;  %v125_v1 = vpop.f32.mrf.mxu0 }
 0x21f   :  { %v126_v3 = vadd.f32 %v125_v1, %v3333_v53  ;;  %v3442_v1 = vld [vmem:[%s4433_s1 + $0x8] sm:$0xff] }
 0x220   :  { %329 = vrot.lane.b32.xlu1 %v317_v40, %s3020_s21  ;;  %vm39_vm5 = vcmp.gt.f32.partialorder %v3442_v1, 0.0 }
 0x225   :  { %v333_v48 = vpop.permute.xlu2 %332 }
 0x22d   :  { %v338_v56 = vpop.permute.xlu2 %337 }
 0x23f   :  { %v290_v42 = vpop.permute.xlu0 %289 }
 0x240   :  { %v292_v44 = vmul.f32 %v290_v42, %v270_v6 }
 0x242   :  { %319 = vrot.lane.b32.xlu0 %v292_v44, %s3020_s21 }
 0x24a   :  { %340 = vrot.lane.b32.xlu0 %v3342_v9, %s3019_s20 }
 0x292   :  { %v330_v50 = vpop.permute.xlu1 %329 }
 0x293   :  { %v335_v51 = vsel %vm57_vm2, %v330_v50, %v333_v48 }
 0x294   :  { %348 = vrot.lane.b32.xlu1 %v335_v51, %s3018_s18  ;;  %346 = vst.msk [vmem:[#allocation3 + $0x78] sm:$0xff] %vm80_vm0, %v335_v51 }
 0x2b4   :  { %v320_v54 = vpop.permute.xlu0 %319 }
 0x2b5   :  { %v322_v55 = vsel %vm36_vm3, %v320_v54, %v3207_v25  ;;  %v325_v25 = vpop.permute.xlu2 %324 }
 0x2b6   :  { %344 = vst.msk [vmem:[#allocation3] sm:$0xff] %vm80_vm0, %v322_v55  ;;  %v327_v61 = vsel %vm36_vm3, %v325_v25, %v3342_v9  ;;  %v3432_v25 = vld [vmem:[%s4433_s1 + $0x30] sm:$0xff] }
 0x2b7   :  { %vm54_vm4 = vcmp.gt.f32.partialorder %v3432_v25, 0.0 }
 0x2bc   :  { %v341_v57 = vpop.permute.xlu0 %340 }
 0x2bd   :  { %v343_v58 = vsel %vm57_vm2, %v338_v56, %v341_v57 }
 0x2be   :  { %353 = vrot.lane.b32.xlu0 %v343_v58, %s3018_s18 }
 0x306   :  { %v349_v59 = vpop.permute.xlu1 %348 }
 0x307   :  { %v3382_v60 = vsel %vm80_vm0, %v322_v55, %v349_v59 }
 0x308   :  { %2727 = vmatmul.msk.f32.vlgmr.msrb.gmra.mxu2 %vm221_vm1, %v3382_v60  ;;  %2728 = vmatmul.msk.f32.vlgmr.msrb.gmra.mxu3 %vm221_vm1, %v3382_v60 }
 0x309   :  { %642 = vmatpush.msrb.mxu2 %v3148_v16  ;;  %662 = vmatpush.msrb.mxu3 %v3119_v11 }
 0x30b   :  { %643 = vmatpush.msrb.mxu2 %v3156_v17  ;;  %663 = vmatpush.msrb.mxu3 %v3124_v12 }
 0x30d   :  { %644 = vmatpush.msrb.mxu2 %v3184_v21  ;;  %664 = vmatpush.msrb.mxu3 %v3138_v14 }
 0x30f   :  { %645 = vmatpush.msrb.mxu2 %v3194_v23  ;;  %665 = vmatpush.msrb.mxu3 %v3143_v15 }
 0x311   :  { %646 = vmatpush.msrb.mxu2 %v3212_v26  ;;  %666 = vmatpush.msrb.mxu3 %v3161_v18 }
 0x313   :  { %647 = vmatpush.msrb.mxu2 %v3223_v27  ;;  %667 = vmatpush.msrb.mxu3 %v3170_v19 }
 0x315   :  { %648 = vmatpush.msrb.mxu2 %v3239_v29  ;;  %668 = vmatpush.msrb.mxu3 %v3189_v22 }
 0x317   :  { %649 = vmatpush.msrb.mxu2 %v3244_v30  ;;  %669 = vmatpush.msrb.mxu3 %v3202_v24 }
 0x330   :  { %v354_v62 = vpop.permute.xlu0 %353 }
 0x331   :  { %v3408_v63 = vsel %vm80_vm0, %v327_v61, %v354_v62 }
 0x332   :  { %408 = vrot.lane.b32.xlu0 %v3408_v63, %s3018_s18 }
 0x38b   :  { %v397_v0 = vpop.f32.mrf.mxu3  ;;  %v377_v4 = vpop.f32.mrf.mxu2 }
 0x38c   :  { %v431_v2 = vadd.f32 %v397_v0, %v3331_v49  ;;  %v402_v5 = vadd.f32 %v377_v4, %v126_v3 }
 0x38e   :  { %2830 = vtanh.f32 %v431_v2  ;;  %v432_v8 = vmul.f32 0.5, %v431_v2  ;;  %v403_v9 = vmul.f32 0.5, %v402_v5 }
 0x38f   :  { %2832 = vtanh.f32 %v402_v5 }
 0x390   :  { %2834 = vtanh.f32 %v432_v8 }
 0x391   :  { %2836 = vtanh.f32 %v403_v9 }
 0x394   :  { %v2831_v6 = vpop.eup %2830 }
 0x395   :  { %439 = vrot.lane.b32.xlu1 %v2831_v6, %s3018_s18  ;;  %v2833_v7 = vpop.eup %2832 }
 0x396   :  { %v2835_v10 = vpop.eup %2834 }
 0x397   :  { %v434_v13 = vmul.f32 0.5, %v2835_v10  ;;  %v2837_v49 = vpop.eup %2836 }
 0x398   :  { %v405_v32 = vmul.f32 0.5, %v2837_v49  ;;  %v128_v49 = vpop.f32.mrf.mxu0 }
 0x399   :  { %v435_v20 = vadd.f32 0.5, %v434_v13 }
 0x39a   :  { %v406_v34 = vadd.f32 0.5, %v405_v32 }
 0x39b   :  { %v436_v38 = vmul.f32 %v435_v20, %v3408_v63 }
 0x39d   :  { %414 = vrot.lane.b32.xlu1 %v2833_v7, %s3018_s18 }
 0x3a4   :  { %v409_v48 = vpop.permute.xlu0 %408 }
 0x3a5   :  { %v411_v50 = vmul.f32 %v409_v48, %v406_v34 }
 0x407   :  { %v440_v28 = vpop.permute.xlu1 %439 }
 0x408   :  { %v442_v31 = vmul.f32 %v440_v28, %v435_v20 }
 0x40a   :  { %444 = vrot.lane.b32.xlu2 %v442_v31, %s3018_s18  ;;  %v129_v31 = vadd.f32 %v128_v49, %v3333_v53 }
 0x40f   :  { %v415_v35 = vpop.permute.xlu1 %414 }
 0x410   :  { %v417_v36 = vmul.f32 %v415_v35, %v406_v34 }
 0x412   :  { %419 = vrot.lane.b32.xlu1 %v417_v36, %s3018_s18 }
 0x464   :  { %v445_v40 = vpop.permute.xlu2 %444 }
 0x465   :  { %v447_v42 = vadd.f32 %v445_v40, %v436_v38 }
 0x467   :  { %2838 = vtanh.f32 %v447_v42 }
 0x46d   :  { %v2839_v44 = vpop.eup %2838 }
 0x46e   :  { %450 = vrot.lane.b32.xlu2 %v2839_v44, %s3018_s18 }
 0x476   :  { %468 = vrot.lane.b32.xlu2 %v3382_v60, %s3019_s20 }
 0x47e   :  { %473 = vrot.lane.b32.xlu2 %v447_v42, %s3019_s20 }
 0x484   :  { %v420_v51 = vpop.permute.xlu1 %419 }
 0x485   :  { %v422_v54 = vadd.f32 %v420_v51, %v411_v50 }
 0x487   :  { %2840 = vtanh.f32 %v422_v54  ;;  %460 = vrot.lane.b32.xlu2 %v422_v54, %s3019_s20 }
 0x48d   :  { %v2841_v55 = vpop.eup %2840 }
 0x48e   :  { %425 = vrot.lane.b32.xlu0 %v2841_v55, %s3018_s18 }
 0x4c8   :  { %v451_v56 = vpop.permute.xlu2 %450 }
 0x4c9   :  { %v453_v57 = vmul.f32 %v451_v56, %v435_v20 }
 0x4cb   :  { %465 = vrot.lane.b32.xlu1 %v453_v57, %s3020_s21 }
 0x4d0   :  { %v469_v61 = vpop.permute.xlu2 %468 }
 0x4d8   :  { %v474_v4 = vpop.permute.xlu2 %473 }
 0x500   :  { %v426_v58 = vpop.permute.xlu0 %425 }
 0x501   :  { %v428_v59 = vmul.f32 %v426_v58, %v406_v34 }
 0x503   :  { %455 = vrot.lane.b32.xlu0 %v428_v59, %s3020_s21 }
 0x50b   :  { %476 = vrot.lane.b32.xlu0 %v3408_v63, %s3019_s20 }
 0x53d   :  { %v466_v62 = vpop.permute.xlu1 %465 }
 0x53e   :  { %v471_v0 = vsel %vm54_vm4, %v466_v62, %v469_v61 }
 0x53f   :  { %485 = vrot.lane.b32.xlu1 %v471_v0, %s3018_s18  ;;  %483 = vst.msk [vmem:[#allocation3 + $0x70] sm:$0xff] %vm80_vm0, %v471_v0 }
 0x575   :  { %v456_v2 = vpop.permute.xlu0 %455 }
 0x576   :  { %v458_v3 = vsel %vm39_vm5, %v456_v2, %v3382_v60  ;;  %v461_v60 = vpop.permute.xlu2 %460 }
 0x577   :  { %481 = vst.msk [vmem:[#allocation3 + $0x8] sm:$0xff] %vm80_vm0, %v458_v3  ;;  %v463_v9 = vsel %vm39_vm5, %v461_v60, %v3408_v63 }
 0x57d   :  { %v477_v5 = vpop.permute.xlu0 %476 }
 0x57e   :  { %v479_v6 = vsel %vm54_vm4, %v474_v4, %v477_v5 }
 0x57f   :  { %490 = vrot.lane.b32.xlu0 %v479_v6, %s3018_s18 }
 0x5b1   :  { %v486_v7 = vpop.permute.xlu1 %485 }
 0x5b2   :  { %v3453_v8 = vsel %vm80_vm0, %v458_v3, %v486_v7 }
 0x5b3   :  { %2729 = vmatmul.msk.f32.vlgmr.msra.gmra.mxu2 %vm221_vm1, %v3453_v8  ;;  %2730 = vmatmul.msk.f32.vlgmr.msra.gmra.mxu3 %vm221_vm1, %v3453_v8 }
 0x5b4   :  { %914 = vmatpush.msra.mxu2 %v3148_v16  ;;  %934 = vmatpush.msra.mxu3 %v3119_v11 }
 0x5b6   :  { %915 = vmatpush.msra.mxu2 %v3156_v17  ;;  %935 = vmatpush.msra.mxu3 %v3124_v12 }
 0x5b8   :  { %916 = vmatpush.msra.mxu2 %v3184_v21  ;;  %936 = vmatpush.msra.mxu3 %v3138_v14 }
 0x5ba   :  { %917 = vmatpush.msra.mxu2 %v3194_v23  ;;  %937 = vmatpush.msra.mxu3 %v3143_v15 }
 0x5bc   :  { %918 = vmatpush.msra.mxu2 %v3212_v26  ;;  %938 = vmatpush.msra.mxu3 %v3161_v18 }
 0x5be   :  { %919 = vmatpush.msra.mxu2 %v3223_v27  ;;  %939 = vmatpush.msra.mxu3 %v3170_v19 }
 0x5c0   :  { %920 = vmatpush.msra.mxu2 %v3239_v29  ;;  %940 = vmatpush.msra.mxu3 %v3189_v22 }
 0x5c2   :  { %921 = vmatpush.msra.mxu2 %v3244_v30  ;;  %941 = vmatpush.msra.mxu3 %v3202_v24 }
 0x5f1   :  { %v491_v10 = vpop.permute.xlu0 %490 }
 0x5f2   :  { %v3479_v13 = vsel %vm80_vm0, %v463_v9, %v491_v10  ;;  %v3503_v9 = vld [vmem:[%s4433_s1 + $0x28] sm:$0xff] }
 0x5f3   :  { %545 = vrot.lane.b32.xlu0 %v3479_v13, %s3018_s18  ;;  %vm51_vm6 = vcmp.gt.f32.partialorder %v3503_v9, 0.0 }
 0x636   :  { %v534_v20 = vpop.f32.mrf.mxu3  ;;  %v514_v32 = vpop.f32.mrf.mxu2 }
 0x637   :  { %v568_v28 = vadd.f32 %v534_v20, %v3329_v47  ;;  %v539_v34 = vadd.f32 %v514_v32, %v129_v31 }
 0x639   :  { %2842 = vtanh.f32 %v568_v28  ;;  %v569_v36 = vmul.f32 0.5, %v568_v28  ;;  %v540_v38 = vmul.f32 0.5, %v539_v34  ;;  %v3513_v28 = vld [vmem:[%s4433_s1 + $0x10] sm:$0xff] }
 0x63a   :  { %2844 = vtanh.f32 %v539_v34  ;;  %vm42_vm7 = vcmp.gt.f32.partialorder %v3513_v28, 0.0 }
 0x63b   :  { %2846 = vtanh.f32 %v569_v36 }
 0x63c   :  { %2848 = vtanh.f32 %v540_v38 }
 0x63f   :  { %v2843_v35 = vpop.eup %2842 }
 0x640   :  { %576 = vrot.lane.b32.xlu1 %v2843_v35, %s3018_s18  ;;  %v2845_v63 = vpop.eup %2844 }
 0x641   :  { %v2847_v40 = vpop.eup %2846 }
 0x642   :  { %v571_v42 = vmul.f32 0.5, %v2847_v40  ;;  %v2849_v47 = vpop.eup %2848 }
 0x643   :  { %v542_v51 = vmul.f32 0.5, %v2849_v47 }
 0x644   :  { %v572_v44 = vadd.f32 0.5, %v571_v42 }
 0x645   :  { %v543_v54 = vadd.f32 0.5, %v542_v51 }
 0x646   :  { %v573_v57 = vmul.f32 %v572_v44, %v3479_v13 }
 0x648   :  { %551 = vrot.lane.b32.xlu1 %v2845_v63, %s3018_s18 }
 0x665   :  { %v546_v62 = vpop.permute.xlu0 %545 }
 0x666   :  { %v548_v0 = vmul.f32 %v546_v62, %v543_v54 }
 0x6b2   :  { %v577_v48 = vpop.permute.xlu1 %576 }
 0x6b3   :  { %v579_v50 = vmul.f32 %v577_v48, %v572_v44 }
 0x6b5   :  { %581 = vrot.lane.b32.xlu2 %v579_v50, %s3018_s18 }
 0x6ba   :  { %v552_v55 = vpop.permute.xlu1 %551 }
 0x6bb   :  { %v554_v56 = vmul.f32 %v552_v55, %v543_v54 }
 0x6bd   :  { %556 = vrot.lane.b32.xlu1 %v554_v56, %s3018_s18 }
 0x70f   :  { %v582_v58 = vpop.permute.xlu2 %581 }
 0x710   :  { %v584_v59 = vadd.f32 %v582_v58, %v573_v57 }
 0x712   :  { %2850 = vtanh.f32 %v584_v59 }
 0x718   :  { %v2851_v61 = vpop.eup %2850 }
 0x719   :  { %587 = vrot.lane.b32.xlu2 %v2851_v61, %s3018_s18 }
 0x721   :  { %605 = vrot.lane.b32.xlu2 %v3453_v8, %s3019_s20 }
 0x729   :  { %610 = vrot.lane.b32.xlu2 %v584_v59, %s3019_s20 }
 0x72f   :  { %v557_v2 = vpop.permute.xlu1 %556 }
 0x730   :  { %v559_v3 = vadd.f32 %v557_v2, %v548_v0 }
 0x732   :  { %2852 = vtanh.f32 %v559_v3  ;;  %597 = vrot.lane.b32.xlu2 %v559_v3, %s3019_s20 }
 0x738   :  { %v2853_v4 = vpop.eup %2852 }
 0x739   :  { %562 = vrot.lane.b32.xlu0 %v2853_v4, %s3018_s18  ;;  %v3574_v4 = vld [vmem:[%s4433_s1 + $0x20] sm:$0xff] }
 0x73a   :  { %vm48_vm8 = vcmp.gt.f32.partialorder %v3574_v4, 0.0 }
 0x773   :  { %v588_v5 = vpop.permute.xlu2 %587 }
 0x774   :  { %v590_v6 = vmul.f32 %v588_v5, %v572_v44 }
 0x776   :  { %602 = vrot.lane.b32.xlu1 %v590_v6, %s3020_s21 }
 0x77b   :  { %v606_v10 = vpop.permute.xlu2 %605 }
 0x783   :  { %v611_v34 = vpop.permute.xlu2 %610 }
 0x7ab   :  { %v563_v7 = vpop.permute.xlu0 %562 }
 0x7ac   :  { %v565_v60 = vmul.f32 %v563_v7, %v543_v54 }
 0x7ae   :  { %592 = vrot.lane.b32.xlu0 %v565_v60, %s3020_s21  ;;  %v3584_v60 = vld [vmem:[%s4433_s1 + $0x18] sm:$0xff] }
 0x7af   :  { %vm45_vm9 = vcmp.gt.f32.partialorder %v3584_v60, 0.0 }
 0x7b6   :  { %613 = vrot.lane.b32.xlu0 %v3479_v13, %s3019_s20 }
 0x7e8   :  { %v603_v20 = vpop.permute.xlu1 %602 }
 0x7e9   :  { %v608_v49 = vsel %vm51_vm6, %v603_v20, %v606_v10 }
 0x7ea   :  { %622 = vrot.lane.b32.xlu1 %v608_v49, %s3018_s18  ;;  %620 = vst.msk [vmem:[#allocation3 + $0x68] sm:$0xff] %vm80_vm0, %v608_v49 }
 0x820   :  { %v593_v31 = vpop.permute.xlu0 %592 }
 0x821   :  { %v595_v32 = vsel %vm42_vm7, %v593_v31, %v3453_v8 }
 0x822   :  { %618 = vst.msk [vmem:[#allocation3 + $0x10] sm:$0xff] %vm80_vm0, %v595_v32 }
 0x828   :  { %v614_v35 = vpop.permute.xlu0 %613 }
 0x829   :  { %v616_v63 = vsel %vm51_vm6, %v611_v34, %v614_v35 }
 0x82a   :  { %627 = vrot.lane.b32.xlu0 %v616_v63, %s3018_s18 }
 0x85c   :  { %v623_v36 = vpop.permute.xlu1 %622 }
 0x85d   :  { %v3524_v38 = vsel %vm80_vm0, %v595_v32, %v623_v36 }
 0x85e   :  { %2731 = vmatmul.msk.f32.vlgmr.msrb.gmra.mxu2 %vm221_vm1, %v3524_v38  ;;  %2732 = vmatmul.msk.f32.vlgmr.msrb.gmra.mxu3 %vm221_vm1, %v3524_v38 }
 0x85f   :  { %1184 = vmatpush.msrb.mxu2 %v3148_v16  ;;  %1204 = vmatpush.msrb.mxu3 %v3119_v11  ;;  %v598_v11 = vpop.permute.xlu2 %597 }
 0x861   :  { %1185 = vmatpush.msrb.mxu2 %v3156_v17  ;;  %1205 = vmatpush.msrb.mxu3 %v3124_v12  ;;  %v600_v12 = vsel %vm42_vm7, %v598_v11, %v3479_v13  ;;  %v131_v17 = vpop.f32.mrf.mxu0 }
 0x863   :  { %1186 = vmatpush.msrb.mxu2 %v3184_v21  ;;  %1206 = vmatpush.msrb.mxu3 %v3138_v14 }
 0x865   :  { %1187 = vmatpush.msrb.mxu2 %v3194_v23  ;;  %1207 = vmatpush.msrb.mxu3 %v3143_v15 }
 0x867   :  { %1188 = vmatpush.msrb.mxu2 %v3212_v26  ;;  %1208 = vmatpush.msrb.mxu3 %v3161_v18 }
 0x869   :  { %1189 = vmatpush.msrb.mxu2 %v3223_v27  ;;  %1209 = vmatpush.msrb.mxu3 %v3170_v19  ;;  %v132_v19 = vadd.f32 %v131_v17, %v3333_v53 }
 0x86b   :  { %1190 = vmatpush.msrb.mxu2 %v3239_v29  ;;  %1210 = vmatpush.msrb.mxu3 %v3189_v22 }
 0x86d   :  { %1191 = vmatpush.msrb.mxu2 %v3244_v30  ;;  %1211 = vmatpush.msrb.mxu3 %v3202_v24 }
 0x89c   :  { %v628_v14 = vpop.permute.xlu0 %627 }
 0x89d   :  { %v3550_v15 = vsel %vm80_vm0, %v600_v12, %v628_v14  ;;  %v134_v12 = vpop.f32.mrf.mxu0 }
 0x89e   :  { %682 = vrot.lane.b32.xlu0 %v3550_v15, %s3018_s18 }
 0x8a5   :  { %v3609_v14 = vpop.f32.mrf.mxu0 }
 0x8e1   :  { %v671_v16 = vpop.f32.mrf.mxu3  ;;  %v651_v21 = vpop.f32.mrf.mxu2 }
 0x8e2   :  { %v705_v18 = vadd.f32 %v671_v16, %v3327_v45  ;;  %v676_v22 = vadd.f32 %v651_v21, %v132_v19  ;;  %v3611_v16 = vpop.f32.mrf.mxu0  ;;  %v135_v19 = vadd.f32 %v134_v12, %v3333_v53 }
 0x8e4   :  { %2854 = vtanh.f32 %v705_v18  ;;  %v706_v26 = vmul.f32 0.5, %v705_v18  ;;  %v677_v27 = vmul.f32 0.5, %v676_v22 }
 0x8e5   :  { %2856 = vtanh.f32 %v676_v22 }
 0x8e6   :  { %2858 = vtanh.f32 %v706_v26 }
 0x8e7   :  { %2860 = vtanh.f32 %v677_v27 }
 0x8ea   :  { %v2855_v23 = vpop.eup %2854 }
 0x8eb   :  { %713 = vrot.lane.b32.xlu1 %v2855_v23, %s3018_s18  ;;  %v2857_v24 = vpop.eup %2856 }
 0x8ec   :  { %v2859_v29 = vpop.eup %2858 }
 0x8ed   :  { %v708_v30 = vmul.f32 0.5, %v2859_v29  ;;  %v2861_v45 = vpop.eup %2860 }
 0x8ee   :  { %v679_v42 = vmul.f32 0.5, %v2861_v45 }
 0x8ef   :  { %v709_v8 = vadd.f32 0.5, %v708_v30 }
 0x8f0   :  { %v680_v44 = vadd.f32 0.5, %v679_v42 }
 0x8f1   :  { %v710_v50 = vmul.f32 %v709_v8, %v3550_v15 }
 0x8f3   :  { %688 = vrot.lane.b32.xlu1 %v2857_v24, %s3018_s18 }
 0x910   :  { %v683_v56 = vpop.permute.xlu0 %682 }
 0x911   :  { %v685_v57 = vmul.f32 %v683_v56, %v680_v44 }
 0x95d   :  { %v714_v13 = vpop.permute.xlu1 %713 }
 0x95e   :  { %v716_v40 = vmul.f32 %v714_v13, %v709_v8 }
 0x960   :  { %718 = vrot.lane.b32.xlu2 %v716_v40, %s3018_s18 }
 0x965   :  { %v689_v47 = vpop.permute.xlu1 %688 }
 0x966   :  { %v691_v48 = vmul.f32 %v689_v47, %v680_v44 }
 0x968   :  { %693 = vrot.lane.b32.xlu1 %v691_v48, %s3018_s18 }
 0x9ba   :  { %v719_v51 = vpop.permute.xlu2 %718 }
 0x9bb   :  { %v721_v54 = vadd.f32 %v719_v51, %v710_v50 }
 0x9bd   :  { %2862 = vtanh.f32 %v721_v54 }
 0x9c3   :  { %v2863_v55 = vpop.eup %2862 }
 0x9c4   :  { %724 = vrot.lane.b32.xlu2 %v2863_v55, %s3018_s18 }
 0x9cc   :  { %742 = vrot.lane.b32.xlu2 %v3524_v38, %s3019_s20 }
 0x9d4   :  { %747 = vrot.lane.b32.xlu2 %v721_v54, %s3019_s20 }
 0x9da   :  { %v694_v58 = vpop.permute.xlu1 %693 }
 0x9db   :  { %v696_v59 = vadd.f32 %v694_v58, %v685_v57 }
 0x9dd   :  { %2864 = vtanh.f32 %v696_v59  ;;  %734 = vrot.lane.b32.xlu2 %v696_v59, %s3019_s20 }
 0x9e3   :  { %v2865_v61 = vpop.eup %2864 }
 0x9e4   :  { %699 = vrot.lane.b32.xlu0 %v2865_v61, %s3018_s18 }
 0xa1e   :  { %v725_v62 = vpop.permute.xlu2 %724 }
 0xa1f   :  { %v727_v0 = vmul.f32 %v725_v62, %v709_v8 }
 0xa21   :  { %739 = vrot.lane.b32.xlu1 %v727_v0, %s3020_s21 }
 0xa26   :  { %v743_v5 = vpop.permute.xlu2 %742 }
 0xa2e   :  { %v748_v49 = vpop.permute.xlu2 %747 }
 0xa37   :  { %v735_v63 = vpop.permute.xlu2 %734 }
 0xa38   :  { %v737_v36 = vsel %vm45_vm9, %v735_v63, %v3550_v15 }
 0xa56   :  { %v700_v2 = vpop.permute.xlu0 %699 }
 0xa57   :  { %v702_v3 = vmul.f32 %v700_v2, %v680_v44 }
 0xa59   :  { %729 = vrot.lane.b32.xlu0 %v702_v3, %s3020_s21 }
 0xa61   :  { %750 = vrot.lane.b32.xlu0 %v3550_v15, %s3019_s20 }
 0xa93   :  { %v740_v6 = vpop.permute.xlu1 %739 }
 0xa94   :  { %v745_v7 = vsel %vm48_vm8, %v740_v6, %v743_v5 }
 0xa95   :  { %759 = vrot.lane.b32.xlu1 %v745_v7, %s3018_s18  ;;  %757 = vst.msk [vmem:[#allocation3 + $0x60] sm:$0xff] %vm80_vm0, %v745_v7 }
 0xacb   :  { %v730_v10 = vpop.permute.xlu0 %729 }
 0xacc   :  { %v732_v20 = vsel %vm45_vm9, %v730_v10, %v3524_v38 }
 0xacd   :  { %755 = vst.msk [vmem:[#allocation3 + $0x18] sm:$0xff] %vm80_vm0, %v732_v20 }
 0xad3   :  { %v751_v31 = vpop.permute.xlu0 %750 }
 0xad4   :  { %v753_v32 = vsel %vm48_vm8, %v748_v49, %v751_v31 }
 0xad5   :  { %764 = vrot.lane.b32.xlu0 %v753_v32, %s3018_s18 }
 0xb07   :  { %v760_v34 = vpop.permute.xlu1 %759 }
 0xb08   :  { %v3595_v35 = vsel %vm80_vm0, %v732_v20, %v760_v34 }
 0xb09   :  { %2733 = vmatmul.msk.f32.vlgmr.msrb.gmra.mxu0 %vm221_vm1, %v3595_v35  ;;  %2734 = vmatmul.msk.f32.vlgmr.msra.gmra.mxu1 %vm221_vm1, %v3595_v35 }
 0xb47   :  { %v765_v38 = vpop.permute.xlu0 %764 }
 0xb48   :  { %v3605_v11 = vsel %vm80_vm0, %v737_v36, %v765_v38 }
 0xb49   :  { %818 = vrot.lane.b32.xlu0 %v3605_v11, %s3018_s18 }
 0xb86   :  { %v808_v17 = vpop.f32.mrf.mxu1  ;;  %v788_v21 = vpop.f32.mrf.mxu0 }
 0xb87   :  { %v840_v18 = vadd.f32 %v808_v17, %v3325_v43  ;;  %v812_v15 = vadd.f32 %v788_v21, %v135_v19 }
 0xb89   :  { %2866 = vtanh.f32 %v840_v18  ;;  %v841_v24 = vmul.f32 0.5, %v840_v18  ;;  %v813_v26 = vmul.f32 0.5, %v812_v15  ;;  %v138_v18 = vadd.f32 %v3609_v14, %v3333_v53 }
 0xb8a   :  { %2868 = vtanh.f32 %v812_v15 }
 0xb8b   :  { %2870 = vtanh.f32 %v841_v24 }
 0xb8c   :  { %2872 = vtanh.f32 %v813_v26 }
 0xb8f   :  { %v2867_v22 = vpop.eup %2866 }
 0xb90   :  { %848 = vrot.lane.b32.xlu1 %v2867_v22, %s3018_s18  ;;  %v2869_v23 = vpop.eup %2868 }
 0xb91   :  { %v2871_v27 = vpop.eup %2870 }
 0xb92   :  { %v843_v29 = vmul.f32 0.5, %v2871_v27  ;;  %v2873_v43 = vpop.eup %2872 }
 0xb93   :  { %v815_v13 = vmul.f32 0.5, %v2873_v43 }
 0xb94   :  { %v844_v30 = vadd.f32 0.5, %v843_v29 }
 0xb95   :  { %v816_v40 = vadd.f32 0.5, %v815_v13 }
 0xb96   :  { %v845_v47 = vmul.f32 %v844_v30, %v3605_v11 }
 0xb98   :  { %824 = vrot.lane.b32.xlu1 %v2869_v23, %s3018_s18 }
 0xbbb   :  { %v819_v54 = vpop.permute.xlu0 %818 }
 0xbbc   :  { %v821_v55 = vmul.f32 %v819_v54, %v816_v40 }
 0xc02   :  { %v849_v8 = vpop.permute.xlu1 %848 }
 0xc03   :  { %v851_v45 = vmul.f32 %v849_v8, %v844_v30 }
 0xc05   :  { %853 = vrot.lane.b32.xlu2 %v851_v45, %s3018_s18 }
 0xc0a   :  { %v825_v42 = vpop.permute.xlu1 %824 }
 0xc0b   :  { %v827_v44 = vmul.f32 %v825_v42, %v816_v40 }
 0xc0d   :  { %829 = vrot.lane.b32.xlu1 %v827_v44, %s3018_s18 }
 0xc5f   :  { %v854_v48 = vpop.permute.xlu2 %853 }
 0xc60   :  { %v856_v50 = vadd.f32 %v854_v48, %v845_v47 }
 0xc62   :  { %2874 = vtanh.f32 %v856_v50 }
 0xc68   :  { %v2875_v51 = vpop.eup %2874 }
 0xc69   :  { %859 = vrot.lane.b32.xlu2 %v2875_v51, %s3018_s18 }
 0xc71   :  { %877 = vrot.lane.b32.xlu2 %v3595_v35, %s3019_s20 }
 0xc79   :  { %882 = vrot.lane.b32.xlu2 %v856_v50, %s3019_s20 }
 0xc7f   :  { %v830_v56 = vpop.permute.xlu1 %829 }
 0xc80   :  { %v832_v57 = vadd.f32 %v830_v56, %v821_v55 }
 0xc82   :  { %2876 = vtanh.f32 %v832_v57  ;;  %869 = vrot.lane.b32.xlu2 %v832_v57, %s3019_s20 }
 0xc88   :  { %v2877_v58 = vpop.eup %2876 }
 0xc89   :  { %835 = vrot.lane.b32.xlu0 %v2877_v58, %s3018_s18 }
 0xcc3   :  { %v860_v59 = vpop.permute.xlu2 %859 }
 0xcc4   :  { %v862_v61 = vmul.f32 %v860_v59, %v844_v30 }
 0xcc6   :  { %874 = vrot.lane.b32.xlu1 %v862_v61, %s3020_s21 }
 0xccb   :  { %v878_v2 = vpop.permute.xlu2 %877 }
 0xcd3   :  { %v883_v10 = vpop.permute.xlu2 %882 }
 0xcdc   :  { %v870_v34 = vpop.permute.xlu2 %869 }
 0xcfb   :  { %v836_v62 = vpop.permute.xlu0 %835 }
 0xcfc   :  { %v838_v0 = vmul.f32 %v836_v62, %v816_v40 }
 0xcfe   :  { %864 = vrot.lane.b32.xlu0 %v838_v0, %s3020_s21 }
 0xd06   :  { %885 = vrot.lane.b32.xlu0 %v3605_v11, %s3019_s20 }
 0xd38   :  { %v875_v3 = vpop.permute.xlu1 %874 }
 0xd39   :  { %v880_v5 = vsel %vm45_vm9, %v875_v3, %v878_v2 }
 0xd3a   :  { %894 = vrot.lane.b32.xlu1 %v880_v5, %s3018_s18  ;;  %892 = vst.msk [vmem:[#allocation3 + $0x58] sm:$0xff] %vm80_vm0, %v880_v5 }
 0xd70   :  { %v865_v6 = vpop.permute.xlu0 %864 }
 0xd71   :  { %v867_v7 = vsel %vm48_vm8, %v865_v6, %v3595_v35  ;;  %v872_v35 = vsel %vm48_vm8, %v870_v34, %v3605_v11 }
 0xd72   :  { %890 = vst.msk [vmem:[#allocation3 + $0x20] sm:$0xff] %vm80_vm0, %v867_v7 }
 0xd78   :  { %v886_v20 = vpop.permute.xlu0 %885 }
 0xd79   :  { %v888_v49 = vsel %vm45_vm9, %v883_v10, %v886_v20 }
 0xd7a   :  { %899 = vrot.lane.b32.xlu0 %v888_v49, %s3018_s18 }
 0xdac   :  { %v895_v31 = vpop.permute.xlu1 %894 }
 0xdad   :  { %v3642_v32 = vsel %vm80_vm0, %v867_v7, %v895_v31 }
 0xdae   :  { %2735 = vmatmul.msk.f32.vlgmr.msra.gmra.mxu2 %vm221_vm1, %v3642_v32  ;;  %2736 = vmatmul.msk.f32.vlgmr.msra.gmra.mxu3 %vm221_vm1, %v3642_v32 }
 0xdec   :  { %v900_v63 = vpop.permute.xlu0 %899 }
 0xded   :  { %v3652_v36 = vsel %vm80_vm0, %v872_v35, %v900_v63  ;;  %v141_v63 = vadd.f32 %v3611_v16, %v3333_v53 }
 0xdee   :  { %953 = vrot.lane.b32.xlu0 %v3652_v36, %s3018_s18 }
 0xe31   :  { %v943_v38 = vpop.f32.mrf.mxu3  ;;  %v923_v17 = vpop.f32.mrf.mxu2 }
 0xe32   :  { %v975_v12 = vadd.f32 %v943_v38, %v3323_v41  ;;  %v947_v19 = vadd.f32 %v923_v17, %v138_v18 }
 0xe34   :  { %2878 = vtanh.f32 %v975_v12  ;;  %v976_v15 = vmul.f32 0.5, %v975_v12  ;;  %v948_v22 = vmul.f32 0.5, %v947_v19 }
 0xe35   :  { %2880 = vtanh.f32 %v947_v19 }
 0xe36   :  { %2882 = vtanh.f32 %v976_v15 }
 0xe37   :  { %2884 = vtanh.f32 %v948_v22 }
 0xe3a   :  { %v2879_v21 = vpop.eup %2878 }
 0xe3b   :  { %983 = vrot.lane.b32.xlu1 %v2879_v21, %s3018_s18  ;;  %v2881_v11 = vpop.eup %2880 }
 0xe3c   :  { %v2883_v23 = vpop.eup %2882 }
 0xe3d   :  { %v978_v24 = vmul.f32 0.5, %v2883_v23  ;;  %v2885_v26 = vpop.eup %2884 }
 0xe3e   :  { %v950_v30 = vmul.f32 0.5, %v2885_v26 }
 0xe3f   :  { %v979_v41 = vadd.f32 0.5, %v978_v24 }
 0xe40   :  { %v951_v14 = vadd.f32 0.5, %v950_v30 }
 0xe41   :  { %v980_v45 = vmul.f32 %v979_v41, %v3652_v36 }
 0xe43   :  { %959 = vrot.lane.b32.xlu1 %v2881_v11, %s3018_s18 }
 0xe60   :  { %v954_v44 = vpop.permute.xlu0 %953 }
 0xe61   :  { %v956_v47 = vmul.f32 %v954_v44, %v951_v14 }
 0xead   :  { %v984_v27 = vpop.permute.xlu1 %983 }
 0xeae   :  { %v986_v29 = vmul.f32 %v984_v27, %v979_v41 }
 0xeb0   :  { %988 = vrot.lane.b32.xlu2 %v986_v29, %s3018_s18 }
 0xeb5   :  { %v960_v43 = vpop.permute.xlu1 %959 }
 0xeb6   :  { %v962_v8 = vmul.f32 %v960_v43, %v951_v14 }
 0xeb8   :  { %964 = vrot.lane.b32.xlu1 %v962_v8, %s3018_s18 }
 0xf0a   :  { %v989_v13 = vpop.permute.xlu2 %988 }
 0xf0b   :  { %v991_v40 = vadd.f32 %v989_v13, %v980_v45 }
 0xf0d   :  { %2886 = vtanh.f32 %v991_v40 }
 0xf13   :  { %v2887_v42 = vpop.eup %2886 }
 0xf14   :  { %994 = vrot.lane.b32.xlu2 %v2887_v42, %s3018_s18 }
 0xf1c   :  { %1012 = vrot.lane.b32.xlu2 %v3642_v32, %s3019_s20 }
 0xf24   :  { %1017 = vrot.lane.b32.xlu2 %v991_v40, %s3019_s20 }
 0xf2a   :  { %v965_v48 = vpop.permute.xlu1 %964 }
 0xf2b   :  { %v967_v50 = vadd.f32 %v965_v48, %v956_v47 }
 0xf2d   :  { %2888 = vtanh.f32 %v967_v50  ;;  %1004 = vrot.lane.b32.xlu2 %v967_v50, %s3019_s20 }
 0xf33   :  { %v2889_v51 = vpop.eup %2888 }
 0xf34   :  { %970 = vrot.lane.b32.xlu0 %v2889_v51, %s3018_s18 }
 0xf6e   :  { %v995_v54 = vpop.permute.xlu2 %994 }
 0xf6f   :  { %v997_v55 = vmul.f32 %v995_v54, %v979_v41 }
 0xf71   :  { %1009 = vrot.lane.b32.xlu1 %v997_v55, %s3020_s21 }
 0xf76   :  { %v1013_v58 = vpop.permute.xlu2 %1012 }
 0xf7e   :  { %v1018_v2 = vpop.permute.xlu2 %1017 }
 0xf87   :  { %v1005_v10 = vpop.permute.xlu2 %1004 }
 0xf88   :  { %v1007_v20 = vsel %vm51_vm6, %v1005_v10, %v3652_v36 }
 0xfa6   :  { %v971_v56 = vpop.permute.xlu0 %970 }
 0xfa7   :  { %v973_v57 = vmul.f32 %v971_v56, %v951_v14 }
 0xfa9   :  { %999 = vrot.lane.b32.xlu0 %v973_v57, %s3020_s21 }
 0xfb1   :  { %1020 = vrot.lane.b32.xlu0 %v3652_v36, %s3019_s20 }
 0xfe3   :  { %v1010_v59 = vpop.permute.xlu1 %1009 }
 0xfe4   :  { %v1015_v61 = vsel %vm42_vm7, %v1010_v59, %v1013_v58  ;;  %v1291_v59 = vld [vmem:[%s4434_s7 + $0x30] sm:$0xff] }
 0xfe5   :  { %1029 = vrot.lane.b32.xlu1 %v1015_v61, %s3018_s18  ;;  %1027 = vst.msk [vmem:[#allocation3 + $0x50] sm:$0xff] %vm80_vm0, %v1015_v61  ;;  %v1292_v61 = vld [vmem:[%s4434_s7 + $0x38] sm:$0xff]  ;;  %1459 = vmatpush.msra.mxu2 %v1291_v59  ;;  %v1297_v59 = vld [vmem:[%s4434_s7 + $0x60] sm:$0xff] }
 0xfe6   :  { %1500 = vmatpush.msra.mxu3 %v1292_v61  ;;  %v1296_v61 = vld [vmem:[%s4434_s7 + $0x58] sm:$0xff] }
0x101b   :  { %v1000_v62 = vpop.permute.xlu0 %999 }
0x101c   :  { %v1002_v0 = vsel %vm51_vm6, %v1000_v62, %v3642_v32  ;;  %v1289_v62 = vld [vmem:[%s4434_s7 + $0x20] sm:$0xff] }
0x101d   :  { %1025 = vst.msk [vmem:[#allocation3 + $0x28] sm:$0xff] %vm80_vm0, %v1002_v0  ;;  %1460 = vmatpush.msra.mxu2 %v1289_v62  ;;  %v1295_v62 = vld [vmem:[%s4434_s7 + $0x50] sm:$0xff] }
0x1023   :  { %v1021_v3 = vpop.permute.xlu0 %1020 }
0x1024   :  { %v1023_v5 = vsel %vm42_vm7, %v1018_v2, %v1021_v3  ;;  %v1287_v2 = vld [vmem:[%s4434_s7 + $0x10] sm:$0xff]  ;;  %v1288_v3 = vld [vmem:[%s4434_s7 + $0x18] sm:$0xff] }
0x1025   :  { %1034 = vrot.lane.b32.xlu0 %v1023_v5, %s3018_s18  ;;  %v1285_v5 = vld [vmem:[%s4434_s7] sm:$0xff]  ;;  %1461 = vmatpush.msra.mxu2 %v1287_v2 }
0x1026   :  { %v1293_v2 = vld [vmem:[%s4434_s7 + $0x40] sm:$0xff] }
0x1027   :  { %1462 = vmatpush.msra.mxu2 %v1285_v5  ;;  %v3826_v5 = vld [vmem:[%s4429_s8 + $0xe8] sm:$0xff] }
0x1057   :  { %v1030_v6 = vpop.permute.xlu1 %1029 }
0x1058   :  { %v3686_v7 = vsel %vm80_vm0, %v1002_v0, %v1030_v6  ;;  %v1290_v0 = vld [vmem:[%s4434_s7 + $0x28] sm:$0xff] }
0x1059   :  { %2737 = vmatmul.msk.f32.vlgmr.msra.gmra.mxu0 %vm221_vm1, %v3686_v7  ;;  %2738 = vmatmul.msk.f32.vlgmr.msrb.gmra.mxu1 %vm221_vm1, %v3686_v7  ;;  %v1286_v6 = vld [vmem:[%s4434_s7 + $0x8] sm:$0xff] }
0x105a   :  { %1501 = vmatpush.msra.mxu3 %v1290_v0  ;;  %v1294_v0 = vld [vmem:[%s4434_s7 + $0x48] sm:$0xff] }
0x105c   :  { %1502 = vmatpush.msra.mxu3 %v1288_v3  ;;  %v3819_v3 = vld [vmem:[%s4429_s8 + $0xf8] sm:$0xff] }
0x105e   :  { %1503 = vmatpush.msra.mxu3 %v1286_v6  ;;  %v3833_v6 = vld [vmem:[%s4429_s8 + $0xd8] sm:$0xff] }
0x1097   :  { %v1035_v49 = vpop.permute.xlu0 %1034 }
0x1098   :  { %v3696_v31 = vsel %vm80_vm0, %v1007_v20, %v1035_v49  ;;  %v1301_v20 = vld [vmem:[#allocation3] sm:$0xff]  ;;  %v1302_v49 = vld [vmem:[#allocation3 + $0x8] sm:$0xff] }
0x1099   :  { %1088 = vrot.lane.b32.xlu0 %v3696_v31, %s3018_s18 }
0x10d6   :  { %v1078_v32 = vpop.f32.mrf.mxu1  ;;  %v1058_v35 = vpop.f32.mrf.mxu0 }
0x10d7   :  { %v1110_v34 = vadd.f32 %v1078_v32, %v3321_v39  ;;  %v1082_v38 = vadd.f32 %v1058_v35, %v141_v63  ;;  %v1303_v32 = vld [vmem:[#allocation3 + $0x10] sm:$0xff]  ;;  %v1305_v35 = vld [vmem:[#allocation3 + $0x20] sm:$0xff]  ;;  %v1306_v63 = vld [vmem:[#allocation3 + $0x28] sm:$0xff] }
0x10d9   :  { %2890 = vtanh.f32 %v1110_v34  ;;  %v1111_v17 = vmul.f32 0.5, %v1110_v34  ;;  %v1083_v18 = vmul.f32 0.5, %v1082_v38  ;;  %v1304_v34 = vld [vmem:[#allocation3 + $0x18] sm:$0xff] }
0x10da   :  { %2892 = vtanh.f32 %v1082_v38 }
0x10db   :  { %2894 = vtanh.f32 %v1111_v17 }
0x10dc   :  { %2896 = vtanh.f32 %v1083_v18 }
0x10df   :  { %v2891_v12 = vpop.eup %2890 }
0x10e0   :  { %1118 = vrot.lane.b32.xlu1 %v2891_v12, %s3018_s18  ;;  %v2893_v36 = vpop.eup %2892  ;;  %v144_v12 = vadd.f32 %v3314_v33, %v3333_v53 }
0x10e1   :  { %v2895_v19 = vpop.eup %2894 }
0x10e2   :  { %v1113_v21 = vmul.f32 0.5, %v2895_v19  ;;  %v2897_v11 = vpop.eup %2896 }
0x10e3   :  { %v1085_v23 = vmul.f32 0.5, %v2897_v11 }
0x10e4   :  { %v1114_v39 = vadd.f32 0.5, %v1113_v21 }
0x10e5   :  { %v1086_v16 = vadd.f32 0.5, %v1085_v23 }
0x10e6   :  { %v1115_v26 = vmul.f32 %v1114_v39, %v3696_v31 }
0x10e8   :  { %1094 = vrot.lane.b32.xlu1 %v2893_v36, %s3018_s18 }
0x110b   :  { %v1089_v14 = vpop.permute.xlu0 %1088 }
0x110c   :  { %v1091_v43 = vmul.f32 %v1089_v14, %v1086_v16 }
0x1152   :  { %v1119_v15 = vpop.permute.xlu1 %1118 }
0x1153   :  { %v1121_v22 = vmul.f32 %v1119_v15, %v1114_v39 }
0x1155   :  { %1123 = vrot.lane.b32.xlu2 %v1121_v22, %s3018_s18 }
0x115a   :  { %v1095_v24 = vpop.permute.xlu1 %1094 }
0x115b   :  { %v1097_v41 = vmul.f32 %v1095_v24, %v1086_v16 }
0x115d   :  { %1099 = vrot.lane.b32.xlu1 %v1097_v41, %s3018_s18 }
0x11af   :  { %v1124_v27 = vpop.permute.xlu2 %1123 }
0x11b0   :  { %v1126_v29 = vadd.f32 %v1124_v27, %v1115_v26 }
0x11b2   :  { %2898 = vtanh.f32 %v1126_v29 }
0x11b8   :  { %v2899_v30 = vpop.eup %2898 }
0x11b9   :  { %1129 = vrot.lane.b32.xlu2 %v2899_v30, %s3018_s18 }
0x11c1   :  { %1147 = vrot.lane.b32.xlu2 %v3686_v7, %s3019_s20 }
0x11c9   :  { %1152 = vrot.lane.b32.xlu2 %v1126_v29, %s3019_s20 }
0x11cf   :  { %v1100_v8 = vpop.permute.xlu1 %1099 }
0x11d0   :  { %v1102_v45 = vadd.f32 %v1100_v8, %v1091_v43 }
0x11d2   :  { %2900 = vtanh.f32 %v1102_v45  ;;  %1139 = vrot.lane.b32.xlu2 %v1102_v45, %s3019_s20 }
0x11d8   :  { %v2901_v13 = vpop.eup %2900 }
0x11d9   :  { %1105 = vrot.lane.b32.xlu0 %v2901_v13, %s3018_s18 }
0x1213   :  { %v1130_v40 = vpop.permute.xlu2 %1129 }
0x1214   :  { %v1132_v42 = vmul.f32 %v1130_v40, %v1114_v39 }
0x1216   :  { %1144 = vrot.lane.b32.xlu1 %v1132_v42, %s3020_s21 }
0x121b   :  { %v1148_v48 = vpop.permute.xlu2 %1147 }
0x1223   :  { %v1153_v56 = vpop.permute.xlu2 %1152 }
0x122c   :  { %v1140_v22 = vpop.permute.xlu2 %1139 }
0x122d   :  { %v1142_v14 = vsel %vm54_vm4, %v1140_v22, %v3696_v31  ;;  %v3912_v22 = vld [vmem:[%s4429_s8 + $0x88] sm:$0xff] }
0x124b   :  { %v1106_v44 = vpop.permute.xlu0 %1105 }
0x124c   :  { %v1108_v47 = vmul.f32 %v1106_v44, %v1086_v16 }
0x124e   :  { %1134 = vrot.lane.b32.xlu0 %v1108_v47, %s3020_s21 }
0x1256   :  { %1155 = vrot.lane.b32.xlu0 %v3696_v31, %s3019_s20 }
0x1288   :  { %v1145_v50 = vpop.permute.xlu1 %1144 }
0x1289   :  { %v1150_v51 = vsel %vm39_vm5, %v1145_v50, %v1148_v48 }
0x128a   :  { %1164 = vrot.lane.b32.xlu1 %v1150_v51, %s3018_s18  ;;  %1162 = vst.msk [vmem:[#allocation3 + $0x48] sm:$0xff] %vm80_vm0, %v1150_v51 }
0x12c0   :  { %v1135_v54 = vpop.permute.xlu0 %1134 }
0x12c1   :  { %v1137_v55 = vsel %vm54_vm4, %v1135_v54, %v3686_v7 }
0x12c2   :  { %1160 = vst.msk [vmem:[#allocation3 + $0x30] sm:$0xff] %vm80_vm0, %v1137_v55 }
0x12c8   :  { %v1156_v57 = vpop.permute.xlu0 %1155 }
0x12c9   :  { %v1158_v58 = vsel %vm39_vm5, %v1153_v56, %v1156_v57  ;;  %v1307_v38 = vld [vmem:[#allocation3 + $0x30] sm:$0xff]  ;;  %v1300_v56 = vld [vmem:[%s4434_s7 + $0x78] sm:$0xff] }
0x12ca   :  { %1169 = vrot.lane.b32.xlu0 %v1158_v58, %s3018_s18  ;;  %v1299_v57 = vld [vmem:[%s4434_s7 + $0x70] sm:$0xff]  ;;  %v1298_v58 = vld [vmem:[%s4434_s7 + $0x68] sm:$0xff]  ;;  %1394 = vmatpush.msra.mxu1 %v1300_v56 }
0x12cb   :  { %1353 = vmatpush.msrb.mxu0 %v1299_v57 }
0x12cc   :  { %1395 = vmatpush.msra.mxu1 %v1298_v58 }
0x12cd   :  { %1354 = vmatpush.msrb.mxu0 %v1297_v59 }
0x12ce   :  { %1396 = vmatpush.msra.mxu1 %v1296_v61 }
0x12cf   :  { %1355 = vmatpush.msrb.mxu0 %v1295_v62 }
0x12d0   :  { %1397 = vmatpush.msra.mxu1 %v1294_v0 }
0x12d1   :  { %1356 = vmatpush.msrb.mxu0 %v1293_v2 }
0x12d2   :  { %1620 = vmatpush.msrb.mxu1 %v3819_v3 }
0x12d4   :  { %1621 = vmatpush.msrb.mxu1 %v3826_v5 }
0x12d6   :  { %1622 = vmatpush.msrb.mxu1 %v3833_v6 }
0x12fc   :  { %v1165_v7 = vpop.permute.xlu1 %1164 }
0x12fd   :  { %v3754_v10 = vsel %vm80_vm0, %v1137_v55, %v1165_v7 }
0x12fe   :  { %2739 = vmatmul.msk.f32.vlgmr.msrb.gmra.mxu2 %vm221_vm1, %v3754_v10  ;;  %2740 = vmatmul.msk.f32.vlgmr.msrb.gmra.mxu3 %vm221_vm1, %v3754_v10 }
0x12ff   :  { %1751 = vmatpush.msrb.mxu3 %v3819_v3 }
0x1301   :  { %1752 = vmatpush.msrb.mxu3 %v3826_v5 }
0x1303   :  { %1753 = vmatpush.msrb.mxu3 %v3833_v6 }
0x1306   :  { %2757 = vmatmul.msk.f32.vlgmr.msra.gmra.mxu2 %vm80_vm0, %v1301_v20  ;;  %2765 = vmatmul.msk.f32.vlgmr.msra.gmra.mxu3 %vm80_vm0, %v1301_v20 }
0x130e   :  { %2758 = vmatmul.msk.f32.gmra.mxu2 %vm80_vm0, %v1302_v49  ;;  %2766 = vmatmul.msk.f32.gmra.mxu3 %vm80_vm0, %v1302_v49 }
0x1316   :  { %2759 = vmatmul.msk.f32.gmra.mxu2 %vm80_vm0, %v1303_v32  ;;  %2767 = vmatmul.msk.f32.gmra.mxu3 %vm80_vm0, %v1303_v32  ;;  %v3843_v32 = vld [vmem:[%s4429_s8 + $0xc8] sm:$0xff] }
0x1317   :  { %1623 = vmatpush.msrb.mxu1 %v3843_v32  ;;  %1754 = vmatpush.msrb.mxu3 %v3843_v32 }
0x131e   :  { %2760 = vmatmul.msk.f32.gmra.mxu2 %vm80_vm0, %v1304_v34  ;;  %2768 = vmatmul.msk.f32.gmra.mxu3 %vm80_vm0, %v1304_v34 }
0x1326   :  { %2761 = vmatmul.msk.f32.gmra.mxu2 %vm80_vm0, %v1305_v35  ;;  %2769 = vmatmul.msk.f32.gmra.mxu3 %vm80_vm0, %v1305_v35 }
0x132e   :  { %2762 = vmatmul.msk.f32.gmra.mxu2 %vm80_vm0, %v1306_v63  ;;  %2770 = vmatmul.msk.f32.gmra.mxu3 %vm80_vm0, %v1306_v63 }
0x1336   :  { %2763 = vmatmul.msk.f32.gmra.mxu2 %vm80_vm0, %v1307_v38  ;;  %2771 = vmatmul.msk.f32.gmra.mxu3 %vm80_vm0, %v1307_v38  ;;  %v3856_v38 = vld [vmem:[%s4429_s8 + $0xb8] sm:$0xff] }
0x1337   :  { %1624 = vmatpush.msrb.mxu1 %v3856_v38  ;;  %1755 = vmatpush.msrb.mxu3 %v3856_v38 }
0x133c   :  { %v1170_v30 = vpop.permute.xlu0 %1169 }
0x133d   :  { %v1172_v43 = vsel %vm80_vm0, %v1142_v14, %v1170_v30  ;;  %v2773_v14 = vld [vmem:[%s4431_s9 + $0x2] sm:$0x3] }
0x1381   :  { %v1193_v36 = vpop.f32.mrf.mxu2  ;;  %v1213_v17 = vpop.f32.mrf.mxu3 }
0x1382   :  { %v1217_v18 = vadd.f32 %v1193_v36, %v144_v12  ;;  %v1245_v19 = vadd.f32 %v1213_v17, %v3319_v37  ;;  %v1310_v12 = vld [vmem:[#allocation3 + $0x48] sm:$0xff]  ;;  %v1311_v17 = vld [vmem:[#allocation3 + $0x50] sm:$0xff] }
0x1384   :  { %2902 = vtanh.f32 %v1217_v18  ;;  %v1218_v11 = vmul.f32 0.5, %v1217_v18  ;;  %v1246_v24 = vmul.f32 0.5, %v1245_v19  ;;  %v3876_v18 = vld [vmem:[%s4429_s8 + $0x98] sm:$0xff] }
0x1385   :  { %2904 = vtanh.f32 %v1245_v19  ;;  %v3881_v19 = vld [vmem:[%s4429_s8 + $0xf0] sm:$0xff] }
0x1386   :  { %2906 = vtanh.f32 %v1218_v11  ;;  %1600 = vmatpush.msra.mxu0 %v3881_v19  ;;  %1731 = vmatpush.msrb.mxu2 %v3881_v19  ;;  %v3901_v11 = vld [vmem:[%s4429_s8 + $0xc0] sm:$0xff] }
0x1387   :  { %2908 = vtanh.f32 %v1246_v24  ;;  %v1313_v24 = vld [vmem:[#allocation3 + $0x60] sm:$0xff] }
0x1389   :  { %v1505_v30 = vpop.f32.mrf.mxu3 }
0x138a   :  { %v2903_v21 = vpop.eup %2902 }
0x138b   :  { %v2905_v39 = vpop.eup %2904  ;;  %1229 = vrot.lane.b32.xlu2 %v2903_v21, %s3018_s18  ;;  %v3886_v21 = vld [vmem:[%s4429_s8 + $0xe0] sm:$0xff] }
0x138c   :  { %1253 = vrot.lane.b32.xlu1 %v2905_v39, %s3018_s18  ;;  %v2907_v15 = vpop.eup %2906  ;;  %v3893_v39 = vld [vmem:[%s4429_s8 + $0xd0] sm:$0xff]  ;;  %1601 = vmatpush.msra.mxu0 %v3886_v21 }
0x138d   :  { %v1220_v23 = vmul.f32 0.5, %v2907_v15  ;;  %v2909_v37 = vpop.eup %2908  ;;  %1732 = vmatpush.msrb.mxu2 %v3886_v21  ;;  %v1312_v15 = vld [vmem:[#allocation3 + $0x58] sm:$0xff] }
0x138e   :  { %v1248_v41 = vmul.f32 0.5, %v2909_v37  ;;  %1602 = vmatpush.msra.mxu0 %v3893_v39  ;;  %v1314_v37 = vld [vmem:[#allocation3 + $0x68] sm:$0xff] }
0x138f   :  { %v1221_v16 = vadd.f32 0.5, %v1220_v23  ;;  %1733 = vmatpush.msrb.mxu2 %v3893_v39  ;;  %v3917_v23 = vld [vmem:[%s4429_s8 + $0xb0] sm:$0xff] }
0x1390   :  { %v1249_v26 = vadd.f32 0.5, %v1248_v41  ;;  %1603 = vmatpush.msra.mxu0 %v3901_v11  ;;  %v1315_v41 = vld [vmem:[#allocation3 + $0x70] sm:$0xff] }
0x1391   :  { %1734 = vmatpush.msrb.mxu2 %v3901_v11 }
0x1392   :  { %v1250_v8 = vmul.f32 %v1249_v26, %v1172_v43  ;;  %1604 = vmatpush.msra.mxu0 %v3917_v23 }
0x1393   :  { %1735 = vmatpush.msrb.mxu2 %v3917_v23 }
0x13e5   :  { %v1230_v33 = vpop.permute.xlu2 %1229 }
0x13e6   :  { %v1232_v53 = vmul.f32 %v1230_v33, %v1221_v16  ;;  %v3929_v33 = vld [vmem:[%s4429_s8 + $0x90] sm:$0xff] }
0x13e8   :  { %1234 = vrot.lane.b32.xlu2 %v1232_v53, %s3018_s18  ;;  %v3938_v53 = vld [vmem:[%s4429_s8 + $0x80] sm:$0xff] }
0x13fe   :  { %v1254_v27 = vpop.permute.xlu1 %1253 }
0x13ff   :  { %v1256_v29 = vmul.f32 %v1254_v27, %v1249_v26  ;;  %v3988_v27 = vld [vmem:[%s4430_s2 + $0x8] sm:$0xff] }
0x1401   :  { %1258 = vrot.lane.b32.xlu1 %v1256_v29, %s3018_s18  ;;  %v1464_v29 = vpop.f32.mrf.mxu2 }
0x1409   :  { %1223 = vrot.lane.b32.xlu1 %v1172_v43, %s3018_s18  ;;  %v1467_v43 = vpop.f32.mrf.mxu2 }
0x1411   :  { %1277 = vrot.lane.b32.xlu1 %v3754_v10, %s3019_s20 }
0x1442   :  { %v1235_v47 = vpop.permute.xlu2 %1234 }
0x1473   :  { %v1259_v45 = vpop.permute.xlu1 %1258 }
0x1474   :  { %v1261_v13 = vadd.f32 %v1259_v45, %v1250_v8  ;;  %v1508_v8 = vpop.f32.mrf.mxu3  ;;  %v1533_v45 = vperm.slane %v2773_v14, 1 }
0x1476   :  { %2910 = vtanh.f32 %v1261_v13 }
0x147b   :  { %v1224_v40 = vpop.permute.xlu1 %1223 }
0x147c   :  { %v2911_v42 = vpop.eup %2910  ;;  %v1226_v44 = vmul.f32 %v1224_v40, %v1221_v16 }
0x147d   :  { %1264 = vrot.lane.b32.xlu0 %v2911_v42, %s3018_s18 }
0x147e   :  { %v1237_v48 = vadd.f32 %v1235_v47, %v1226_v44  ;;  %v1470_v47 = vpop.f32.mrf.mxu2 }
0x1480   :  { %2912 = vtanh.f32 %v1237_v48  ;;  %v1511_v48 = vpop.f32.mrf.mxu3 }
0x1483   :  { %v1278_v7 = vpop.permute.xlu1 %1277 }
0x1486   :  { %v2913_v31 = vpop.eup %2912  ;;  %v1473_v61 = vpop.f32.mrf.mxu2 }
0x1487   :  { %1240 = vrot.lane.b32.xlu2 %v2913_v31, %s3018_s18 }
0x1488   :  { %v1514_v62 = vpop.f32.mrf.mxu3 }
0x14e1   :  { %v1241_v54 = vpop.permute.xlu2 %1240 }
0x14e2   :  { %v1243_v55 = vmul.f32 %v1241_v54, %v1221_v16  ;;  %v3922_v16 = vld [vmem:[%s4429_s8 + $0xa0] sm:$0xff] }
0x14e3   :  { %1605 = vmatpush.msra.mxu0 %v3922_v16  ;;  %1736 = vmatpush.msrb.mxu2 %v3922_v16 }
0x14e5   :  { %1606 = vmatpush.msra.mxu0 %v3929_v33  ;;  %1737 = vmatpush.msrb.mxu2 %v3929_v33 }
0x14e7   :  { %1607 = vmatpush.msra.mxu0 %v3938_v53  ;;  %1738 = vmatpush.msrb.mxu2 %v3938_v53 }
0x14e9   :  { %1993 = vmatpush.msra.mxu2 %v3881_v19 }
0x14eb   :  { %1994 = vmatpush.msra.mxu2 %v3886_v21 }
0x14ed   :  { %1995 = vmatpush.msra.mxu2 %v3893_v39 }
0x14ef   :  { %v1265_v50 = vpop.permute.xlu0 %1264  ;;  %1996 = vmatpush.msra.mxu2 %v3901_v11 }
0x14f0   :  { %v1267_v51 = vmul.f32 %v1265_v50, %v1249_v26  ;;  %v1316_v26 = vld [vmem:[#allocation3 + $0x78] sm:$0xff] }
0x14f1   :  { %1997 = vmatpush.msra.mxu2 %v3917_v23 }
0x14f2   :  { %1274 = vrot.lane.b32.xlu0 %v1267_v51, %s3020_s21 }
0x14f3   :  { %1998 = vmatpush.msra.mxu2 %v3922_v16 }
0x14f5   :  { %1999 = vmatpush.msra.mxu2 %v3929_v33 }
0x14f7   :  { %2000 = vmatpush.msra.mxu2 %v3938_v53 }
0x14fa   :  { %1269 = vrot.lane.b32.xlu0 %v1243_v55, %s3020_s21  ;;  %v1532_v55 = vperm.slane %v2773_v14, 0 }
0x1564   :  { %v1275_v20 = vpop.permute.xlu0 %1274 }
0x1565   :  { %v1280_v49 = vsel %vm36_vm3, %v1275_v20, %v1278_v7 }
0x1566   :  { %1284 = vst.msk [vmem:[#allocation3 + $0x40] sm:$0xff] %vm80_vm0, %v1280_v49 }
0x156c   :  { %v1270_v34 = vpop.permute.xlu0 %1269 }
0x156d   :  { %v1272_v35 = vsel %vm57_vm2, %v1270_v34, %v3754_v10  ;;  %v1309_v63 = vld [vmem:[#allocation3 + $0x40] sm:$0xff]  ;;  %v3865_v10 = vld [vmem:[%s4429_s8 + $0xa8] sm:$0xff] }
0x156e   :  { %1282 = vst.msk [vmem:[#allocation3 + $0x38] sm:$0xff] %vm80_vm0, %v1272_v35  ;;  %2741 = vmatmul.msk.f32.vlgmr.msrb.gmra.mxu0 %vm80_vm0, %v1309_v63  ;;  %2749 = vmatmul.msk.f32.vlgmr.msra.gmra.mxu1 %vm80_vm0, %v1309_v63 }
0x156f   :  { %1625 = vmatpush.msrb.mxu1 %v3865_v10  ;;  %1756 = vmatpush.msrb.mxu3 %v3865_v10 }
0x1570   :  { %1862 = vmatpush.msrb.mxu0 %v3881_v19 }
0x1571   :  { %1626 = vmatpush.msrb.mxu1 %v3876_v18  ;;  %1757 = vmatpush.msrb.mxu3 %v3876_v18 }
0x1572   :  { %1863 = vmatpush.msrb.mxu0 %v3886_v21 }
0x1573   :  { %1627 = vmatpush.msrb.mxu1 %v3912_v22  ;;  %1758 = vmatpush.msrb.mxu3 %v3912_v22 }
0x1574   :  { %1864 = vmatpush.msrb.mxu0 %v3893_v39 }
0x1575   :  { %v1308_v36 = vld [vmem:[#allocation3 + $0x38] sm:$0xff]  ;;  %1882 = vmatpush.msra.mxu1 %v3819_v3  ;;  %2013 = vmatpush.msra.mxu3 %v3819_v3 }
0x1576   :  { %2742 = vmatmul.msk.f32.gmra.mxu0 %vm80_vm0, %v1310_v12  ;;  %2750 = vmatmul.msk.f32.gmra.mxu1 %vm80_vm0, %v1310_v12  ;;  %v1476_v12 = vpop.f32.mrf.mxu2 }
0x1577   :  { %2764 = vmatmul.msk.f32.gmra.mxu2 %vm80_vm0, %v1308_v36  ;;  %2772 = vmatmul.msk.f32.gmra.mxu3 %vm80_vm0, %v1308_v36  ;;  %v1517_v36 = vpop.f32.mrf.mxu3 }
0x1578   :  { %1883 = vmatpush.msra.mxu1 %v3826_v5  ;;  %2014 = vmatpush.msra.mxu3 %v3826_v5 }
0x1579   :  { %1865 = vmatpush.msrb.mxu0 %v3901_v11 }
0x157a   :  { %1884 = vmatpush.msra.mxu1 %v3833_v6  ;;  %2015 = vmatpush.msra.mxu3 %v3833_v6 }
0x157b   :  { %1866 = vmatpush.msrb.mxu0 %v3917_v23 }
0x157c   :  { %1885 = vmatpush.msra.mxu1 %v3843_v32  ;;  %2016 = vmatpush.msra.mxu3 %v3843_v32 }
0x157d   :  { %1867 = vmatpush.msrb.mxu0 %v3922_v16 }
0x157e   :  { %2743 = vmatmul.msk.f32.gmra.mxu0 %vm80_vm0, %v1311_v17  ;;  %2751 = vmatmul.msk.f32.gmra.mxu1 %vm80_vm0, %v1311_v17 }
0x157f   :  { %1886 = vmatpush.msra.mxu1 %v3856_v38  ;;  %2017 = vmatpush.msra.mxu3 %v3856_v38 }
0x1580   :  { %1868 = vmatpush.msrb.mxu0 %v3929_v33 }
0x1581   :  { %1887 = vmatpush.msra.mxu1 %v3865_v10  ;;  %2018 = vmatpush.msra.mxu3 %v3865_v10 }
0x1582   :  { %1869 = vmatpush.msrb.mxu0 %v3938_v53 }
0x1583   :  { %1888 = vmatpush.msra.mxu1 %v3876_v18  ;;  %2019 = vmatpush.msra.mxu3 %v3876_v18 }
0x1585   :  { %1889 = vmatpush.msra.mxu1 %v3912_v22  ;;  %2020 = vmatpush.msra.mxu3 %v3912_v22 }
0x1586   :  { %2744 = vmatmul.msk.f32.gmra.mxu0 %vm80_vm0, %v1312_v15  ;;  %2752 = vmatmul.msk.f32.gmra.mxu1 %vm80_vm0, %v1312_v15 }
0x158e   :  { %2745 = vmatmul.msk.f32.gmra.mxu0 %vm80_vm0, %v1313_v24  ;;  %2753 = vmatmul.msk.f32.gmra.mxu1 %vm80_vm0, %v1313_v24 }
0x1596   :  { %2746 = vmatmul.msk.f32.gmra.mxu0 %vm80_vm0, %v1314_v37  ;;  %2754 = vmatmul.msk.f32.gmra.mxu1 %vm80_vm0, %v1314_v37 }
0x159e   :  { %2747 = vmatmul.msk.f32.gmra.mxu0 %vm80_vm0, %v1315_v41  ;;  %2755 = vmatmul.msk.f32.gmra.mxu1 %vm80_vm0, %v1315_v41 }
0x15a6   :  { %2748 = vmatmul.msk.f32.gmra.mxu0 %vm80_vm0, %v1316_v26  ;;  %2756 = vmatmul.msk.f32.gmra.mxu1 %vm80_vm0, %v1316_v26 }
0x15ae   :  { %2792 = vmatmul.msk.f32.vlgmr.msra.gmra.mxu0 %vm221_vm1, %v3988_v27  ;;  %2793 = vmatmul.msk.f32.vlgmr.msrb.gmra.mxu1 %vm221_vm1, %v3988_v27 }
0x15af   :  { %2124 = vmatpush.msra.mxu0 %v3881_v19  ;;  %2144 = vmatpush.msrb.mxu1 %v3819_v3 }
0x15b1   :  { %2125 = vmatpush.msra.mxu0 %v3886_v21  ;;  %2145 = vmatpush.msrb.mxu1 %v3826_v5 }
0x15b3   :  { %2126 = vmatpush.msra.mxu0 %v3893_v39  ;;  %2146 = vmatpush.msrb.mxu1 %v3833_v6 }
0x15b5   :  { %2127 = vmatpush.msra.mxu0 %v3901_v11  ;;  %2147 = vmatpush.msrb.mxu1 %v3843_v32 }
0x15b7   :  { %2128 = vmatpush.msra.mxu0 %v3917_v23  ;;  %2148 = vmatpush.msrb.mxu1 %v3856_v38 }
0x15b9   :  { %2129 = vmatpush.msra.mxu0 %v3922_v16  ;;  %2149 = vmatpush.msrb.mxu1 %v3865_v10 }
0x15bb   :  { %2130 = vmatpush.msra.mxu0 %v3929_v33  ;;  %2150 = vmatpush.msrb.mxu1 %v3876_v18 }
0x15bd   :  { %2131 = vmatpush.msra.mxu0 %v3938_v53  ;;  %2151 = vmatpush.msrb.mxu1 %v3912_v22 }
0x15eb   :  { %v1358_v13 = vpop.f32.mrf.mxu0  ;;  %v1399_v40 = vpop.f32.mrf.mxu1 }
0x15ec   :  { %v1506_v42 = vadd.f32 %v1505_v30, %v1399_v40 }
0x15ee   :  { %v4013_v44 = vadd.f32 %v1533_v45, %v1506_v42 }
0x15f3   :  { %v1361_v31 = vpop.f32.mrf.mxu0  ;;  %v1402_v50 = vpop.f32.mrf.mxu1 }
0x15f4   :  { %v1468_v51 = vadd.f32 %v1467_v43, %v1361_v31  ;;  %v1509_v54 = vadd.f32 %v1508_v8, %v1402_v50  ;;  %v1479_v43 = vpop.f32.mrf.mxu2  ;;  %v1520_v8 = vpop.f32.mrf.mxu3 }
0x15f6   :  { %v4015_v56 = vadd.f32 %v1532_v55, %v1468_v51  ;;  %v4017_v57 = vadd.f32 %v1533_v45, %v1509_v54 }
0x15fb   :  { %v1364_v58 = vpop.f32.mrf.mxu0  ;;  %v1405_v59 = vpop.f32.mrf.mxu1 }
0x15fc   :  { %v1471_v0 = vadd.f32 %v1470_v47, %v1364_v58  ;;  %v1512_v2 = vadd.f32 %v1511_v48, %v1405_v59  ;;  %v1482_v51 = vpop.f32.mrf.mxu2  ;;  %v1523_v54 = vpop.f32.mrf.mxu3 }
0x15fe   :  { %v4019_v7 = vadd.f32 %v1532_v55, %v1471_v0  ;;  %v4021_v20 = vadd.f32 %v1533_v45, %v1512_v2 }
0x1603   :  { %v1367_v49 = vpop.f32.mrf.mxu0  ;;  %v1408_v34 = vpop.f32.mrf.mxu1 }
0x1604   :  { %v1474_v35 = vadd.f32 %v1473_v61, %v1367_v49  ;;  %v1515_v63 = vadd.f32 %v1514_v62, %v1408_v34  ;;  %v1485_v49 = vpop.f32.mrf.mxu2 }
0x1606   :  { %v4023_v17 = vadd.f32 %v1532_v55, %v1474_v35  ;;  %v4025_v15 = vadd.f32 %v1533_v45, %v1515_v63 }
0x160b   :  { %v1370_v24 = vpop.f32.mrf.mxu0  ;;  %v1411_v37 = vpop.f32.mrf.mxu1 }
0x160c   :  { %v1477_v41 = vadd.f32 %v1476_v12, %v1370_v24  ;;  %v1518_v26 = vadd.f32 %v1517_v36, %v1411_v37  ;;  %v1526_v12 = vpop.f32.mrf.mxu3  ;;  %v1465_v36 = vadd.f32 %v1464_v29, %v1358_v13  ;;  %v2791_v29 = vld [vmem:[%s4432_s3 + $0x8] sm:$0xff] }
0x160e   :  { %v4027_v30 = vadd.f32 %v1533_v45, %v1518_v26  ;;  %v4029_v14 = vadd.f32 %v1532_v55, %v1477_v41  ;;  %v1536_v41 = vadd.f32 %v1532_v55, %v1465_v36 }
0x1613   :  { %v1373_v40 = vpop.f32.mrf.mxu0  ;;  %v1414_v42 = vpop.f32.mrf.mxu1 }
0x1614   :  { %v1480_v47 = vadd.f32 %v1479_v43, %v1373_v40  ;;  %v1521_v48 = vadd.f32 %v1520_v8, %v1414_v42 }
0x1616   :  { %v4031_v31 = vadd.f32 %v1533_v45, %v1521_v48  ;;  %v4033_v50 = vadd.f32 %v1532_v55, %v1480_v47 }
0x161b   :  { %v1376_v58 = vpop.f32.mrf.mxu0  ;;  %v1417_v59 = vpop.f32.mrf.mxu1 }
0x161c   :  { %v1483_v61 = vadd.f32 %v1482_v51, %v1376_v58  ;;  %v1524_v62 = vadd.f32 %v1523_v54, %v1417_v59 }
0x161e   :  { %v4035_v0 = vadd.f32 %v1533_v45, %v1524_v62  ;;  %v4037_v2 = vadd.f32 %v1532_v55, %v1483_v61 }
0x1623   :  { %v1379_v34 = vpop.f32.mrf.mxu0  ;;  %v1420_v35 = vpop.f32.mrf.mxu1 }
0x1624   :  { %v1486_v63 = vadd.f32 %v1485_v49, %v1379_v34  ;;  %v1527_v24 = vadd.f32 %v1526_v12, %v1420_v35 }
0x1626   :  { %v4039_v37 = vadd.f32 %v1532_v55, %v1486_v63  ;;  %v1551_v26 = vadd.f32 %v1533_v45, %v1527_v24 }
0x162b   :  { %v1609_v43 = vpop.f32.mrf.mxu0  ;;  %v1629_v8 = vpop.f32.mrf.mxu1 }
0x162c   :  { %v1633_v40 = vadd.f32 %v1609_v43, %v1536_v41  ;;  %v1661_v42 = vadd.f32 %v1629_v8, %v1551_v26 }
0x162e   :  { %2914 = vtanh.f32 %v1633_v40  ;;  %v1634_v13 = vmul.f32 0.5, %v1633_v40  ;;  %v1662_v59 = vmul.f32 0.5, %v1661_v42 }
0x162f   :  { %2916 = vtanh.f32 %v1661_v42 }
0x1630   :  { %2918 = vtanh.f32 %v1634_v13 }
0x1631   :  { %2920 = vtanh.f32 %v1662_v59 }
0x1634   :  { %v2915_v47 = vpop.eup %2914 }
0x1635   :  { %v2917_v48 = vpop.eup %2916  ;;  %1645 = vrot.lane.b32.xlu2 %v2915_v47, %s3018_s18 }
0x1636   :  { %1669 = vrot.lane.b32.xlu1 %v2917_v48, %s3018_s18  ;;  %v2919_v45 = vpop.eup %2918 }
0x1637   :  { %v1636_v55 = vmul.f32 0.5, %v2919_v45  ;;  %v2921_v61 = vpop.eup %2920 }
0x1638   :  { %v1664_v62 = vmul.f32 0.5, %v2921_v61 }
0x1639   :  { %v1637_v51 = vadd.f32 0.5, %v1636_v55 }
0x163a   :  { %v1665_v49 = vadd.f32 0.5, %v1664_v62 }
0x163c   :  { %v1666_v26 = vmul.f32 %v2791_v29, %v1665_v49 }
0x163e   :  { %1639 = vrot.lane.b32.xlu1 %v2791_v29, %s3018_s18 }
0x168f   :  { %v1646_v54 = vpop.permute.xlu2 %1645 }
0x1690   :  { %v1648_v58 = vmul.f32 %v1646_v54, %v1637_v51 }
0x1692   :  { %1650 = vrot.lane.b32.xlu2 %v1648_v58, %s3018_s18 }
0x16a8   :  { %v1670_v34 = vpop.permute.xlu1 %1669 }
0x16a9   :  { %v1672_v35 = vmul.f32 %v1670_v34, %v1665_v49 }
0x16ab   :  { %1674 = vrot.lane.b32.xlu0 %v1672_v35, %s3018_s18 }
0x16b0   :  { %v1640_v63 = vpop.permute.xlu1 %1639 }
0x16b1   :  { %v1642_v12 = vmul.f32 %v1640_v63, %v1637_v51 }
0x16ec   :  { %v1651_v36 = vpop.permute.xlu2 %1650 }
0x16ed   :  { %v1653_v24 = vadd.f32 %v1651_v36, %v1642_v12 }
0x16ef   :  { %2922 = vtanh.f32 %v1653_v24 }
0x16f5   :  { %v2923_v41 = vpop.eup %2922 }
0x16f6   :  { %1656 = vrot.lane.b32.xlu1 %v2923_v41, %s3018_s18 }
0x171d   :  { %v1675_v43 = vpop.permute.xlu0 %1674 }
0x171e   :  { %v1677_v8 = vadd.f32 %v1675_v43, %v1666_v26 }
0x1720   :  { %2924 = vtanh.f32 %v1677_v8 }
0x1726   :  { %v2925_v40 = vpop.eup %2924 }
0x1727   :  { %1680 = vrot.lane.b32.xlu0 %v2925_v40, %s3018_s18 }
0x172f   :  { %1698 = vrot.lane.b32.xlu0 %v3988_v27, %s3019_s20 }
0x1737   :  { %1703 = vrot.lane.b32.xlu0 %v1677_v8, %s3019_s20 }
0x173f   :  { %1690 = vrot.lane.b32.xlu0 %v1653_v24, %s3019_s20 }
0x1768   :  { %v1657_v42 = vpop.permute.xlu1 %1656 }
0x1769   :  { %v1659_v47 = vmul.f32 %v1657_v42, %v1637_v51 }
0x176b   :  { %1685 = vrot.lane.b32.xlu1 %v1659_v47, %s3020_s21 }
0x1773   :  { %1706 = vrot.lane.b32.xlu1 %v2791_v29, %s3019_s20 }
0x1799   :  { %v1681_v48 = vpop.permute.xlu0 %1680 }
0x179a   :  { %v1683_v13 = vmul.f32 %v1681_v48, %v1665_v49 }
0x179c   :  { %1695 = vrot.lane.b32.xlu2 %v1683_v13, %s3020_s21 }
0x17a1   :  { %v1699_v45 = vpop.permute.xlu0 %1698 }
0x17a9   :  { %v1704_v54 = vpop.permute.xlu0 %1703 }
0x17b1   :  { %v1691_v35 = vpop.permute.xlu0 %1690 }
0x17dd   :  { %v1686_v55 = vpop.permute.xlu1 %1685 }
0x17de   :  { %v1688_v62 = vsel %vm36_vm3, %v1686_v55, %v3988_v27  ;;  %v1693_v27 = vsel %vm36_vm3, %v1691_v35, %v2791_v29 }
0x17e5   :  { %v1707_v58 = vpop.permute.xlu1 %1706 }
0x17e6   :  { %v1709_v59 = vsel %vm57_vm2, %v1704_v54, %v1707_v58 }
0x17e7   :  { %1716 = vrot.lane.b32.xlu1 %v1709_v59, %s3018_s18 }
0x17f6   :  { %v1696_v61 = vpop.permute.xlu2 %1695 }
0x17f7   :  { %v1701_v51 = vsel %vm57_vm2, %v1696_v61, %v1699_v45 }
0x17f8   :  { %1711 = vrot.lane.b32.xlu2 %v1701_v51, %s3018_s18 }
0x1852   :  { %v1712_v49 = vpop.permute.xlu2 %1711 }
0x1853   :  { %v4068_v34 = vsel %vm80_vm0, %v1688_v62, %v1712_v49 }
0x1854   :  { %2794 = vmatmul.msk.f32.vlgmr.msrb.gmra.mxu2 %vm221_vm1, %v4068_v34  ;;  %2795 = vmatmul.msk.f32.vlgmr.msrb.gmra.mxu3 %vm221_vm1, %v4068_v34 }
0x1855   :  { %2255 = vmatpush.msrb.mxu2 %v3881_v19  ;;  %2275 = vmatpush.msrb.mxu3 %v3819_v3 }
0x1857   :  { %2256 = vmatpush.msrb.mxu2 %v3886_v21  ;;  %2276 = vmatpush.msrb.mxu3 %v3826_v5 }
0x1859   :  { %v1717_v63 = vpop.permute.xlu1 %1716  ;;  %2257 = vmatpush.msrb.mxu2 %v3893_v39  ;;  %2277 = vmatpush.msrb.mxu3 %v3833_v6 }
0x185a   :  { %v4083_v12 = vsel %vm80_vm0, %v1693_v27, %v1717_v63 }
0x185b   :  { %1770 = vrot.lane.b32.xlu1 %v4083_v12, %s3018_s18  ;;  %2258 = vmatpush.msrb.mxu2 %v3901_v11 }
0x185c   :  { %2278 = vmatpush.msrb.mxu3 %v3843_v32 }
0x185d   :  { %2259 = vmatpush.msrb.mxu2 %v3917_v23 }
0x185e   :  { %2279 = vmatpush.msrb.mxu3 %v3856_v38 }
0x185f   :  { %2260 = vmatpush.msrb.mxu2 %v3922_v16 }
0x1860   :  { %2280 = vmatpush.msrb.mxu3 %v3865_v10 }
0x1861   :  { %2261 = vmatpush.msrb.mxu2 %v3929_v33 }
0x1862   :  { %2281 = vmatpush.msrb.mxu3 %v3876_v18 }
0x1863   :  { %2262 = vmatpush.msrb.mxu2 %v3938_v53 }
0x1864   :  { %2282 = vmatpush.msrb.mxu3 %v3912_v22 }
0x18cd   :  { %v1771_v59 = vpop.permute.xlu1 %1770 }
0x18d7   :  { %v1760_v29 = vpop.f32.mrf.mxu3  ;;  %v1740_v24 = vpop.f32.mrf.mxu2 }
0x18d8   :  { %v1792_v36 = vadd.f32 %v1760_v29, %v4035_v0  ;;  %v1764_v41 = vadd.f32 %v1740_v24, %v4015_v56 }
0x18da   :  { %2926 = vtanh.f32 %v1792_v36  ;;  %v1793_v8 = vmul.f32 0.5, %v1792_v36  ;;  %v1765_v40 = vmul.f32 0.5, %v1764_v41 }
0x18db   :  { %2928 = vtanh.f32 %v1764_v41 }
0x18dc   :  { %2930 = vtanh.f32 %v1793_v8 }
0x18dd   :  { %2932 = vtanh.f32 %v1765_v40 }
0x18e0   :  { %v2927_v26 = vpop.eup %2926 }
0x18e1   :  { %1800 = vrot.lane.b32.xlu2 %v2927_v26, %s3018_s18  ;;  %v2929_v43 = vpop.eup %2928 }
0x18e2   :  { %v2931_v42 = vpop.eup %2930 }
0x18e3   :  { %v1795_v47 = vmul.f32 0.5, %v2931_v42  ;;  %v2933_v13 = vpop.eup %2932 }
0x18e4   :  { %v1767_v55 = vmul.f32 0.5, %v2933_v13 }
0x18e5   :  { %v1796_v48 = vadd.f32 0.5, %v1795_v47 }
0x18e6   :  { %v1768_v56 = vadd.f32 0.5, %v1767_v55 }
0x18e7   :  { %v1797_v35 = vmul.f32 %v1796_v48, %v4083_v12 }
0x18e8   :  { %v1773_v61 = vmul.f32 %v1771_v59, %v1768_v56 }
0x18e9   :  { %1776 = vrot.lane.b32.xlu2 %v2929_v43, %s3018_s18 }
0x193b   :  { %v1801_v0 = vpop.permute.xlu2 %1800 }
0x193c   :  { %v1803_v45 = vmul.f32 %v1801_v0, %v1796_v48 }
0x193e   :  { %1805 = vrot.lane.b32.xlu0 %v1803_v45, %s3018_s18 }
0x1943   :  { %v1777_v54 = vpop.permute.xlu2 %1776 }
0x1944   :  { %v1779_v58 = vmul.f32 %v1777_v54, %v1768_v56 }
0x1946   :  { %1781 = vrot.lane.b32.xlu2 %v1779_v58, %s3018_s18 }
0x19a0   :  { %v1782_v51 = vpop.permute.xlu2 %1781 }
0x19a1   :  { %v1784_v62 = vadd.f32 %v1782_v51, %v1773_v61 }
0x19a3   :  { %2934 = vtanh.f32 %v1784_v62 }
0x19a9   :  { %v2935_v49 = vpop.eup %2934 }
0x19aa   :  { %1787 = vrot.lane.b32.xlu1 %v2935_v49, %s3018_s18 }
0x19b0   :  { %v1806_v27 = vpop.permute.xlu0 %1805 }
0x19b1   :  { %v1808_v63 = vadd.f32 %v1806_v27, %v1797_v35 }
0x19b3   :  { %2936 = vtanh.f32 %v1808_v63 }
0x19b9   :  { %v2937_v29 = vpop.eup %2936 }
0x19ba   :  { %1811 = vrot.lane.b32.xlu0 %v2937_v29, %s3018_s18 }
0x19c2   :  { %1829 = vrot.lane.b32.xlu0 %v4068_v34, %s3019_s20 }
0x19ca   :  { %1834 = vrot.lane.b32.xlu0 %v1808_v63, %s3019_s20 }
0x19d2   :  { %1821 = vrot.lane.b32.xlu0 %v1784_v62, %s3019_s20 }
0x1a1c   :  { %v1788_v36 = vpop.permute.xlu1 %1787 }
0x1a1d   :  { %v1790_v24 = vmul.f32 %v1788_v36, %v1768_v56 }
0x1a1f   :  { %1816 = vrot.lane.b32.xlu1 %v1790_v24, %s3020_s21 }
0x1a27   :  { %1837 = vrot.lane.b32.xlu1 %v4083_v12, %s3019_s20 }
0x1a2c   :  { %v1812_v41 = vpop.permute.xlu0 %1811 }
0x1a2d   :  { %v1814_v26 = vmul.f32 %v1812_v41, %v1796_v48 }
0x1a2f   :  { %1826 = vrot.lane.b32.xlu2 %v1814_v26, %s3020_s21 }
0x1a34   :  { %v1830_v43 = vpop.permute.xlu0 %1829 }
0x1a3c   :  { %v1835_v47 = vpop.permute.xlu0 %1834 }
0x1a89   :  { %v1827_v8 = vpop.permute.xlu2 %1826 }
0x1a8a   :  { %v1832_v40 = vsel %vm54_vm4, %v1827_v8, %v1830_v43 }
0x1a8b   :  { %1842 = vrot.lane.b32.xlu2 %v1832_v40, %s3018_s18 }
0x1a91   :  { %v1817_v42 = vpop.permute.xlu1 %1816 }
0x1a92   :  { %v1819_v48 = vsel %vm39_vm5, %v1817_v42, %v4068_v34  ;;  %v1822_v34 = vpop.permute.xlu0 %1821 }
0x1a93   :  { %v1824_v56 = vsel %vm39_vm5, %v1822_v34, %v4083_v12 }
0x1a99   :  { %v1838_v13 = vpop.permute.xlu1 %1837 }
0x1a9a   :  { %v1840_v0 = vsel %vm54_vm4, %v1835_v47, %v1838_v13 }
0x1a9b   :  { %1847 = vrot.lane.b32.xlu1 %v1840_v0, %s3018_s18 }
0x1ae5   :  { %v1843_v45 = vpop.permute.xlu2 %1842 }
0x1ae6   :  { %v4124_v55 = vsel %vm80_vm0, %v1819_v48, %v1843_v45 }
0x1ae7   :  { %2796 = vmatmul.msk.f32.vlgmr.msrb.gmra.mxu0 %vm221_vm1, %v4124_v55  ;;  %2797 = vmatmul.msk.f32.vlgmr.msra.gmra.mxu1 %vm221_vm1, %v4124_v55 }
0x1ae8   :  { %2386 = vmatpush.msrb.mxu0 %v3881_v19  ;;  %2406 = vmatpush.msra.mxu1 %v3819_v3 }
0x1aea   :  { %2387 = vmatpush.msrb.mxu0 %v3886_v21  ;;  %2407 = vmatpush.msra.mxu1 %v3826_v5 }
0x1aec   :  { %2388 = vmatpush.msrb.mxu0 %v3893_v39  ;;  %2408 = vmatpush.msra.mxu1 %v3833_v6 }
0x1aee   :  { %2389 = vmatpush.msrb.mxu0 %v3901_v11  ;;  %2409 = vmatpush.msra.mxu1 %v3843_v32 }
0x1af0   :  { %2390 = vmatpush.msrb.mxu0 %v3917_v23  ;;  %2410 = vmatpush.msra.mxu1 %v3856_v38 }
0x1af2   :  { %2391 = vmatpush.msrb.mxu0 %v3922_v16  ;;  %2411 = vmatpush.msra.mxu1 %v3865_v10 }
0x1af4   :  { %2392 = vmatpush.msrb.mxu0 %v3929_v33  ;;  %2412 = vmatpush.msra.mxu1 %v3876_v18 }
0x1af6   :  { %2393 = vmatpush.msrb.mxu0 %v3938_v53  ;;  %2413 = vmatpush.msra.mxu1 %v3912_v22 }
0x1b0d   :  { %v1848_v54 = vpop.permute.xlu1 %1847 }
0x1b0e   :  { %v4150_v58 = vsel %vm80_vm0, %v1824_v56, %v1848_v54 }
0x1b0f   :  { %1901 = vrot.lane.b32.xlu1 %v4150_v58, %s3018_s18 }
0x1b64   :  { %v1891_v59 = vpop.f32.mrf.mxu1  ;;  %v1871_v51 = vpop.f32.mrf.mxu0 }
0x1b65   :  { %v1923_v61 = vadd.f32 %v1891_v59, %v4031_v31  ;;  %v1895_v62 = vadd.f32 %v1871_v51, %v4019_v7 }
0x1b67   :  { %2938 = vtanh.f32 %v1923_v61  ;;  %v1924_v12 = vmul.f32 0.5, %v1923_v61  ;;  %v1896_v27 = vmul.f32 0.5, %v1895_v62 }
0x1b68   :  { %2940 = vtanh.f32 %v1895_v62 }
0x1b69   :  { %2942 = vtanh.f32 %v1924_v12 }
0x1b6a   :  { %2944 = vtanh.f32 %v1896_v27 }
0x1b6d   :  { %v2939_v49 = vpop.eup %2938 }
0x1b6e   :  { %1931 = vrot.lane.b32.xlu2 %v2939_v49, %s3018_s18  ;;  %v2941_v35 = vpop.eup %2940 }
0x1b6f   :  { %v2943_v63 = vpop.eup %2942 }
0x1b70   :  { %v1926_v29 = vmul.f32 0.5, %v2943_v63  ;;  %v2945_v24 = vpop.eup %2944 }
0x1b71   :  { %v1898_v26 = vmul.f32 0.5, %v2945_v24 }
0x1b72   :  { %v1927_v36 = vadd.f32 0.5, %v1926_v29 }
0x1b73   :  { %v1899_v7 = vadd.f32 0.5, %v1898_v26 }
0x1b74   :  { %v1928_v48 = vmul.f32 %v1927_v36, %v4150_v58 }
0x1b76   :  { %1907 = vrot.lane.b32.xlu2 %v2941_v35, %s3018_s18 }
0x1b81   :  { %v1902_v40 = vpop.permute.xlu1 %1901 }
0x1b82   :  { %v1904_v42 = vmul.f32 %v1902_v40, %v1899_v7 }
0x1bc8   :  { %v1932_v31 = vpop.permute.xlu2 %1931 }
0x1bc9   :  { %v1934_v41 = vmul.f32 %v1932_v31, %v1927_v36 }
0x1bcb   :  { %1936 = vrot.lane.b32.xlu0 %v1934_v41, %s3018_s18 }
0x1bd0   :  { %v1908_v43 = vpop.permute.xlu2 %1907 }
0x1bd1   :  { %v1910_v8 = vmul.f32 %v1908_v43, %v1899_v7 }
0x1bd3   :  { %1912 = vrot.lane.b32.xlu2 %v1910_v8, %s3018_s18 }
0x1c2d   :  { %v1913_v47 = vpop.permute.xlu2 %1912 }
0x1c2e   :  { %v1915_v13 = vadd.f32 %v1913_v47, %v1904_v42 }
0x1c30   :  { %2946 = vtanh.f32 %v1915_v13 }
0x1c36   :  { %v2947_v0 = vpop.eup %2946 }
0x1c37   :  { %1918 = vrot.lane.b32.xlu1 %v2947_v0, %s3018_s18 }
0x1c3d   :  { %v1937_v45 = vpop.permute.xlu0 %1936 }
0x1c3e   :  { %v1939_v34 = vadd.f32 %v1937_v45, %v1928_v48 }
0x1c40   :  { %2948 = vtanh.f32 %v1939_v34 }
0x1c46   :  { %v2949_v56 = vpop.eup %2948 }
0x1c47   :  { %1942 = vrot.lane.b32.xlu0 %v2949_v56, %s3018_s18 }
0x1c4f   :  { %1960 = vrot.lane.b32.xlu0 %v4124_v55, %s3019_s20 }
0x1c57   :  { %1965 = vrot.lane.b32.xlu0 %v1939_v34, %s3019_s20 }
0x1c5f   :  { %1952 = vrot.lane.b32.xlu0 %v1915_v13, %s3019_s20 }
0x1ca9   :  { %v1919_v54 = vpop.permute.xlu1 %1918 }
0x1caa   :  { %v1921_v59 = vmul.f32 %v1919_v54, %v1899_v7 }
0x1cac   :  { %1947 = vrot.lane.b32.xlu1 %v1921_v59, %s3020_s21 }
0x1cb4   :  { %1968 = vrot.lane.b32.xlu1 %v4150_v58, %s3019_s20 }
0x1cb9   :  { %v1943_v61 = vpop.permute.xlu0 %1942 }
0x1cba   :  { %v1945_v51 = vmul.f32 %v1943_v61, %v1927_v36 }
0x1cbc   :  { %1957 = vrot.lane.b32.xlu2 %v1945_v51, %s3020_s21 }
0x1cc1   :  { %v1961_v62 = vpop.permute.xlu0 %1960 }
0x1cc9   :  { %v1966_v27 = vpop.permute.xlu0 %1965 }
0x1d16   :  { %v1958_v49 = vpop.permute.xlu2 %1957 }
0x1d17   :  { %v1963_v35 = vsel %vm51_vm6, %v1958_v49, %v1961_v62 }
0x1d18   :  { %1973 = vrot.lane.b32.xlu2 %v1963_v35, %s3018_s18 }
0x1d1e   :  { %v1948_v12 = vpop.permute.xlu1 %1947 }
0x1d1f   :  { %v1950_v36 = vsel %vm42_vm7, %v1948_v12, %v4124_v55 }
0x1d26   :  { %v1969_v63 = vpop.permute.xlu1 %1968 }
0x1d27   :  { %v1971_v29 = vsel %vm51_vm6, %v1966_v27, %v1969_v63 }
0x1d28   :  { %1978 = vrot.lane.b32.xlu1 %v1971_v29, %s3018_s18 }
0x1d72   :  { %v1974_v24 = vpop.permute.xlu2 %1973 }
0x1d73   :  { %v4181_v31 = vsel %vm80_vm0, %v1950_v36, %v1974_v24 }
0x1d74   :  { %2798 = vmatmul.msk.f32.vlgmr.msra.gmra.mxu2 %vm221_vm1, %v4181_v31  ;;  %2799 = vmatmul.msk.f32.vlgmr.msra.gmra.mxu3 %vm221_vm1, %v4181_v31 }
0x1d75   :  { %2517 = vmatpush.msra.mxu2 %v3881_v19  ;;  %2537 = vmatpush.msra.mxu3 %v3819_v3  ;;  %v1953_v3 = vpop.permute.xlu0 %1952 }
0x1d77   :  { %2518 = vmatpush.msra.mxu2 %v3886_v21  ;;  %2538 = vmatpush.msra.mxu3 %v3826_v5  ;;  %v1955_v5 = vsel %vm42_vm7, %v1953_v3, %v4150_v58 }
0x1d79   :  { %2519 = vmatpush.msra.mxu2 %v3893_v39  ;;  %2539 = vmatpush.msra.mxu3 %v3833_v6 }
0x1d7b   :  { %2520 = vmatpush.msra.mxu2 %v3901_v11  ;;  %2540 = vmatpush.msra.mxu3 %v3843_v32 }
0x1d7d   :  { %2521 = vmatpush.msra.mxu2 %v3917_v23  ;;  %2541 = vmatpush.msra.mxu3 %v3856_v38 }
0x1d7f   :  { %2522 = vmatpush.msra.mxu2 %v3922_v16  ;;  %2542 = vmatpush.msra.mxu3 %v3865_v10 }
0x1d81   :  { %2523 = vmatpush.msra.mxu2 %v3929_v33  ;;  %2543 = vmatpush.msra.mxu3 %v3876_v18 }
0x1d83   :  { %2524 = vmatpush.msra.mxu2 %v3938_v53  ;;  %2544 = vmatpush.msra.mxu3 %v3912_v22 }
0x1d9a   :  { %v1979_v6 = vpop.permute.xlu1 %1978 }
0x1d9b   :  { %v4207_v32 = vsel %vm80_vm0, %v1955_v5, %v1979_v6 }
0x1d9c   :  { %2032 = vrot.lane.b32.xlu1 %v4207_v32, %s3018_s18 }
0x1df7   :  { %v2022_v38 = vpop.f32.mrf.mxu3  ;;  %v2002_v18 = vpop.f32.mrf.mxu2 }
0x1df8   :  { %v2054_v10 = vadd.f32 %v2022_v38, %v4027_v30  ;;  %v2026_v19 = vadd.f32 %v2002_v18, %v4023_v17 }
0x1dfa   :  { %2950 = vtanh.f32 %v2054_v10  ;;  %v2055_v11 = vmul.f32 0.5, %v2054_v10  ;;  %v2027_v22 = vmul.f32 0.5, %v2026_v19 }
0x1dfb   :  { %2952 = vtanh.f32 %v2026_v19 }
0x1dfc   :  { %2954 = vtanh.f32 %v2055_v11 }
0x1dfd   :  { %2956 = vtanh.f32 %v2027_v22 }
0x1e00   :  { %v2951_v21 = vpop.eup %2950 }
0x1e01   :  { %2062 = vrot.lane.b32.xlu2 %v2951_v21, %s3018_s18  ;;  %v2953_v39 = vpop.eup %2952 }
0x1e02   :  { %v2955_v23 = vpop.eup %2954 }
0x1e03   :  { %v2057_v16 = vmul.f32 0.5, %v2955_v23  ;;  %v2957_v53 = vpop.eup %2956 }
0x1e04   :  { %v2029_v58 = vmul.f32 0.5, %v2957_v53 }
0x1e05   :  { %v2058_v33 = vadd.f32 0.5, %v2057_v16 }
0x1e06   :  { %v2030_v17 = vadd.f32 0.5, %v2029_v58 }
0x1e07   :  { %v2059_v47 = vmul.f32 %v2058_v33, %v4207_v32 }
0x1e09   :  { %2038 = vrot.lane.b32.xlu2 %v2953_v39, %s3018_s18 }
0x1e0e   :  { %v2033_v7 = vpop.permute.xlu1 %2032 }
0x1e0f   :  { %v2035_v43 = vmul.f32 %v2033_v7, %v2030_v17 }
0x1e5b   :  { %v2063_v30 = vpop.permute.xlu2 %2062 }
0x1e5c   :  { %v2065_v55 = vmul.f32 %v2063_v30, %v2058_v33 }
0x1e5e   :  { %2067 = vrot.lane.b32.xlu0 %v2065_v55, %s3018_s18 }
0x1e63   :  { %v2039_v41 = vpop.permute.xlu2 %2038 }
0x1e64   :  { %v2041_v26 = vmul.f32 %v2039_v41, %v2030_v17 }
0x1e66   :  { %2043 = vrot.lane.b32.xlu2 %v2041_v26, %s3018_s18 }
0x1ec0   :  { %v2044_v8 = vpop.permute.xlu2 %2043 }
0x1ec1   :  { %v2046_v40 = vadd.f32 %v2044_v8, %v2035_v43 }
0x1ec3   :  { %2958 = vtanh.f32 %v2046_v40 }
0x1ec9   :  { %v2959_v42 = vpop.eup %2958 }
0x1eca   :  { %2049 = vrot.lane.b32.xlu1 %v2959_v42, %s3018_s18 }
0x1ed0   :  { %v2068_v13 = vpop.permute.xlu0 %2067 }
0x1ed1   :  { %v2070_v0 = vadd.f32 %v2068_v13, %v2059_v47 }
0x1ed3   :  { %2960 = vtanh.f32 %v2070_v0 }
0x1ed9   :  { %v2961_v48 = vpop.eup %2960 }
0x1eda   :  { %2073 = vrot.lane.b32.xlu0 %v2961_v48, %s3018_s18 }
0x1ee2   :  { %2091 = vrot.lane.b32.xlu0 %v4181_v31, %s3019_s20 }
0x1eea   :  { %2096 = vrot.lane.b32.xlu0 %v2070_v0, %s3019_s20 }
0x1ef2   :  { %2083 = vrot.lane.b32.xlu0 %v2046_v40, %s3019_s20 }
0x1f3c   :  { %v2050_v45 = vpop.permute.xlu1 %2049 }
0x1f3d   :  { %v2052_v34 = vmul.f32 %v2050_v45, %v2030_v17 }
0x1f3f   :  { %2078 = vrot.lane.b32.xlu1 %v2052_v34, %s3020_s21 }
0x1f47   :  { %2099 = vrot.lane.b32.xlu1 %v4207_v32, %s3019_s20 }
0x1f4c   :  { %v2074_v56 = vpop.permute.xlu0 %2073 }
0x1f4d   :  { %v2076_v54 = vmul.f32 %v2074_v56, %v2058_v33 }
0x1f4f   :  { %2088 = vrot.lane.b32.xlu2 %v2076_v54, %s3020_s21 }
0x1f54   :  { %v2092_v59 = vpop.permute.xlu0 %2091 }
0x1f5c   :  { %v2097_v49 = vpop.permute.xlu0 %2096 }
0x1f64   :  { %v2084_v36 = vpop.permute.xlu0 %2083 }
0x1f65   :  { %v2086_v24 = vsel %vm45_vm9, %v2084_v36, %v4207_v32 }
0x1fa9   :  { %v2089_v61 = vpop.permute.xlu2 %2088 }
0x1faa   :  { %v2094_v51 = vsel %vm48_vm8, %v2089_v61, %v2092_v59 }
0x1fab   :  { %2104 = vrot.lane.b32.xlu2 %v2094_v51, %s3018_s18 }
0x1fb1   :  { %v2079_v62 = vpop.permute.xlu1 %2078 }
0x1fb2   :  { %v2081_v27 = vsel %vm45_vm9, %v2079_v62, %v4181_v31 }
0x1fb9   :  { %v2100_v35 = vpop.permute.xlu1 %2099 }
0x1fba   :  { %v2102_v12 = vsel %vm48_vm8, %v2097_v49, %v2100_v35 }
0x1fbb   :  { %2109 = vrot.lane.b32.xlu1 %v2102_v12, %s3018_s18 }
0x2005   :  { %v2105_v63 = vpop.permute.xlu2 %2104 }
0x2006   :  { %v4238_v29 = vsel %vm80_vm0, %v2081_v27, %v2105_v63 }
0x2007   :  { %2800 = vmatmul.msk.f32.vlgmr.msra.gmra.mxu0 %vm221_vm1, %v4238_v29  ;;  %2801 = vmatmul.msk.f32.vlgmr.msrb.gmra.mxu1 %vm221_vm1, %v4238_v29 }
0x202d   :  { %v2110_v3 = vpop.permute.xlu1 %2109 }
0x202e   :  { %v4248_v5 = vsel %vm80_vm0, %v2086_v24, %v2110_v3 }
0x202f   :  { %2163 = vrot.lane.b32.xlu1 %v4248_v5, %s3018_s18 }
0x2084   :  { %v2153_v31 = vpop.f32.mrf.mxu1  ;;  %v2133_v38 = vpop.f32.mrf.mxu0 }
0x2085   :  { %v2185_v6 = vadd.f32 %v2153_v31, %v4025_v15  ;;  %v2157_v10 = vadd.f32 %v2133_v38, %v4029_v14 }
0x2087   :  { %2962 = vtanh.f32 %v2185_v6  ;;  %v2186_v32 = vmul.f32 0.5, %v2185_v6  ;;  %v2158_v21 = vmul.f32 0.5, %v2157_v10 }
0x2088   :  { %2964 = vtanh.f32 %v2157_v10 }
0x2089   :  { %2966 = vtanh.f32 %v2186_v32 }
0x208a   :  { %2968 = vtanh.f32 %v2158_v21 }
0x208d   :  { %v2963_v18 = vpop.eup %2962 }
0x208e   :  { %2193 = vrot.lane.b32.xlu2 %v2963_v18, %s3018_s18  ;;  %v2965_v19 = vpop.eup %2964 }
0x208f   :  { %v2967_v39 = vpop.eup %2966 }
0x2090   :  { %v2188_v11 = vmul.f32 0.5, %v2967_v39  ;;  %v2969_v23 = vpop.eup %2968 }
0x2091   :  { %v2160_v33 = vmul.f32 0.5, %v2969_v23 }
0x2092   :  { %v2189_v22 = vadd.f32 0.5, %v2188_v11 }
0x2093   :  { %v2161_v14 = vadd.f32 0.5, %v2160_v33 }
0x2094   :  { %v2190_v7 = vmul.f32 %v2189_v22, %v4248_v5 }
0x2096   :  { %2169 = vrot.lane.b32.xlu2 %v2965_v19, %s3018_s18 }
0x20a1   :  { %v2164_v55 = vpop.permute.xlu1 %2163 }
0x20a2   :  { %v2166_v58 = vmul.f32 %v2164_v55, %v2161_v14 }
0x20e8   :  { %v2194_v15 = vpop.permute.xlu2 %2193 }
0x20e9   :  { %v2196_v16 = vmul.f32 %v2194_v15, %v2189_v22 }
0x20eb   :  { %2198 = vrot.lane.b32.xlu0 %v2196_v16, %s3018_s18 }
0x20f0   :  { %v2170_v53 = vpop.permute.xlu2 %2169 }
0x20f1   :  { %v2172_v30 = vmul.f32 %v2170_v53, %v2161_v14 }
0x20f3   :  { %2174 = vrot.lane.b32.xlu2 %v2172_v30, %s3018_s18 }
0x214d   :  { %v2175_v17 = vpop.permute.xlu2 %2174 }
0x214e   :  { %v2177_v41 = vadd.f32 %v2175_v17, %v2166_v58 }
0x2150   :  { %2970 = vtanh.f32 %v2177_v41 }
0x2156   :  { %v2971_v26 = vpop.eup %2970 }
0x2157   :  { %2180 = vrot.lane.b32.xlu1 %v2971_v26, %s3018_s18 }
0x215d   :  { %v2199_v43 = vpop.permute.xlu0 %2198 }
0x215e   :  { %v2201_v8 = vadd.f32 %v2199_v43, %v2190_v7 }
0x2160   :  { %2972 = vtanh.f32 %v2201_v8 }
0x2166   :  { %v2973_v40 = vpop.eup %2972 }
0x2167   :  { %2204 = vrot.lane.b32.xlu0 %v2973_v40, %s3018_s18 }
0x216f   :  { %2222 = vrot.lane.b32.xlu0 %v4238_v29, %s3019_s20 }
0x2177   :  { %2227 = vrot.lane.b32.xlu0 %v2201_v8, %s3019_s20 }
0x217f   :  { %2214 = vrot.lane.b32.xlu0 %v2177_v41, %s3019_s20 }
0x21c9   :  { %v2181_v42 = vpop.permute.xlu1 %2180 }
0x21ca   :  { %v2183_v47 = vmul.f32 %v2181_v42, %v2161_v14 }
0x21cc   :  { %2209 = vrot.lane.b32.xlu1 %v2183_v47, %s3020_s21 }
0x21d4   :  { %2230 = vrot.lane.b32.xlu1 %v4248_v5, %s3019_s20 }
0x21d9   :  { %v2205_v13 = vpop.permute.xlu0 %2204 }
0x21da   :  { %v2207_v0 = vmul.f32 %v2205_v13, %v2189_v22 }
0x21dc   :  { %2219 = vrot.lane.b32.xlu2 %v2207_v0, %s3020_s21 }
0x21e1   :  { %v2223_v48 = vpop.permute.xlu0 %2222 }
0x21e9   :  { %v2228_v54 = vpop.permute.xlu0 %2227 }
0x21f1   :  { %v2215_v35 = vpop.permute.xlu0 %2214 }
0x21f2   :  { %v2217_v60 = vsel %vm48_vm8, %v2215_v35, %v4248_v5 }
0x2236   :  { %v2220_v45 = vpop.permute.xlu2 %2219 }
0x2237   :  { %v2225_v34 = vsel %vm45_vm9, %v2220_v45, %v2223_v48 }
0x2238   :  { %2235 = vrot.lane.b32.xlu2 %v2225_v34, %s3018_s18 }
0x223e   :  { %v2210_v56 = vpop.permute.xlu1 %2209 }
0x223f   :  { %v2212_v51 = vsel %vm48_vm8, %v2210_v56, %v4238_v29 }
0x2246   :  { %v2231_v59 = vpop.permute.xlu1 %2230 }
0x2247   :  { %v2233_v61 = vsel %vm45_vm9, %v2228_v54, %v2231_v59 }
0x2248   :  { %2240 = vrot.lane.b32.xlu1 %v2233_v61, %s3018_s18 }
0x2292   :  { %v2236_v62 = vpop.permute.xlu2 %2235 }
0x2293   :  { %v4279_v49 = vsel %vm80_vm0, %v2212_v51, %v2236_v62 }
0x2294   :  { %2802 = vmatmul.msk.f32.vlgmr.msrb.gmra.mxu2 %vm221_vm1, %v4279_v49  ;;  %2803 = vmatmul.msk.f32.vlgmr.msrb.gmra.mxu3 %vm221_vm1, %v4279_v49 }
0x22ba   :  { %v2241_v12 = vpop.permute.xlu1 %2240 }
0x22bb   :  { %v4289_v27 = vsel %vm80_vm0, %v2217_v60, %v2241_v12 }
0x22bc   :  { %2294 = vrot.lane.b32.xlu1 %v4289_v27, %s3018_s18 }
0x2317   :  { %v2284_v63 = vpop.f32.mrf.mxu3  ;;  %v2264_v36 = vpop.f32.mrf.mxu2 }
0x2318   :  { %v2316_v29 = vadd.f32 %v2284_v63, %v4021_v20  ;;  %v2288_v24 = vadd.f32 %v2264_v36, %v4033_v50 }
0x231a   :  { %2974 = vtanh.f32 %v2316_v29  ;;  %v2317_v5 = vmul.f32 0.5, %v2316_v29  ;;  %v2289_v31 = vmul.f32 0.5, %v2288_v24 }
0x231b   :  { %2976 = vtanh.f32 %v2288_v24 }
0x231c   :  { %2978 = vtanh.f32 %v2317_v5 }
0x231d   :  { %2980 = vtanh.f32 %v2289_v31 }
0x2320   :  { %v2975_v3 = vpop.eup %2974 }
0x2321   :  { %2324 = vrot.lane.b32.xlu2 %v2975_v3, %s3018_s18  ;;  %v2977_v4 = vpop.eup %2976 }
0x2322   :  { %v2979_v6 = vpop.eup %2978 }
0x2323   :  { %v2319_v38 = vmul.f32 0.5, %v2979_v6  ;;  %v2981_v18 = vpop.eup %2980 }
0x2324   :  { %v2291_v32 = vmul.f32 0.5, %v2981_v18 }
0x2325   :  { %v2320_v10 = vadd.f32 0.5, %v2319_v38 }
0x2326   :  { %v2292_v50 = vadd.f32 0.5, %v2291_v32 }
0x2327   :  { %v2321_v33 = vmul.f32 %v2320_v10, %v4289_v27 }
0x2329   :  { %2300 = vrot.lane.b32.xlu2 %v2977_v4, %s3018_s18 }
0x232e   :  { %v2295_v11 = vpop.permute.xlu1 %2294 }
0x232f   :  { %v2297_v22 = vmul.f32 %v2295_v11, %v2292_v50 }
0x237b   :  { %v2325_v20 = vpop.permute.xlu2 %2324 }
0x237c   :  { %v2327_v19 = vmul.f32 %v2325_v20, %v2320_v10 }
0x237e   :  { %2329 = vrot.lane.b32.xlu0 %v2327_v19, %s3018_s18 }
0x2383   :  { %v2301_v21 = vpop.permute.xlu2 %2300 }
0x2384   :  { %v2303_v39 = vmul.f32 %v2301_v21, %v2292_v50 }
0x2386   :  { %2305 = vrot.lane.b32.xlu2 %v2303_v39, %s3018_s18 }
0x23e0   :  { %v2306_v23 = vpop.permute.xlu2 %2305 }
0x23e1   :  { %v2308_v15 = vadd.f32 %v2306_v23, %v2297_v22 }
0x23e3   :  { %2982 = vtanh.f32 %v2308_v15 }
0x23e9   :  { %v2983_v16 = vpop.eup %2982 }
0x23ea   :  { %2311 = vrot.lane.b32.xlu1 %v2983_v16, %s3018_s18 }
0x23f0   :  { %v2330_v14 = vpop.permute.xlu0 %2329 }
0x23f1   :  { %v2332_v53 = vadd.f32 %v2330_v14, %v2321_v33 }
0x23f3   :  { %2984 = vtanh.f32 %v2332_v53 }
0x23f9   :  { %v2985_v30 = vpop.eup %2984 }
0x23fa   :  { %2335 = vrot.lane.b32.xlu0 %v2985_v30, %s3018_s18 }
0x2402   :  { %2353 = vrot.lane.b32.xlu0 %v4279_v49, %s3019_s20 }
0x240a   :  { %2358 = vrot.lane.b32.xlu0 %v2332_v53, %s3019_s20 }
0x2412   :  { %2345 = vrot.lane.b32.xlu0 %v2308_v15, %s3019_s20 }
0x245c   :  { %v2312_v55 = vpop.permute.xlu1 %2311 }
0x245d   :  { %v2314_v58 = vmul.f32 %v2312_v55, %v2292_v50 }
0x245f   :  { %2340 = vrot.lane.b32.xlu1 %v2314_v58, %s3020_s21 }
0x2467   :  { %2361 = vrot.lane.b32.xlu1 %v4289_v27, %s3019_s20 }
0x246c   :  { %v2336_v17 = vpop.permute.xlu0 %2335 }
0x246d   :  { %v2338_v41 = vmul.f32 %v2336_v17, %v2320_v10 }
0x246f   :  { %2350 = vrot.lane.b32.xlu2 %v2338_v41, %s3020_s21 }
0x2474   :  { %v2354_v26 = vpop.permute.xlu0 %2353 }
0x247c   :  { %v2359_v40 = vpop.permute.xlu0 %2358 }
0x2484   :  { %v2346_v45 = vpop.permute.xlu0 %2345 }
0x2485   :  { %v2348_v28 = vsel %vm51_vm6, %v2346_v45, %v4289_v27 }
0x24c9   :  { %v2351_v7 = vpop.permute.xlu2 %2350 }
0x24ca   :  { %v2356_v43 = vsel %vm42_vm7, %v2351_v7, %v2354_v26 }
0x24cb   :  { %2366 = vrot.lane.b32.xlu2 %v2356_v43, %s3018_s18 }
0x24d1   :  { %v2341_v8 = vpop.permute.xlu1 %2340 }
0x24d2   :  { %v2343_v13 = vsel %vm51_vm6, %v2341_v8, %v4279_v49 }
0x24d9   :  { %v2362_v42 = vpop.permute.xlu1 %2361 }
0x24da   :  { %v2364_v47 = vsel %vm42_vm7, %v2359_v40, %v2362_v42 }
0x24db   :  { %2371 = vrot.lane.b32.xlu1 %v2364_v47, %s3018_s18 }
0x2525   :  { %v2367_v0 = vpop.permute.xlu2 %2366 }
0x2526   :  { %v4320_v48 = vsel %vm80_vm0, %v2343_v13, %v2367_v0 }
0x2527   :  { %2804 = vmatmul.msk.f32.vlgmr.msrb.gmra.mxu0 %vm221_vm1, %v4320_v48  ;;  %2805 = vmatmul.msk.f32.vlgmr.msra.gmra.mxu1 %vm221_vm1, %v4320_v48 }
0x254d   :  { %v2372_v34 = vpop.permute.xlu1 %2371 }
0x254e   :  { %v4330_v56 = vsel %vm80_vm0, %v2348_v28, %v2372_v34 }
0x254f   :  { %2425 = vrot.lane.b32.xlu1 %v4330_v56, %s3018_s18 }
0x25a4   :  { %v2415_v54 = vpop.f32.mrf.mxu1  ;;  %v2395_v61 = vpop.f32.mrf.mxu0 }
0x25a5   :  { %v2447_v59 = vadd.f32 %v2415_v54, %v4017_v57  ;;  %v2419_v51 = vadd.f32 %v2395_v61, %v4037_v2 }
0x25a7   :  { %2986 = vtanh.f32 %v2447_v59  ;;  %v2448_v49 = vmul.f32 0.5, %v2447_v59  ;;  %v2420_v35 = vmul.f32 0.5, %v2419_v51 }
0x25a8   :  { %2988 = vtanh.f32 %v2419_v51 }
0x25a9   :  { %2990 = vtanh.f32 %v2448_v49 }
0x25aa   :  { %2992 = vtanh.f32 %v2420_v35 }
0x25ad   :  { %v2987_v62 = vpop.eup %2986 }
0x25ae   :  { %2455 = vrot.lane.b32.xlu2 %v2987_v62, %s3018_s18  ;;  %v2989_v9 = vpop.eup %2988 }
0x25af   :  { %v2991_v60 = vpop.eup %2990 }
0x25b0   :  { %v2450_v12 = vmul.f32 0.5, %v2991_v60  ;;  %v2993_v63 = vpop.eup %2992 }
0x25b1   :  { %v2422_v36 = vmul.f32 0.5, %v2993_v63 }
0x25b2   :  { %v2451_v27 = vadd.f32 0.5, %v2450_v12 }
0x25b3   :  { %v2423_v2 = vadd.f32 0.5, %v2422_v36  ;;  %v2626_v36 = vld [vmem:[%s4436_s4 + $0x38] sm:$0xff] }
0x25b4   :  { %v2452_v10 = vmul.f32 %v2451_v27, %v4330_v56  ;;  %2642 = vmatpush.msra.mxu0 %v2626_v36 }
0x25b6   :  { %2431 = vrot.lane.b32.xlu2 %v2989_v9, %s3018_s18 }
0x25c1   :  { %v2426_v4 = vpop.permute.xlu1 %2425 }
0x25c2   :  { %v2428_v5 = vmul.f32 %v2426_v4, %v2423_v2  ;;  %v2622_v4 = vld [vmem:[%s4436_s4 + $0x18] sm:$0xff] }
0x2608   :  { %v2456_v57 = vpop.permute.xlu2 %2455 }
0x2609   :  { %v2458_v29 = vmul.f32 %v2456_v57, %v2451_v27 }
0x260b   :  { %2460 = vrot.lane.b32.xlu0 %v2458_v29, %s3018_s18 }
0x2610   :  { %v2432_v24 = vpop.permute.xlu2 %2431 }
0x2611   :  { %v2434_v3 = vmul.f32 %v2432_v24, %v2423_v2  ;;  %v2624_v24 = vld [vmem:[%s4436_s4 + $0x28] sm:$0xff] }
0x2613   :  { %2436 = vrot.lane.b32.xlu2 %v2434_v3, %s3018_s18  ;;  %v2623_v3 = vld [vmem:[%s4436_s4 + $0x20] sm:$0xff] }
0x266d   :  { %v2437_v31 = vpop.permute.xlu2 %2436 }
0x266e   :  { %v2439_v6 = vadd.f32 %v2437_v31, %v2428_v5  ;;  %v2621_v5 = vld [vmem:[%s4436_s4 + $0x10] sm:$0xff]  ;;  %v2620_v31 = vld [vmem:[%s4436_s4 + $0x8] sm:$0xff] }
0x2670   :  { %2994 = vtanh.f32 %v2439_v6 }
0x2676   :  { %v2995_v38 = vpop.eup %2994 }
0x2677   :  { %2442 = vrot.lane.b32.xlu1 %v2995_v38, %s3018_s18 }
0x267d   :  { %v2461_v18 = vpop.permute.xlu0 %2460 }
0x267e   :  { %v2463_v20 = vadd.f32 %v2461_v18, %v2452_v10  ;;  %v2619_v18 = vld [vmem:[%s4436_s4] sm:$0xff] }
0x2680   :  { %2996 = vtanh.f32 %v2463_v20 }
0x2686   :  { %v2997_v19 = vpop.eup %2996 }
0x2687   :  { %2466 = vrot.lane.b32.xlu0 %v2997_v19, %s3018_s18 }
0x268f   :  { %2484 = vrot.lane.b32.xlu0 %v4320_v48, %s3019_s20 }
0x2697   :  { %2489 = vrot.lane.b32.xlu0 %v2463_v20, %s3019_s20 }
0x269f   :  { %2476 = vrot.lane.b32.xlu0 %v2439_v6, %s3019_s20 }
0x26e9   :  { %v2443_v32 = vpop.permute.xlu1 %2442 }
0x26ea   :  { %v2445_v50 = vmul.f32 %v2443_v32, %v2423_v2  ;;  %v2625_v2 = vld [vmem:[%s4436_s4 + $0x30] sm:$0xff]  ;;  %s3021_s4 = smov 120  }
0x26eb   :  { %2643 = vmatpush.msra.mxu0 %v2625_v2 }
0x26ec   :  { %2471 = vrot.lane.b32.xlu1 %v2445_v50, %s3020_s21 }
0x26ed   :  { %2644 = vmatpush.msra.mxu0 %v2624_v24 }
0x26ef   :  { %2645 = vmatpush.msra.mxu0 %v2623_v3 }
0x26f1   :  { %2646 = vmatpush.msra.mxu0 %v2622_v4 }
0x26f3   :  { %2647 = vmatpush.msra.mxu0 %v2621_v5 }
0x26f4   :  { %2492 = vrot.lane.b32.xlu1 %v4330_v56, %s3019_s20 }
0x26f5   :  { %2648 = vmatpush.msra.mxu0 %v2620_v31 }
0x26f7   :  { %2649 = vmatpush.msra.mxu0 %v2619_v18 }
0x26f9   :  { %v2467_v21 = vpop.permute.xlu0 %2466 }
0x26fa   :  { %v2469_v39 = vmul.f32 %v2467_v21, %v2451_v27 }
0x26fc   :  { %2481 = vrot.lane.b32.xlu2 %v2469_v39, %s3020_s21 }
0x2701   :  { %v2485_v11 = vpop.permute.xlu0 %2484 }
0x2709   :  { %v2490_v16 = vpop.permute.xlu0 %2489 }
0x2711   :  { %v2477_v58 = vpop.permute.xlu0 %2476 }
0x2712   :  { %v2479_v1 = vsel %vm54_vm4, %v2477_v58, %v4330_v56 }
0x2756   :  { %v2482_v22 = vpop.permute.xlu2 %2481 }
0x2757   :  { %v2487_v23 = vsel %vm39_vm5, %v2482_v22, %v2485_v11 }
0x2758   :  { %2497 = vrot.lane.b32.xlu2 %v2487_v23, %s3018_s18 }
0x275e   :  { %v2472_v15 = vpop.permute.xlu1 %2471 }
0x275f   :  { %v2474_v53 = vsel %vm54_vm4, %v2472_v15, %v4320_v48 }
0x2766   :  { %v2493_v33 = vpop.permute.xlu1 %2492 }
0x2767   :  { %v2495_v14 = vsel %vm39_vm5, %v2490_v16, %v2493_v33 }
0x2768   :  { %2502 = vrot.lane.b32.xlu1 %v2495_v14, %s3018_s18 }
0x27b2   :  { %v2498_v30 = vpop.permute.xlu2 %2497 }
0x27b3   :  { %v4361_v55 = vsel %vm80_vm0, %v2474_v53, %v2498_v30 }
0x27b4   :  { %2806 = vmatmul.msk.f32.vlgmr.msra.gmra.mxu2 %vm221_vm1, %v4361_v55  ;;  %2807 = vmatmul.msk.f32.vlgmr.msra.gmra.mxu3 %vm221_vm1, %v4361_v55 }
0x27da   :  { %v2503_v17 = vpop.permute.xlu1 %2502 }
0x27db   :  { %v2505_v41 = vsel %vm80_vm0, %v2479_v1, %v2503_v17 }
0x27dc   :  { %2556 = vrot.lane.b32.xlu1 %v2505_v41, %s3018_s18 }
0x2837   :  { %v2546_v26 = vpop.f32.mrf.mxu3  ;;  %v2526_v43 = vpop.f32.mrf.mxu2 }
0x2838   :  { %v2578_v7 = vadd.f32 %v2546_v26, %v4013_v44  ;;  %v2550_v8 = vadd.f32 %v2526_v43, %v4039_v37 }
0x283a   :  { %2998 = vtanh.f32 %v2578_v7  ;;  %v2579_v25 = vmul.f32 0.5, %v2578_v7  ;;  %v2551_v47 = vmul.f32 0.5, %v2550_v8 }
0x283b   :  { %3000 = vtanh.f32 %v2550_v8 }
0x283c   :  { %3002 = vtanh.f32 %v2579_v25 }
0x283d   :  { %3004 = vtanh.f32 %v2551_v47 }
0x2840   :  { %v2999_v40 = vpop.eup %2998 }
0x2841   :  { %2586 = vrot.lane.b32.xlu2 %v2999_v40, %s3018_s18  ;;  %v3001_v42 = vpop.eup %3000 }
0x2842   :  { %v3003_v13 = vpop.eup %3002 }
0x2843   :  { %v2581_v0 = vmul.f32 0.5, %v3003_v13  ;;  %v3005_v45 = vpop.eup %3004 }
0x2844   :  { %v2553_v34 = vmul.f32 0.5, %v3005_v45 }
0x2845   :  { %v2582_v48 = vadd.f32 0.5, %v2581_v0 }
0x2846   :  { %v2554_v37 = vadd.f32 0.5, %v2553_v34 }
0x2847   :  { %v2583_v49 = vmul.f32 %v2582_v48, %v2505_v41 }
0x2849   :  { %2562 = vrot.lane.b32.xlu2 %v3001_v42, %s3018_s18 }
0x284e   :  { %v2557_v59 = vpop.permute.xlu1 %2556 }
0x284f   :  { %v2559_v61 = vmul.f32 %v2557_v59, %v2554_v37 }
0x289b   :  { %v2587_v44 = vpop.permute.xlu2 %2586 }
0x289c   :  { %v2589_v28 = vmul.f32 %v2587_v44, %v2582_v48 }
0x289e   :  { %2591 = vrot.lane.b32.xlu0 %v2589_v28, %s3018_s18 }
0x28a3   :  { %v2563_v56 = vpop.permute.xlu2 %2562 }
0x28a4   :  { %v2565_v54 = vmul.f32 %v2563_v56, %v2554_v37 }
0x28a6   :  { %2567 = vrot.lane.b32.xlu2 %v2565_v54, %s3018_s18 }
0x2900   :  { %v2568_v51 = vpop.permute.xlu2 %2567 }
0x2901   :  { %v2570_v62 = vadd.f32 %v2568_v51, %v2559_v61 }
0x2903   :  { %3006 = vtanh.f32 %v2570_v62 }
0x2909   :  { %v3007_v9 = vpop.eup %3006 }
0x290a   :  { %2573 = vrot.lane.b32.xlu1 %v3007_v9, %s3018_s18 }
0x2910   :  { %v2592_v35 = vpop.permute.xlu0 %2591 }
0x2911   :  { %v2594_v60 = vadd.f32 %v2592_v35, %v2583_v49 }
0x2913   :  { %3008 = vtanh.f32 %v2594_v60 }
0x2919   :  { %v3009_v12 = vpop.eup %3008 }
0x291a   :  { %2597 = vrot.lane.b32.xlu0 %v3009_v12, %s3018_s18 }
0x2922   :  { %2610 = vrot.lane.b32.xlu0 %v4361_v55, %s3019_s20 }
0x297c   :  { %v2574_v27 = vpop.permute.xlu1 %2573 }
0x297d   :  { %v2576_v63 = vmul.f32 %v2574_v27, %v2554_v37 }
0x297f   :  { %2602 = vrot.lane.b32.xlu1 %v2576_v63, %s3020_s21 }
0x298c   :  { %v2598_v57 = vpop.permute.xlu0 %2597 }
0x298d   :  { %v2600_v29 = vmul.f32 %v2598_v57, %v2582_v48 }
0x298f   :  { %2607 = vrot.lane.b32.xlu2 %v2600_v29, %s3020_s21 }
0x2994   :  { %v2611_v6 = vpop.permute.xlu0 %2610 }
0x29e9   :  { %v2608_v38 = vpop.permute.xlu2 %2607 }
0x29ea   :  { %v2613_v10 = vsel %vm36_vm3, %v2608_v38, %v2611_v6 }
0x29eb   :  { %2615 = vrot.lane.b32.xlu2 %v2613_v10, %s3018_s18 }
0x29f1   :  { %v2603_v20 = vpop.permute.xlu1 %2602 }
0x29f2   :  { %v2605_v19 = vsel %vm57_vm2, %v2603_v20, %v4361_v55 }
0x2a45   :  { %v2616_v32 = vpop.permute.xlu2 %2615 }
0x2a46   :  { %v2618_v50 = vsel %vm80_vm0, %v2605_v19, %v2616_v32 }
0x2a47   :  { %2808 = vmatmul.msk.f32.vlgmr.msra.gmra.mxu0 %vm221_vm1, %v2618_v50 }
0x2ac4   :  { %v2651_v21 = vpop.f32.mrf.mxu0 }
0x2ac5   :  { %v2652_v39 = vadd.f32 %v2817_v52, %v2651_v21 }
0x2ac7   :  { %v2668_v11 = vsel %vm2667_vm10, %v2652_v39, -inf  ;;  %v2655_v22 = vsel %vm2654_vm11, %v2652_v39, -inf }
0x2ac8   :  { %2669 = vmax.xlane.f32.xlu0 %v2668_v11  ;;  %2656 = vmax.xlane.f32.xlu1 %v2655_v22 }
0x2b3b   :  { %v2670_v46 = vpop.xlane.xlu0 %2669  ;;  %v2657_v33 = vpop.xlane.xlu1 %2656 }
0x2b3c   :  { %v2671_v23 = vsub.f32 %v2652_v39, %v2670_v46  ;;  %v2658_v14 = vsub.f32 %v2652_v39, %v2657_v33 }
0x2b3e   :  { %v2672_v15 = vmul.f32 1.442695, %v2671_v23  ;;  %v2659_v53 = vmul.f32 1.442695, %v2658_v14 }
0x2b40   :  { %3010 = vpow2.f32 %v2672_v15 }
0x2b41   :  { %3012 = vpow2.f32 %v2659_v53 }
0x2b46   :  { %v3011_v16 = vpop.eup %3010 }
0x2b47   :  { %2675 = vrot.lane.b32.xlu2 %v3011_v16, %s3021_s4  ;;  %v3013_v30 = vpop.eup %3012 }
0x2b48   :  { %v2661_v55 = vsel %vm2654_vm11, %v3013_v30, 0.0 }
0x2b70   :  { %2662 = vadd.xlane.f32.xlu2 %v2661_v55 }
0x2ba1   :  { %v2676_v58 = vpop.permute.xlu2 %2675 }
0x2ba2   :  { %v2679_v1 = vsel %vm2678_vm12, %v2676_v58, 0.0 }
0x2ba3   :  { %2680 = vadd.xlane.f32.xlu0 %v2679_v1 }
0x2be3   :  { %v2663_v17 = vpop.xlane.xlu2 %2662 }
0x2be4   :  { %3014 = vlog2.f32 %v2663_v17 }
0x2bea   :  { %v3015_v41 = vpop.eup %3014 }
0x2beb   :  { %v2665_v26 = vmul.f32 0.6931472, %v3015_v41 }
0x2bed   :  { %v2666_v7 = vsub.f32 %v2658_v14, %v2665_v26 }
0x2bef   :  { %2686 = vrot.lane.b32.xlu1 %v2666_v7, %s3020_s21 }
0x2c16   :  { %v2681_v43 = vpop.xlane.xlu0 %2680 }
0x2c17   :  { %3016 = vlog2.f32 %v2681_v43 }
0x2c1d   :  { %v3017_v8 = vpop.eup %3016 }
0x2c1e   :  { %v2683_v40 = vmul.f32 0.6931472, %v3017_v8 }
0x2c20   :  { %v2684_v42 = vsub.f32 %v2671_v23, %v2683_v40 }
0x2c22   :  { %2690 = vrot.lane.b32.xlu2 %v2684_v42, %s3020_s21 }
0x2c61   :  { %v2687_v25 = vpop.permute.xlu1 %2686 }
0x2c62   :  { %v2693_v47 = vsel %vm221_vm1, %v2618_v50, %v2687_v25 }
0x2c7c   :  { %v2691_v13 = vpop.permute.xlu2 %2690 }
0x2c7d   :  { %v2695_v0 = vsel %vm2694_vm13, %v2693_v47, %v2691_v13 }
0x2c7e   :  { %2697 = vst.msk [vmem:[%s4437_s10] sm:$0xff] %vm2696_vm14, %v2695_v0 }

</bundles_post_ra>
